<compile_context>
chip_gen: v7x
topology: tpu7x:2x2x1
jax: 0.10.0
libtpu: 0.0.40
codegen_flags: <defaults>
</compile_context>

<pallas_src>
import functools

import jax
import jax.numpy as jnp
from jax.experimental import pallas as pl
from jax.experimental.pallas import tpu as pltpu

HIDDEN = 768        # BERT hidden size (fixed by the module: fc1 = Linear(768, 512))
FC1 = 512
NCLS = 2
NCLS_PAD = 128      # lane-dense padded class axis
NEG_BIG = -1e30     # bias for padded class columns -> exp() underflows to 0 (f32 only)


def _round_up(x, m):
    return ((x + m - 1) // m) * m


def _device_kind():
    try:
        return jax.devices()[0].device_kind.lower()
    except Exception:
        return ""


# v5-generation chips have no bf16 VPU/EUP and a 128-row MXU; newer chips
# benefit from bf16 activations and a 256-row batch tile.
_IS_V5 = "v5" in _device_kind()
_USE_BF16_ACT = not _IS_V5


def _pick_tb(batch):
    """Batch tile: multiple of 16 (bf16 packing); 256 for big batches on v6e/v7x."""
    cap = 128
    if not _IS_V5 and batch >= 256:
        cap = 256
    return min(cap, _round_up(batch, 16))


def fused_head_kernel(pooled_ref, wp_ref, bp_ref, w1_ref, b1_ref,
                      w2_ref, b2_ref, o_ref, *, bf16_act):
    """pooler(dense+tanh) -> fc1 -> ReLU -> dropout(eval) -> fc2 -> log_softmax.

    pooled_ref: [TB, 768] bf16   (mask-pooled sequence summary)
    wp_ref:     [768, 768] bf16, bp_ref: [1, 768] f32   (BERT pooler)
    w1_ref:     [768, 512] bf16, b1_ref: [1, 512] f32   (fc1)
    w2_ref:     [512, 128] bf16 (zero-padded), b2_ref: [1, 128] f32 (NEG_BIG pad)
    o_ref:      [TB, 128]  f32 log-probs (cols >= 2 are junk, sliced by wrapper)
    """
    pooled = pooled_ref[...]                                   # [TB, 768] bf16

    # BERT pooler: tanh(pooled @ Wp + bp), f32 accumulate on the MXU.
    cls = jnp.dot(pooled, wp_ref[...], preferred_element_type=jnp.float32)
    if bf16_act:
        # v6e/v7x: bf16 EUP/VPU -> halve tanh + bias-add cost; consumer is a
        # bf16 matmul anyway.
        cls = jnp.tanh((cls + bp_ref[...]).astype(jnp.bfloat16))
    else:
        # v5e: no bf16 VPU/EUP -> keep the epilogue in f32, downcast after.
        cls = jnp.tanh(cls + bp_ref[...]).astype(jnp.bfloat16)  # [TB, 768]

    # fc1: [TB, 768] @ [768, 512] + [1, 512], then ReLU.
    h = jnp.dot(cls, w1_ref[...], preferred_element_type=jnp.float32)
    h = jnp.maximum(h + b1_ref[...], 0.0)                      # [TB, 512] f32

    # Dropout(p=0.1): inference/eval mode -> identity.
    # TODO(synk): training-mode dropout would need pltpu.prng_seed/prng_random_bits.

    # fc2 on the padded 128-class axis: padded weight cols are 0, padded bias
    # cols are NEG_BIG, so padded logits drop out of the logsumexp.
    logits = jnp.dot(h.astype(jnp.bfloat16), w2_ref[...],
                     preferred_element_type=jnp.float32)
    logits = logits + b2_ref[...]                              # [TB, 128] f32
    # NOTE: logits must stay f32 here — downcasting before the log-softmax
    # would break the NEG_BIG padded-class trick.

    # LogSoftmax over the class axis, numerically stable.
    m = jnp.max(logits, axis=1, keepdims=True)
    z = logits - m
    lse = jnp.log(jnp.sum(jnp.exp(z), axis=1, keepdims=True))
    o_ref[...] = z - lse


def prepare_head_params(params):
    """One-time weight prep (hoisted out of the forward): bf16 cast + class pad."""
    w2_pad = jnp.pad(params["w2"].astype(jnp.bfloat16),
                     ((0, 0), (0, NCLS_PAD - NCLS)))            # zero weight cols
    b2_pad = jnp.concatenate(
        [params["b2"].reshape(1, NCLS).astype(jnp.float32),
         jnp.full((1, NCLS_PAD - NCLS), NEG_BIG, jnp.float32)], axis=1)
    return {
        "emb": params["emb"],
        "wp": params["wp"].astype(jnp.bfloat16),
        "bp": params["bp"].reshape(1, HIDDEN).astype(jnp.float32),
        "w1": params["w1"].astype(jnp.bfloat16),
        "b1": params["b1"].reshape(1, FC1).astype(jnp.float32),
        "w2": w2_pad,
        "b2": b2_pad,
    }


def _build_head_call(TB, Bp, n_tiles, dim_sem, cost, buffered_weights):
    def w_spec(shape):
        if buffered_weights:
            # Grid-invariant operand: single VMEM buffer, fetched once.
            return pl.BlockSpec(shape, lambda i: (0, 0),
                                pipeline_mode=pl.Buffered(1))
        return pl.BlockSpec(shape, lambda i: (0, 0))

    kernel = functools.partial(fused_head_kernel, bf16_act=_USE_BF16_ACT)
    return pl.pallas_call(
        kernel,
        out_shape=jax.ShapeDtypeStruct((Bp, NCLS_PAD), jnp.float32),
        grid=(n_tiles,),
        in_specs=[
            pl.BlockSpec((TB, HIDDEN), lambda i: (i, 0)),        # pooled tile
            w_spec((HIDDEN, HIDDEN)),                            # wp (resident)
            w_spec((1, HIDDEN)),                                 # bp
            w_spec((HIDDEN, FC1)),                               # w1
            w_spec((1, FC1)),                                    # b1
            w_spec((FC1, NCLS_PAD)),                             # w2 (padded)
            w_spec((1, NCLS_PAD)),                               # b2 (padded)
        ],
        out_specs=pl.BlockSpec((TB, NCLS_PAD), lambda i: (i, 0)),
        compiler_params=pltpu.CompilerParams(dimension_semantics=dim_sem),
        cost_estimate=cost,
    )


def bert_arch_head(pooled, hp):
    """Fused pooler + classification head.  pooled: [B, 768] f32 -> [B, 2] f32.

    `hp` must come from prepare_head_params (pre-cast / pre-padded weights).
    """
    B = pooled.shape[0]
    TB = _pick_tb(B)
    Bp = _round_up(B, TB)
    n_tiles = Bp // TB

    # Only per-call activation prep: cast + pad the batch dim with jnp.pad.
    pooled_b = pooled.astype(jnp.bfloat16)
    if Bp > B:
        pooled_b = jnp.pad(pooled_b, ((0, Bp - B), (0, 0)))

    # Megacore-shard only when there is enough work to amortize the duplicated
    # weight fetch on the second TensorCore.
    dim_sem = ("parallel",) if n_tiles >= 4 else ("arbitrary",)

    cost = pl.CostEstimate(
        flops=2 * Bp * (HIDDEN * HIDDEN + HIDDEN * FC1 + FC1 * NCLS_PAD),
        transcendentals=Bp * (HIDDEN + NCLS_PAD),                # tanh + exp
        bytes_accessed=(
            2 * Bp * HIDDEN                                       # pooled (bf16)
            + 2 * (HIDDEN * HIDDEN + HIDDEN * FC1 + FC1 * NCLS_PAD)  # weights (bf16)
            + 4 * (HIDDEN + FC1 + NCLS_PAD)                       # biases (f32)
            + 4 * Bp * NCLS_PAD),                                 # output (f32)
    )

    args = (pooled_b, hp["wp"], hp["bp"], hp["w1"], hp["b1"], hp["w2"], hp["b2"])
    try:
        out = _build_head_call(TB, Bp, n_tiles, dim_sem, cost, True)(*args)
    except Exception:
        # Fallback for JAX versions without pl.Buffered pipeline_mode support.
        out = _build_head_call(TB, Bp, n_tiles, dim_sem, cost, False)(*args)

    return out[:B, :NCLS]


def synthetic_bert_pooled_pre(sent_id, mask, emb_table):
    """Deterministic stand-in for the BERT encoder output summary.

    Plain-JAX glue: embedding lookup + mask-weighted mean pooling -> [B, 768].
    (The pooler dense + tanh is fused into the Pallas kernel.)
    """
    emb = jnp.take(emb_table, sent_id, axis=0)                  # [B, S, 768]
    m = mask.astype(jnp.float32)[..., None]                     # [B, S, 1]
    return jnp.sum(emb * m, axis=1) / jnp.maximum(jnp.sum(m, axis=1), 1.0)


def bert_arch_forward(sent_id, mask, prepped_params):
    pooled = synthetic_bert_pooled_pre(sent_id, mask, prepped_params["emb"])
    return bert_arch_head(pooled, prepped_params)


def init_params(key, vocab=32):
    ks = jax.random.split(key, 6)
    scale = 0.02
    return {
        "emb": scale * jax.random.normal(ks[0], (vocab, HIDDEN), jnp.float32),
        # BERT pooler: Linear(768, 768) stored as [in, out]
        "wp":  scale * jax.random.normal(ks[1], (HIDDEN, HIDDEN), jnp.float32),
        "bp":  jnp.zeros((HIDDEN,), jnp.float32),
        # fc1: Linear(768, 512) stored as [in, out]
        "w1":  scale * jax.random.normal(ks[2], (HIDDEN, FC1), jnp.float32),
        "b1":  scale * jax.random.normal(ks[3], (1, FC1), jnp.float32),
        # fc2: Linear(512, 2) stored as [in, out]
        "w2":  scale * jax.random.normal(ks[4], (FC1, NCLS), jnp.float32),
        "b2":  scale * jax.random.normal(ks[5], (1, NCLS), jnp.float32),
    }


def _reference_head(pooled, params):
    """Pure-JAX f32 reference of pooler + head for tolerance checking."""
    cls = jnp.tanh(pooled @ params["wp"] + params["bp"].reshape(1, -1))
    h = jnp.maximum(cls @ params["w1"] + params["b1"].reshape(1, -1), 0.0)
    logits = h @ params["w2"] + params["b2"].reshape(1, -1)
    return jax.nn.log_softmax(logits, axis=1)


if __name__ == "__main__":
    key = jax.random.PRNGKey(0)
    B, S, VOCAB = 2, 8, 32

    k_id, k_p = jax.random.split(key)
    sent_id = jax.random.randint(k_id, (B, S), 0, VOCAB, dtype=jnp.int32)
    mask = jnp.ones((B, S), jnp.int32)
    params = init_params(k_p, vocab=VOCAB)

    # One-time weight prep (hoisted out of the forward path).
    prepped = prepare_head_params(params)

    out = bert_arch_forward(sent_id, mask, prepped)
    out = jax.block_until_ready(out)

    # Sanity: shape, log-softmax normalization, and tolerance vs f32 reference.
    assert out.shape == (B, NCLS)
    row_sums = jnp.exp(out).sum(axis=1)
    assert jnp.allclose(row_sums, 1.0, atol=1e-4), row_sums

    pooled_ref = synthetic_bert_pooled_pre(sent_id, mask, params["emb"])
    ref = _reference_head(pooled_ref, params)
    assert jnp.allclose(out, ref, atol=5e-2), (out, ref)   # bf16 MXU tolerance

    print("KERNEL_OK")
</pallas_src>

<mosaic_0001>
module attributes {stable_mosaic.version = 11 : i64} {
  func.func @fused_head_kernel(%arg0: i32, %arg1: memref<16x768xbf16, #tpu.memory_space<vmem>>, %arg2: memref<768x768xbf16, #tpu.memory_space<vmem>>, %arg3: memref<1x768xf32, #tpu.memory_space<vmem>>, %arg4: memref<768x512xbf16, #tpu.memory_space<vmem>>, %arg5: memref<1x512xf32, #tpu.memory_space<vmem>>, %arg6: memref<512x128xbf16, #tpu.memory_space<vmem>>, %arg7: memref<1x128xf32, #tpu.memory_space<vmem>>, %arg8: memref<16x128xf32, #tpu.memory_space<vmem>>) attributes {dimension_semantics = [#tpu.dimension_semantics<arbitrary>], iteration_bounds = array<i64: 1>, scalar_prefetch = 0 : i64, scratch_operands = 0 : i64, tpu.core_type = #tpu.core_type<tc>, window_params = [{transform_indices = @transform_0, window_bounds = array<i64: 16, 768>}, {pipeline_mode = #tpu.pipeline_mode<synchronous>, transform_indices = @transform_1, window_bounds = array<i64: 768, 768>}, {pipeline_mode = #tpu.pipeline_mode<synchronous>, transform_indices = @transform_2, window_bounds = array<i64: 1, 768>}, {pipeline_mode = #tpu.pipeline_mode<synchronous>, transform_indices = @transform_3, window_bounds = array<i64: 768, 512>}, {pipeline_mode = #tpu.pipeline_mode<synchronous>, transform_indices = @transform_4, window_bounds = array<i64: 1, 512>}, {pipeline_mode = #tpu.pipeline_mode<synchronous>, transform_indices = @transform_5, window_bounds = array<i64: 512, 128>}, {pipeline_mode = #tpu.pipeline_mode<synchronous>, transform_indices = @transform_6, window_bounds = array<i64: 1, 128>}, {transform_indices = @transform_7, window_bounds = array<i64: 16, 128>}]} {
    %c0 = arith.constant 0 : index
    %c0_0 = arith.constant 0 : index
    %0 = vector.load %arg1[%c0, %c0_0] : memref<16x768xbf16, #tpu.memory_space<vmem>>, vector<16x768xbf16>
    %c0_1 = arith.constant 0 : index
    %c0_2 = arith.constant 0 : index
    %1 = vector.load %arg2[%c0_1, %c0_2] : memref<768x768xbf16, #tpu.memory_space<vmem>>, vector<768x768xbf16>
    %cst = arith.constant dense<0.000000e+00> : vector<16x768xf32>
    %2 = tpu.matmul %0, %1, %cst {dimension_numbers = #tpu.dot_dimension_numbers<[1], [0], [0], [1], [0, 0, 1, 1], [], []>} : vector<16x768xbf16>, vector<768x768xbf16>, vector<16x768xf32> -> vector<16x768xf32>
    %c0_3 = arith.constant 0 : index
    %c0_4 = arith.constant 0 : index
    %3 = vector.load %arg3[%c0_3, %c0_4] : memref<1x768xf32, #tpu.memory_space<vmem>>, vector<1x768xf32>
    %4 = vector.broadcast %3 : vector<1x768xf32> to vector<16x768xf32>
    %5 = arith.addf %2, %4 : vector<16x768xf32>
    %6 = arith.truncf %5 : vector<16x768xf32> to vector<16x768xbf16>
    %7 = math.tanh %6 : vector<16x768xbf16>
    %c0_5 = arith.constant 0 : index
    %c0_6 = arith.constant 0 : index
    %8 = vector.load %arg4[%c0_5, %c0_6] : memref<768x512xbf16, #tpu.memory_space<vmem>>, vector<768x512xbf16>
    %cst_7 = arith.constant dense<0.000000e+00> : vector<16x512xf32>
    %9 = tpu.matmul %7, %8, %cst_7 {dimension_numbers = #tpu.dot_dimension_numbers<[1], [0], [0], [1], [0, 0, 1, 1], [], []>} : vector<16x768xbf16>, vector<768x512xbf16>, vector<16x512xf32> -> vector<16x512xf32>
    %c0_8 = arith.constant 0 : index
    %c0_9 = arith.constant 0 : index
    %10 = vector.load %arg5[%c0_8, %c0_9] : memref<1x512xf32, #tpu.memory_space<vmem>>, vector<1x512xf32>
    %11 = vector.broadcast %10 : vector<1x512xf32> to vector<16x512xf32>
    %12 = arith.addf %9, %11 : vector<16x512xf32>
    %cst_10 = arith.constant 0.000000e+00 : f32
    %13 = vector.broadcast %cst_10 : f32 to vector<16x512xf32>
    %14 = arith.maximumf %12, %13 : vector<16x512xf32>
    %15 = arith.truncf %14 : vector<16x512xf32> to vector<16x512xbf16>
    %c0_11 = arith.constant 0 : index
    %c0_12 = arith.constant 0 : index
    %16 = vector.load %arg6[%c0_11, %c0_12] : memref<512x128xbf16, #tpu.memory_space<vmem>>, vector<512x128xbf16>
    %cst_13 = arith.constant dense<0.000000e+00> : vector<16x128xf32>
    %17 = tpu.matmul %15, %16, %cst_13 {dimension_numbers = #tpu.dot_dimension_numbers<[1], [0], [0], [1], [0, 0, 1, 1], [], []>} : vector<16x512xbf16>, vector<512x128xbf16>, vector<16x128xf32> -> vector<16x128xf32>
    %c0_14 = arith.constant 0 : index
    %c0_15 = arith.constant 0 : index
    %18 = vector.load %arg7[%c0_14, %c0_15] : memref<1x128xf32, #tpu.memory_space<vmem>>, vector<1x128xf32>
    %19 = vector.broadcast %18 : vector<1x128xf32> to vector<16x128xf32>
    %20 = arith.addf %17, %19 : vector<16x128xf32>
    %cst_16 = arith.constant dense<0xFF800000> : vector<16xf32>
    %21 = vector.multi_reduction <maximumf>, %20, %cst_16 [1] : vector<16x128xf32> to vector<16xf32>
    %22 = vector.shape_cast %21 : vector<16xf32> to vector<16x1xf32>
    %23 = vector.broadcast %22 : vector<16x1xf32> to vector<16x128xf32>
    %24 = arith.subf %20, %23 : vector<16x128xf32>
    %25 = math.exp %24 : vector<16x128xf32>
    %cst_17 = arith.constant dense<0.000000e+00> : vector<16xf32>
    %26 = vector.multi_reduction <add>, %25, %cst_17 [1] : vector<16x128xf32> to vector<16xf32>
    %27 = vector.shape_cast %26 : vector<16xf32> to vector<16x1xf32>
    %28 = math.log %27 : vector<16x1xf32>
    %29 = vector.broadcast %28 : vector<16x1xf32> to vector<16x128xf32>
    %30 = arith.subf %24, %29 : vector<16x128xf32>
    %c0_18 = arith.constant 0 : index
    %c0_19 = arith.constant 0 : index
    %31 = vector.load %arg8[%c0_18, %c0_19] : memref<16x128xf32, #tpu.memory_space<vmem>>, vector<16x128xf32>
    tpu.vector_store %arg8[%c0_18, %c0_19], %30 {strides = array<i32>} : memref<16x128xf32, #tpu.memory_space<vmem>>, vector<16x128xf32>,
    return
  }
  func.func @transform_0(%arg0: i32) -> (i32, i32) {
    %c0_i32 = arith.constant 0 : i32
    %c0_i32_0 = arith.constant 0 : i32
    return %arg0, %c0_i32 : i32, i32
  }
  func.func @transform_1(%arg0: i32) -> (i32, i32) {
    %c0_i32 = arith.constant 0 : i32
    %c0_i32_0 = arith.constant 0 : i32
    %c0_i32_1 = arith.constant 0 : i32
    return %c0_i32, %c0_i32_0 : i32, i32
  }
  func.func @transform_2(%arg0: i32) -> (i32, i32) {
    %c0_i32 = arith.constant 0 : i32
    %c0_i32_0 = arith.constant 0 : i32
    %c0_i32_1 = arith.constant 0 : i32
    return %c0_i32, %c0_i32_0 : i32, i32
  }
  func.func @transform_3(%arg0: i32) -> (i32, i32) {
    %c0_i32 = arith.constant 0 : i32
    %c0_i32_0 = arith.constant 0 : i32
    %c0_i32_1 = arith.constant 0 : i32
    return %c0_i32, %c0_i32_0 : i32, i32
  }
  func.func @transform_4(%arg0: i32) -> (i32, i32) {
    %c0_i32 = arith.constant 0 : i32
    %c0_i32_0 = arith.constant 0 : i32
    %c0_i32_1 = arith.constant 0 : i32
    return %c0_i32, %c0_i32_0 : i32, i32
  }
  func.func @transform_5(%arg0: i32) -> (i32, i32) {
    %c0_i32 = arith.constant 0 : i32
    %c0_i32_0 = arith.constant 0 : i32
    %c0_i32_1 = arith.constant 0 : i32
    return %c0_i32, %c0_i32_0 : i32, i32
  }
  func.func @transform_6(%arg0: i32) -> (i32, i32) {
    %c0_i32 = arith.constant 0 : i32
    %c0_i32_0 = arith.constant 0 : i32
    %c0_i32_1 = arith.constant 0 : i32
    return %c0_i32, %c0_i32_0 : i32, i32
  }
  func.func @transform_7(%arg0: i32) -> (i32, i32) {
    %c0_i32 = arith.constant 0 : i32
    %c0_i32_0 = arith.constant 0 : i32
    return %arg0, %c0_i32 : i32, i32
  }
}

module attributes {stable_mosaic.version = 11 : i64} {
  func.func @fused_head_kernel(%arg0: i32, %arg1: memref<16x768xbf16, #tpu.memory_space<vmem>>, %arg2: memref<768x768xbf16, #tpu.memory_space<vmem>>, %arg3: memref<1x768xf32, #tpu.memory_space<vmem>>, %arg4: memref<768x512xbf16, #tpu.memory_space<vmem>>, %arg5: memref<1x512xf32, #tpu.memory_space<vmem>>, %arg6: memref<512x128xbf16, #tpu.memory_space<vmem>>, %arg7: memref<1x128xf32, #tpu.memory_space<vmem>>, %arg8: memref<16x128xf32, #tpu.memory_space<vmem>>) attributes {dimension_semantics = [#tpu.dimension_semantics<arbitrary>], iteration_bounds = array<i64: 1>, scalar_prefetch = 0 : i64, scratch_operands = 0 : i64, tpu.core_type = #tpu.core_type<tc>, window_params = [{transform_indices = @transform_0, window_bounds = array<i64: 16, 768>}, {pipeline_mode = #tpu.pipeline_mode<synchronous>, transform_indices = @transform_1, window_bounds = array<i64: 768, 768>}, {pipeline_mode = #tpu.pipeline_mode<synchronous>, transform_indices = @transform_2, window_bounds = array<i64: 1, 768>}, {pipeline_mode = #tpu.pipeline_mode<synchronous>, transform_indices = @transform_3, window_bounds = array<i64: 768, 512>}, {pipeline_mode = #tpu.pipeline_mode<synchronous>, transform_indices = @transform_4, window_bounds = array<i64: 1, 512>}, {pipeline_mode = #tpu.pipeline_mode<synchronous>, transform_indices = @transform_5, window_bounds = array<i64: 512, 128>}, {pipeline_mode = #tpu.pipeline_mode<synchronous>, transform_indices = @transform_6, window_bounds = array<i64: 1, 128>}, {transform_indices = @transform_7, window_bounds = array<i64: 16, 128>}]} {
    %c0 = arith.constant 0 : index
    %c0_0 = arith.constant 0 : index
    %0 = vector.load %arg1[%c0, %c0_0] : memref<16x768xbf16, #tpu.memory_space<vmem>>, vector<16x768xbf16>
    %c0_1 = arith.constant 0 : index
    %c0_2 = arith.constant 0 : index
    %1 = vector.load %arg2[%c0_1, %c0_2] : memref<768x768xbf16, #tpu.memory_space<vmem>>, vector<768x768xbf16>
    %cst = arith.constant dense<0.000000e+00> : vector<16x768xf32>
    %2 = tpu.matmul %0, %1, %cst {dimension_numbers = #tpu.dot_dimension_numbers<[1], [0], [0], [1], [0, 0, 1, 1], [], []>} : vector<16x768xbf16>, vector<768x768xbf16>, vector<16x768xf32> -> vector<16x768xf32>
    %c0_3 = arith.constant 0 : index
    %c0_4 = arith.constant 0 : index
    %3 = vector.load %arg3[%c0_3, %c0_4] : memref<1x768xf32, #tpu.memory_space<vmem>>, vector<1x768xf32>
    %4 = vector.broadcast %3 : vector<1x768xf32> to vector<16x768xf32>
    %5 = arith.addf %2, %4 : vector<16x768xf32>
    %6 = arith.truncf %5 : vector<16x768xf32> to vector<16x768xbf16>
    %7 = math.tanh %6 : vector<16x768xbf16>
    %c0_5 = arith.constant 0 : index
    %c0_6 = arith.constant 0 : index
    %8 = vector.load %arg4[%c0_5, %c0_6] : memref<768x512xbf16, #tpu.memory_space<vmem>>, vector<768x512xbf16>
    %cst_7 = arith.constant dense<0.000000e+00> : vector<16x512xf32>
    %9 = tpu.matmul %7, %8, %cst_7 {dimension_numbers = #tpu.dot_dimension_numbers<[1], [0], [0], [1], [0, 0, 1, 1], [], []>} : vector<16x768xbf16>, vector<768x512xbf16>, vector<16x512xf32> -> vector<16x512xf32>
    %c0_8 = arith.constant 0 : index
    %c0_9 = arith.constant 0 : index
    %10 = vector.load %arg5[%c0_8, %c0_9] : memref<1x512xf32, #tpu.memory_space<vmem>>, vector<1x512xf32>
    %11 = vector.broadcast %10 : vector<1x512xf32> to vector<16x512xf32>
    %12 = arith.addf %9, %11 : vector<16x512xf32>
    %cst_10 = arith.constant 0.000000e+00 : f32
    %13 = vector.broadcast %cst_10 : f32 to vector<16x512xf32>
    %14 = arith.maximumf %12, %13 : vector<16x512xf32>
    %15 = arith.truncf %14 : vector<16x512xf32> to vector<16x512xbf16>
    %c0_11 = arith.constant 0 : index
    %c0_12 = arith.constant 0 : index
    %16 = vector.load %arg6[%c0_11, %c0_12] : memref<512x128xbf16, #tpu.memory_space<vmem>>, vector<512x128xbf16>
    %cst_13 = arith.constant dense<0.000000e+00> : vector<16x128xf32>
    %17 = tpu.matmul %15, %16, %cst_13 {dimension_numbers = #tpu.dot_dimension_numbers<[1], [0], [0], [1], [0, 0, 1, 1], [], []>} : vector<16x512xbf16>, vector<512x128xbf16>, vector<16x128xf32> -> vector<16x128xf32>
    %c0_14 = arith.constant 0 : index
    %c0_15 = arith.constant 0 : index
    %18 = vector.load %arg7[%c0_14, %c0_15] : memref<1x128xf32, #tpu.memory_space<vmem>>, vector<1x128xf32>
    %19 = vector.broadcast %18 : vector<1x128xf32> to vector<16x128xf32>
    %20 = arith.addf %17, %19 : vector<16x128xf32>
    %cst_16 = arith.constant dense<0xFF800000> : vector<16xf32>
    %21 = vector.multi_reduction <maximumf>, %20, %cst_16 [1] : vector<16x128xf32> to vector<16xf32>
    %22 = vector.shape_cast %21 : vector<16xf32> to vector<16x1xf32>
    %23 = vector.broadcast %22 : vector<16x1xf32> to vector<16x128xf32>
    %24 = arith.subf %20, %23 : vector<16x128xf32>
    %25 = math.exp %24 : vector<16x128xf32>
    %cst_17 = arith.constant dense<0.000000e+00> : vector<16xf32>
    %26 = vector.multi_reduction <add>, %25, %cst_17 [1] : vector<16x128xf32> to vector<16xf32>
    %27 = vector.shape_cast %26 : vector<16xf32> to vector<16x1xf32>
    %28 = math.log %27 : vector<16x1xf32>
    %29 = vector.broadcast %28 : vector<16x1xf32> to vector<16x128xf32>
    %30 = arith.subf %24, %29 : vector<16x128xf32>
    %c0_18 = arith.constant 0 : index
    %c0_19 = arith.constant 0 : index
    %31 = vector.load %arg8[%c0_18, %c0_19] : memref<16x128xf32, #tpu.memory_space<vmem>>, vector<16x128xf32>
    tpu.vector_store %arg8[%c0_18, %c0_19], %30 {strides = array<i32>} : memref<16x128xf32, #tpu.memory_space<vmem>>, vector<16x128xf32>,
    return
  }
  func.func @transform_0(%arg0: i32) -> (i32, i32) {
    %c0_i32 = arith.constant 0 : i32
    %c0_i32_0 = arith.constant 0 : i32
    return %arg0, %c0_i32 : i32, i32
  }
  func.func @transform_1(%arg0: i32) -> (i32, i32) {
    %c0_i32 = arith.constant 0 : i32
    %c0_i32_0 = arith.constant 0 : i32
    %c0_i32_1 = arith.constant 0 : i32
    return %c0_i32, %c0_i32_0 : i32, i32
  }
  func.func @transform_2(%arg0: i32) -> (i32, i32) {
    %c0_i32 = arith.constant 0 : i32
    %c0_i32_0 = arith.constant 0 : i32
    %c0_i32_1 = arith.constant 0 : i32
    return %c0_i32, %c0_i32_0 : i32, i32
  }
  func.func @transform_3(%arg0: i32) -> (i32, i32) {
    %c0_i32 = arith.constant 0 : i32
    %c0_i32_0 = arith.constant 0 : i32
    %c0_i32_1 = arith.constant 0 : i32
    return %c0_i32, %c0_i32_0 : i32, i32
  }
  func.func @transform_4(%arg0: i32) -> (i32, i32) {
    %c0_i32 = arith.constant 0 : i32
    %c0_i32_0 = arith.constant 0 : i32
    %c0_i32_1 = arith.constant 0 : i32
    return %c0_i32, %c0_i32_0 : i32, i32
  }
  func.func @transform_5(%arg0: i32) -> (i32, i32) {
    %c0_i32 = arith.constant 0 : i32
    %c0_i32_0 = arith.constant 0 : i32
    %c0_i32_1 = arith.constant 0 : i32
    return %c0_i32, %c0_i32_0 : i32, i32
  }
  func.func @transform_6(%arg0: i32) -> (i32, i32) {
    %c0_i32 = arith.constant 0 : i32
    %c0_i32_0 = arith.constant 0 : i32
    %c0_i32_1 = arith.constant 0 : i32
    return %c0_i32, %c0_i32_0 : i32, i32
  }
  func.func @transform_7(%arg0: i32) -> (i32, i32) {
    %c0_i32 = arith.constant 0 : i32
    %c0_i32_0 = arith.constant 0 : i32
    return %arg0, %c0_i32 : i32, i32
  }
}

</mosaic_0001>

<bundles_post_ra>
// kernel: tpu_custom_call.1
= control target key start
LH: loop header
LB: loop body
LE: loop exit
PB: predicated region body
PF: predicated region fallthrough
CT: control target
= control target key end

     0   :  { %12 = vsyncpa [#allocation3], 0  ;;  %s5988_s0 = inlined_call_operand.hbm [shape: bf16[16,768], index: 0, kind: input, shape index: {}]   ;;  %s5989_s1 = inlined_call_operand.hbm [shape: bf16[768,768], index: 1, kind: input, shape index: {}]   ;;  %s5990_s2 = inlined_call_operand.hbm [shape: f32[1,768], index: 2, kind: input, shape index: {}]   ;;  %s5991_s3 = inlined_call_operand.hbm [shape: bf16[768,512], index: 3, kind: input, shape index: {}]   ;;  %s5992_s4 = inlined_call_operand.hbm [shape: f32[1,512], index: 4, kind: input, shape index: {}]   ;;  %s5993_s5 = inlined_call_operand.hbm [shape: bf16[512,128], index: 5, kind: input, shape index: {}]   ;;  %s5994_s6 = inlined_call_operand.hbm [shape: f32[1,128], index: 6, kind: input, shape index: {}]   ;;  %s5995_s7 = inlined_call_operand.hbm [shape: f32[16,128], index: 7, kind: output, shape index: {}]  }
   0x1   :  { %13 = vsyncpa [#allocation6], 0 }
   0x2   :  { %14 = vsyncpa [#allocation9], 0 }
   0x3   :  { %15 = vsyncpa [#allocation12], 0 }
   0x4   :  { %16 = vsyncpa [#allocation4], 0  ;;  %s5753_s24 = smov [#allocation5]   ;;  %s5754_s26 = smov [#allocation8]  }
   0x5   :  { %s34_s25 = sshll.u32 %s5753_s24, 4  ;;  %s56_s27 = sshll.u32 %s5754_s26, 4  ;;  %s35_s25 = int_to_ptr.vmem [resolvable:$true] %s34_s25  ;;  %s5809_s27 = int_to_ptr.vmem [resolvable:$true] %s56_s27 }
   0x6   :  { %s5567_s30 = scalar_lea.hbm %s5989_s1, 36864 }
   0x7   :  { %p5568_p0 = scmp.ne.s32.totalorder %s5989_s1, %s5567_s30  ;;  %p5571_p1 = scmp.lt.u32.totalorder %s5567_s30, %s5989_s1 }
   0x9   :  { %p5573_p2 = pnand %p5571_p1, %p5568_p0 }
   0xb   :  { %5576 = shalt.err (!%p5573_p2)
}
   0xc   :  { %s5577_s12 = scalar_lea.vmem %s35_s25, 36864  ;;  %p5582_p4 = scmp.lt.s32.totalorder %s35_s25, %s35_s25 }
   0xd   :  { %p5578_p3 = scmp.ne.s32.totalorder %s35_s25, %s5577_s12  ;;  %p5583_p5 = scmp.lt.s32.totalorder %s5577_s12, %s5577_s12 }
   0xf   :  { %p5584_p6 = por %p5583_p5, %p5582_p4 }
  0x11   :  { %p5585_p7 = pnand %p5584_p6, %p5578_p3 }
  0x13   :  { %5588 = shalt.err (!%p5585_p7)
}
  0x14   :  { %s5755_s13 = smov 384   ;;  %s5756_s14 = smov 24  }
  0x15   :  { %40 = dma.hbm_to_vmem [thread:$0]  %s5989_s1, 36864, %s35_s25, [#allocation6], %s5755_s13, %s5755_s13, %s5756_s14  }
  0x16   :  { %s5589_s19 = scalar_lea.hbm %s5991_s3, 24576 }
  0x17   :  { %p5590_p8 = scmp.ne.s32.totalorder %s5991_s3, %s5589_s19  ;;  %p5593_p9 = scmp.lt.u32.totalorder %s5589_s19, %s5991_s3 }
  0x19   :  { %p5595_p10 = pnand %p5593_p9, %p5590_p8 }
  0x1b   :  { %5598 = shalt.err (!%p5595_p10)
}
  0x1c   :  { %s5599_s24 = scalar_lea.vmem %s5809_s27, 24576  ;;  %p5604_p12 = scmp.lt.s32.totalorder %s5809_s27, %s5809_s27 }
  0x1d   :  { %p5600_p11 = scmp.ne.s32.totalorder %s5809_s27, %s5599_s24  ;;  %p5605_p13 = scmp.lt.s32.totalorder %s5599_s24, %s5599_s24 }
  0x1f   :  { %p5606_p0 = por %p5605_p13, %p5604_p12 }
  0x21   :  { %p5607_p1 = pnand %p5606_p0, %p5600_p11 }
  0x23   :  { %5610 = shalt.err (!%p5607_p1)
}
  0x24   :  { %s5757_s1 = smov 256   ;;  %s5758_s25 = smov 16  }
  0x25   :  { %62 = dma.hbm_to_vmem [thread:$0]  %s5991_s3, 24576, %s5809_s27, [#allocation9], %s5757_s1, %s5757_s1, %s5758_s25  }
  0x26   :  { %s5759_s29 = smov [#allocation11]   ;;  %s5611_s10 = scalar_lea.hbm %s5993_s5, 4096 }
  0x27   :  { %s78_s30 = sshll.u32 %s5759_s29, 4  ;;  %p5612_p2 = scmp.ne.s32.totalorder %s5993_s5, %s5611_s10  ;;  %s79_s30 = int_to_ptr.vmem [resolvable:$true] %s78_s30 }
  0x28   :  { %p5615_p3 = scmp.lt.u32.totalorder %s5611_s10, %s5993_s5 }
  0x2a   :  { %p5617_p4 = pnand %p5615_p3, %p5612_p2 }
  0x2c   :  { %5620 = shalt.err (!%p5617_p4)
}
  0x2d   :  { %s5621_s17 = scalar_lea.vmem %s79_s30, 4096  ;;  %p5626_p6 = scmp.lt.s32.totalorder %s79_s30, %s79_s30 }
  0x2e   :  { %p5622_p5 = scmp.ne.s32.totalorder %s79_s30, %s5621_s17  ;;  %p5627_p7 = scmp.lt.s32.totalorder %s5621_s17, %s5621_s17 }
  0x30   :  { %p5628_p8 = por %p5627_p7, %p5626_p6 }
  0x32   :  { %p5629_p9 = pnand %p5628_p8, %p5622_p5 }
  0x34   :  { %5632 = shalt.err (!%p5629_p9)
}
  0x35   :  { %s5760_s3 = smov 64   ;;  %s5761_s27 = smov 4  }
  0x36   :  { %84 = dma.hbm_to_vmem [thread:$0]  %s5993_s5, 4096, %s79_s30, [#allocation12], %s5760_s3, %s5760_s3, %s5761_s27  }
  0x37   :  { %s5762_s20 = smov [#allocation2]   ;;  %s5763_s22 = smov [#allocation7]  }
  0x38   :  { %s22_s21 = sshll.u32 %s5762_s20, 4  ;;  %s47_s23 = sshll.u32 %s5763_s22, 4  ;;  %s23_s21 = int_to_ptr.vmem [resolvable:$true] %s22_s21  ;;  %s48_s23 = int_to_ptr.vmem [resolvable:$true] %s47_s23 }
  0x39   :  { %s5633_s25 = scalar_lea.hbm %s5988_s0, 768 }
  0x3a   :  { %p5634_p10 = scmp.ne.s32.totalorder %s5988_s0, %s5633_s25  ;;  %p5637_p11 = scmp.lt.u32.totalorder %s5633_s25, %s5988_s0 }
  0x3c   :  { %p5639_p12 = pnand %p5637_p11, %p5634_p10 }
  0x3e   :  { %5642 = shalt.err (!%p5639_p12)
}
  0x3f   :  { %s5643_s5 = scalar_lea.vmem %s23_s21, 768  ;;  %p5648_p0 = scmp.lt.s32.totalorder %s23_s21, %s23_s21 }
  0x40   :  { %p5644_p13 = scmp.ne.s32.totalorder %s23_s21, %s5643_s5  ;;  %p5649_p1 = scmp.lt.s32.totalorder %s5643_s5, %s5643_s5 }
  0x42   :  { %p5650_p2 = por %p5649_p1, %p5648_p0 }
  0x44   :  { %p5651_p3 = pnand %p5650_p2, %p5644_p13 }
  0x46   :  { %5654 = shalt.err (!%p5651_p3)
}
  0x47   :  { %28 = dma.hbm_to_vmem [thread:$0]  %s5988_s0, 768, %s23_s21, [#allocation3], %s5755_s13, %s5755_s13, %s5756_s14  }
  0x48   :  { %s5655_s12 = scalar_lea.hbm %s5990_s2, 96 }
  0x49   :  { %p5656_p4 = scmp.ne.s32.totalorder %s5990_s2, %s5655_s12  ;;  %p5659_p5 = scmp.lt.u32.totalorder %s5655_s12, %s5990_s2 }
  0x4b   :  { %p5661_p6 = pnand %p5659_p5, %p5656_p4 }
  0x4d   :  { %5664 = shalt.err (!%p5661_p6)
}
  0x4e   :  { %s5665_s27 = scalar_lea.vmem %s48_s23, 96  ;;  %p5670_p8 = scmp.lt.s32.totalorder %s48_s23, %s48_s23 }
  0x4f   :  { %p5666_p7 = scmp.ne.s32.totalorder %s48_s23, %s5665_s27  ;;  %p5671_p9 = scmp.lt.s32.totalorder %s5665_s27, %s5665_s27 }
  0x51   :  { %p5672_p10 = por %p5671_p9, %p5670_p8 }
  0x53   :  { %p5673_p11 = pnand %p5672_p10, %p5666_p7 }
  0x55   :  { %5676 = shalt.err (!%p5673_p11)
}
  0x56   :  { %50 = dma.hbm_to_vmem [thread:$0]  %s5990_s2, 96, %s48_s23, [#allocation6]  }
  0x57   :  { %s5764_s14 = smov [#allocation10]   ;;  %s5765_s19 = smov [#allocation13]  }
  0x58   :  { %s69_s18 = sshll.u32 %s5764_s14, 4  ;;  %s91_s20 = sshll.u32 %s5765_s19, 4  ;;  %s70_s18 = int_to_ptr.vmem [resolvable:$true] %s69_s18  ;;  %s92_s20 = int_to_ptr.vmem [resolvable:$true] %s91_s20 }
  0x59   :  { %s5677_s24 = scalar_lea.hbm %s5992_s4, 64 }
  0x5a   :  { %p5678_p12 = scmp.ne.s32.totalorder %s5992_s4, %s5677_s24  ;;  %p5681_p13 = scmp.lt.u32.totalorder %s5677_s24, %s5992_s4 }
  0x5c   :  { %p5683_p0 = pnand %p5681_p13, %p5678_p12 }
  0x5e   :  { %5686 = shalt.err (!%p5683_p0)
}
  0x5f   :  { %s5687_s2 = scalar_lea.vmem %s70_s18, 64  ;;  %p5692_p2 = scmp.lt.s32.totalorder %s70_s18, %s70_s18 }
  0x60   :  { %p5688_p1 = scmp.ne.s32.totalorder %s70_s18, %s5687_s2  ;;  %p5693_p3 = scmp.lt.s32.totalorder %s5687_s2, %s5687_s2 }
  0x62   :  { %p5694_p4 = por %p5693_p3, %p5692_p2 }
  0x64   :  { %p5695_p5 = pnand %p5694_p4, %p5688_p1 }
  0x66   :  { %5698 = shalt.err (!%p5695_p5)
}
  0x67   :  { %72 = dma.hbm_to_vmem [thread:$0]  %s5992_s4, 64, %s70_s18, [#allocation9]  }
  0x68   :  { %s5699_s30 = scalar_lea.hbm %s5994_s6, 16 }
  0x69   :  { %p5700_p6 = scmp.ne.s32.totalorder %s5994_s6, %s5699_s30  ;;  %p5703_p7 = scmp.lt.u32.totalorder %s5699_s30, %s5994_s6 }
  0x6b   :  { %p5705_p8 = pnand %p5703_p7, %p5700_p6 }
  0x6d   :  { %5708 = shalt.err (!%p5705_p8)
}
  0x6e   :  { %s5709_s15 = scalar_lea.vmem %s92_s20, 16  ;;  %s5713_s16 = scalar_lea.vmem %s92_s20, 32 }
  0x6f   :  { %p5710_p9 = scmp.ne.s32.totalorder %s92_s20, %s5709_s15  ;;  %p5714_p10 = scmp.lt.s32.totalorder %s92_s20, %s92_s20 }
  0x70   :  { %p5715_p11 = scmp.lt.s32.totalorder %s5713_s16, %s5709_s15 }
  0x72   :  { %p5716_p12 = por %p5715_p11, %p5714_p10 }
  0x74   :  { %p5717_p13 = pnand %p5716_p12, %p5710_p9 }
  0x76   :  { %5720 = shalt.err (!%p5717_p13)
}
  0x77   :  { %94 = dma.hbm_to_vmem [thread:$0]  %s5994_s6, 16, %s92_s20, [#allocation12]  }
  0x78   :  { %5743 = dma.done.wait [#allocation3], 768  }
  0x79   :  { %5744 = vsyncadd [#allocation3], 4294966528 }
  0x7a   :  { %5745 = dma.done.wait [#allocation6], 36960  }
  0x7b   :  { %5746 = vsyncadd [#allocation6], 4294930336 }
  0x7c   :  { %5747 = dma.done.wait [#allocation9], 24640  }
  0x7d   :  { %5748 = vsyncadd [#allocation9], 4294942656 }
  0x7e   :  { %5749 = dma.done.wait [#allocation12], 4112  }
  0x7f   :  { %5750 = vsyncadd [#allocation12], 4294963184  ;;  %v4782_v0 = vld [vmem:[#allocation5 + $0x4] ss:$24 sps:$4 sm:$0xff]   ;;  %v4786_v2 = vld [vmem:[#allocation5] ss:$24 sps:$4 sm:$0xff]  }
  0x80   :  { %v4784_v1 = vld [vmem:[#allocation5 + $0x304] ss:$24 sps:$4 sm:$0xff]   ;;  %1913 = vmatprep.subr.bf16.mxu1 %v4782_v0  ;;  %v4787_v3 = vld [vmem:[#allocation5 + $0x300] ss:$24 sps:$4 sm:$0xff]   ;;  %v4788_v4 = vld [vmem:[#allocation5 + $0x34] ss:$24 sps:$4 sm:$0xff]  }
  0x81   :  { %1956 = vmatprep.subr.bf16.mxu0 %v4784_v1  ;;  %1914 = vmatpush1.bf16.msra.mxu1 %v4786_v2  ;;  %v4790_v5 = vld [vmem:[#allocation5 + $0x334] ss:$24 sps:$4 sm:$0xff]   ;;  %v4792_v6 = vld [vmem:[#allocation5 + $0x30] ss:$24 sps:$4 sm:$0xff]   ;;  %v4794_v8 = vld [vmem:[#allocation5 + $0x64] ss:$24 sps:$4 sm:$0xff]  }
  0x82   :  { %1957 = vmatpush1.bf16.msra.mxu0 %v4787_v3  ;;  %1915 = vmatprep.subr.bf16.mxu1 %v4788_v4  ;;  %v4793_v7 = vld [vmem:[#allocation5 + $0x330] ss:$24 sps:$4 sm:$0xff]   ;;  %v4796_v9 = vld [vmem:[#allocation5 + $0x364] ss:$24 sps:$4 sm:$0xff]   ;;  %v4798_v10 = vld [vmem:[#allocation5 + $0x60] ss:$24 sps:$4 sm:$0xff]  }
  0x83   :  { %1958 = vmatprep.subr.bf16.mxu0 %v4790_v5  ;;  %v4799_v11 = vld [vmem:[#allocation5 + $0x360] ss:$24 sps:$4 sm:$0xff]   ;;  %v4800_v12 = vld [vmem:[#allocation5 + $0x94] ss:$24 sps:$4 sm:$0xff]   ;;  %v4804_v14 = vld [vmem:[#allocation5 + $0x90] ss:$24 sps:$4 sm:$0xff]  }
  0x84   :  { %v4802_v13 = vld [vmem:[#allocation5 + $0x394] ss:$24 sps:$4 sm:$0xff]   ;;  %v4805_v15 = vld [vmem:[#allocation5 + $0x390] ss:$24 sps:$4 sm:$0xff]   ;;  %v4806_v16 = vld [vmem:[#allocation5 + $0xc4] ss:$24 sps:$4 sm:$0xff]  }
  0x85   :  { %1916 = vmatpush1.bf16.msra.mxu1 %v4792_v6  ;;  %v4808_v17 = vld [vmem:[#allocation5 + $0x3c4] ss:$24 sps:$4 sm:$0xff]   ;;  %v4810_v18 = vld [vmem:[#allocation5 + $0xc0] ss:$24 sps:$4 sm:$0xff]   ;;  %v4812_v20 = vld [vmem:[#allocation5 + $0xf4] ss:$24 sps:$4 sm:$0xff]  }
  0x86   :  { %1959 = vmatpush1.bf16.msra.mxu0 %v4793_v7  ;;  %1917 = vmatprep.subr.bf16.mxu1 %v4794_v8  ;;  %v4811_v19 = vld [vmem:[#allocation5 + $0x3c0] ss:$24 sps:$4 sm:$0xff]   ;;  %v4814_v21 = vld [vmem:[#allocation5 + $0x3f4] ss:$24 sps:$4 sm:$0xff]   ;;  %v4816_v22 = vld [vmem:[#allocation5 + $0xf0] ss:$24 sps:$4 sm:$0xff]  }
  0x87   :  { %1960 = vmatprep.subr.bf16.mxu0 %v4796_v9  ;;  %v4817_v23 = vld [vmem:[#allocation5 + $0x3f0] ss:$24 sps:$4 sm:$0xff]   ;;  %v4818_v24 = vld [vmem:[#allocation5 + $0x124] ss:$24 sps:$4 sm:$0xff]   ;;  %v4822_v26 = vld [vmem:[#allocation5 + $0x120] ss:$24 sps:$4 sm:$0xff]  }
  0x88   :  { %v4820_v25 = vld [vmem:[#allocation5 + $0x424] ss:$24 sps:$4 sm:$0xff]   ;;  %v4823_v27 = vld [vmem:[#allocation5 + $0x420] ss:$24 sps:$4 sm:$0xff]   ;;  %v4824_v28 = vld [vmem:[#allocation5 + $0x154] ss:$24 sps:$4 sm:$0xff]  }
  0x89   :  { %1918 = vmatpush1.bf16.msra.mxu1 %v4798_v10  ;;  %v4826_v29 = vld [vmem:[#allocation5 + $0x454] ss:$24 sps:$4 sm:$0xff]   ;;  %v4828_v30 = vld [vmem:[#allocation5 + $0x150] ss:$24 sps:$4 sm:$0xff]   ;;  %v4830_v32 = vld [vmem:[#allocation5 + $0x184] ss:$24 sps:$4 sm:$0xff]  }
  0x8a   :  { %1961 = vmatpush1.bf16.msra.mxu0 %v4799_v11  ;;  %1919 = vmatprep.subr.bf16.mxu1 %v4800_v12  ;;  %v4829_v31 = vld [vmem:[#allocation5 + $0x450] ss:$24 sps:$4 sm:$0xff]   ;;  %v4832_v33 = vld [vmem:[#allocation5 + $0x484] ss:$24 sps:$4 sm:$0xff]   ;;  %v4834_v34 = vld [vmem:[#allocation5 + $0x180] ss:$24 sps:$4 sm:$0xff]  }
  0x8b   :  { %1962 = vmatprep.subr.bf16.mxu0 %v4802_v13  ;;  %v4835_v35 = vld [vmem:[#allocation5 + $0x480] ss:$24 sps:$4 sm:$0xff]   ;;  %v4836_v36 = vld [vmem:[#allocation5 + $0x1b4] ss:$24 sps:$4 sm:$0xff]   ;;  %v4840_v38 = vld [vmem:[#allocation5 + $0x1b0] ss:$24 sps:$4 sm:$0xff]  }
  0x8c   :  { %v4838_v37 = vld [vmem:[#allocation5 + $0x4b4] ss:$24 sps:$4 sm:$0xff]   ;;  %v4841_v39 = vld [vmem:[#allocation5 + $0x4b0] ss:$24 sps:$4 sm:$0xff]   ;;  %v4842_v40 = vld [vmem:[#allocation5 + $0x1e4] ss:$24 sps:$4 sm:$0xff]  }
  0x8d   :  { %1920 = vmatpush1.bf16.msra.mxu1 %v4804_v14  ;;  %v4844_v41 = vld [vmem:[#allocation5 + $0x4e4] ss:$24 sps:$4 sm:$0xff]   ;;  %v4846_v42 = vld [vmem:[#allocation5 + $0x1e0] ss:$24 sps:$4 sm:$0xff]   ;;  %v4848_v44 = vld [vmem:[#allocation5 + $0x214] ss:$24 sps:$4 sm:$0xff]  }
  0x8e   :  { %1963 = vmatpush1.bf16.msra.mxu0 %v4805_v15  ;;  %1921 = vmatprep.subr.bf16.mxu1 %v4806_v16  ;;  %v4847_v43 = vld [vmem:[#allocation5 + $0x4e0] ss:$24 sps:$4 sm:$0xff]   ;;  %v4850_v45 = vld [vmem:[#allocation5 + $0x514] ss:$24 sps:$4 sm:$0xff]   ;;  %v4852_v46 = vld [vmem:[#allocation5 + $0x210] ss:$24 sps:$4 sm:$0xff]  }
  0x8f   :  { %1964 = vmatprep.subr.bf16.mxu0 %v4808_v17  ;;  %v4853_v47 = vld [vmem:[#allocation5 + $0x510] ss:$24 sps:$4 sm:$0xff]   ;;  %v4854_v48 = vld [vmem:[#allocation5 + $0x244] ss:$24 sps:$4 sm:$0xff]   ;;  %v5906_v49 = vld [vmem:[#allocation2 + $0x4] ss:$24 sps:$4 sm:$0xff]  }
  0x90   :  { %v5908_v50 = vld [vmem:[#allocation2 + $0xc] ss:$24 sps:$4 sm:$0xff]   ;;  %1945 = vmatprep.mubr.bf16.mxu1 %v5906_v49  ;;  %v4858_v52 = vld [vmem:[#allocation5 + $0x240] ss:$24 sps:$4 sm:$0xff]   ;;  %v4864_v56 = vld [vmem:[#allocation5 + $0x270] ss:$24 sps:$4 sm:$0xff]  }
  0x91   :  { %1922 = vmatpush1.bf16.msra.mxu1 %v4810_v18  ;;  %v4856_v51 = vld [vmem:[#allocation5 + $0x544] ss:$24 sps:$4 sm:$0xff]   ;;  %1988 = vmatprep.mubr.bf16.mxu0 %v5908_v50  ;;  %v4859_v53 = vld [vmem:[#allocation5 + $0x540] ss:$24 sps:$4 sm:$0xff]   ;;  %v4860_v54 = vld [vmem:[#allocation5 + $0x274] ss:$24 sps:$4 sm:$0xff]  }
  0x92   :  { %1965 = vmatpush1.bf16.msra.mxu0 %v4811_v19  ;;  %1923 = vmatprep.subr.bf16.mxu1 %v4812_v20  ;;  %v4862_v55 = vld [vmem:[#allocation5 + $0x574] ss:$24 sps:$4 sm:$0xff]   ;;  %v4865_v57 = vld [vmem:[#allocation5 + $0x570] ss:$24 sps:$4 sm:$0xff]   ;;  %v4866_v58 = vld [vmem:[#allocation5 + $0x2a4] ss:$24 sps:$4 sm:$0xff]  }
  0x93   :  { %1966 = vmatprep.subr.bf16.mxu0 %v4814_v21  ;;  %v4868_v59 = vld [vmem:[#allocation5 + $0x5a4] ss:$24 sps:$4 sm:$0xff]   ;;  %v4870_v60 = vld [vmem:[#allocation5 + $0x2a0] ss:$24 sps:$4 sm:$0xff]   ;;  %v4872_v62 = vld [vmem:[#allocation5 + $0x2d4] ss:$24 sps:$4 sm:$0xff]  }
  0x94   :  { %v4871_v61 = vld [vmem:[#allocation5 + $0x5a0] ss:$24 sps:$4 sm:$0xff]   ;;  %v4874_v63 = vld [vmem:[#allocation5 + $0x5d4] ss:$24 sps:$4 sm:$0xff]   ;;  %v4876_v0 = vld [vmem:[#allocation5 + $0x2d0] ss:$24 sps:$4 sm:$0xff]  }
  0x95   :  { %1924 = vmatpush1.bf16.msra.mxu1 %v4816_v22  ;;  %v4877_v1 = vld [vmem:[#allocation5 + $0x5d0] ss:$24 sps:$4 sm:$0xff]   ;;  %v4885_v2 = vld [vmem:[#allocation5 + $0x604] ss:$24 sps:$4 sm:$0xff]   ;;  %v4883_v5 = vld [vmem:[#allocation5 + $0x600] ss:$24 sps:$4 sm:$0xff]  }
  0x96   :  { %1967 = vmatpush1.bf16.msra.mxu0 %v4817_v23  ;;  %1925 = vmatprep.subr.bf16.mxu1 %v4818_v24  ;;  %v4888_v3 = vld [vmem:[#allocation5 + $0xc] ss:$24 sps:$4 sm:$0xff]   ;;  %v5912_v4 = vld [vmem:[#allocation2] ss:$24 sps:$4 sm:$0xff]   ;;  %v4895_v9 = vld [vmem:[#allocation5 + $0x3c] ss:$24 sps:$4 sm:$0xff]  }
  0x97   :  { %1968 = vmatprep.subr.bf16.mxu0 %v4820_v25  ;;  %v4886_v6 = vld [vmem:[#allocation5 + $0x8] ss:$24 sps:$4 sm:$0xff]   ;;  %v5914_v7 = vld [vmem:[#allocation2 + $0x8] ss:$24 sps:$4 sm:$0xff]   ;;  %v4892_v8 = vld [vmem:[#allocation5 + $0x634] ss:$24 sps:$4 sm:$0xff]  }
  0x98   :  { %v4890_v10 = vld [vmem:[#allocation5 + $0x630] ss:$24 sps:$4 sm:$0xff]   ;;  %v4898_v12 = vld [vmem:[#allocation5 + $0x664] ss:$24 sps:$4 sm:$0xff]   ;;  %v4896_v14 = vld [vmem:[#allocation5 + $0x660] ss:$24 sps:$4 sm:$0xff]  }
  0x99   :  { %1926 = vmatpush1.bf16.msra.mxu1 %v4822_v26  ;;  %v4893_v11 = vld [vmem:[#allocation5 + $0x38] ss:$24 sps:$4 sm:$0xff]   ;;  %v4901_v13 = vld [vmem:[#allocation5 + $0x6c] ss:$24 sps:$4 sm:$0xff]   ;;  %v4899_v15 = vld [vmem:[#allocation5 + $0x68] ss:$24 sps:$4 sm:$0xff]  }
  0x9a   :  { %1969 = vmatpush1.bf16.msra.mxu0 %v4823_v27  ;;  %1927 = vmatprep.subr.bf16.mxu1 %v4824_v28  ;;  %v4904_v16 = vld [vmem:[#allocation5 + $0x694] ss:$24 sps:$4 sm:$0xff]   ;;  %v4902_v18 = vld [vmem:[#allocation5 + $0x690] ss:$24 sps:$4 sm:$0xff]   ;;  %v4910_v20 = vld [vmem:[#allocation5 + $0x6c4] ss:$24 sps:$4 sm:$0xff]  }
  0x9b   :  { %1970 = vmatprep.subr.bf16.mxu0 %v4826_v29  ;;  %v4907_v17 = vld [vmem:[#allocation5 + $0x9c] ss:$24 sps:$4 sm:$0xff]   ;;  %v4905_v19 = vld [vmem:[#allocation5 + $0x98] ss:$24 sps:$4 sm:$0xff]   ;;  %v4913_v21 = vld [vmem:[#allocation5 + $0xcc] ss:$24 sps:$4 sm:$0xff]  }
  0x9c   :  { %v4908_v22 = vld [vmem:[#allocation5 + $0x6c0] ss:$24 sps:$4 sm:$0xff]   ;;  %v4916_v24 = vld [vmem:[#allocation5 + $0x6f4] ss:$24 sps:$4 sm:$0xff]   ;;  %v4914_v26 = vld [vmem:[#allocation5 + $0x6f0] ss:$24 sps:$4 sm:$0xff]  }
  0x9d   :  { %1928 = vmatpush1.bf16.msra.mxu1 %v4828_v30  ;;  %v4911_v23 = vld [vmem:[#allocation5 + $0xc8] ss:$24 sps:$4 sm:$0xff]   ;;  %v4919_v25 = vld [vmem:[#allocation5 + $0xfc] ss:$24 sps:$4 sm:$0xff]   ;;  %v4917_v27 = vld [vmem:[#allocation5 + $0xf8] ss:$24 sps:$4 sm:$0xff]  }
  0x9e   :  { %1971 = vmatpush1.bf16.msra.mxu0 %v4829_v31  ;;  %1929 = vmatprep.subr.bf16.mxu1 %v4830_v32  ;;  %v4922_v28 = vld [vmem:[#allocation5 + $0x724] ss:$24 sps:$4 sm:$0xff]   ;;  %v4920_v30 = vld [vmem:[#allocation5 + $0x720] ss:$24 sps:$4 sm:$0xff]   ;;  %v4928_v32 = vld [vmem:[#allocation5 + $0x754] ss:$24 sps:$4 sm:$0xff]  }
  0x9f   :  { %1972 = vmatprep.subr.bf16.mxu0 %v4832_v33  ;;  %v4925_v29 = vld [vmem:[#allocation5 + $0x12c] ss:$24 sps:$4 sm:$0xff]   ;;  %v4923_v31 = vld [vmem:[#allocation5 + $0x128] ss:$24 sps:$4 sm:$0xff]   ;;  %v4931_v33 = vld [vmem:[#allocation5 + $0x15c] ss:$24 sps:$4 sm:$0xff]  }
  0xa0   :  { %s5766_s6 = smov [#allocation14]  }
  0xa1   :  { %1930 = vmatpush1.bf16.msra.mxu1 %v4834_v34  ;;  %v5919_v34 = vld [vmem:[#allocation2 + $0x14] ss:$24 sps:$4 sm:$0xff]   ;;  %s4128_s3 = sshll.u32 %s5766_s6, 4  ;;  %s4129_s3 = int_to_ptr.vmem [resolvable:$true] %s4128_s3 }
  0xa2   :  { %1973 = vmatpush1.bf16.msra.mxu0 %v4835_v35  ;;  %1931 = vmatprep.subr.bf16.mxu1 %v4836_v36  ;;  %v4926_v35 = vld [vmem:[#allocation5 + $0x750] ss:$24 sps:$4 sm:$0xff]   ;;  %s5721_s27 = scalar_lea.vmem %s4129_s3, 256  ;;  %p5726_p1 = scmp.lt.s32.totalorder %s4129_s3, %s4129_s3 }
  0xa3   :  { %1974 = vmatprep.subr.bf16.mxu0 %v4838_v37  ;;  %v4929_v36 = vld [vmem:[#allocation5 + $0x158] ss:$24 sps:$4 sm:$0xff]   ;;  %v4934_v37 = vld [vmem:[#allocation5 + $0x784] ss:$24 sps:$4 sm:$0xff]   ;;  %p5722_p0 = scmp.ne.s32.totalorder %s4129_s3, %s5721_s27  ;;  %p5727_p2 = scmp.lt.s32.totalorder %s5721_s27, %s5721_s27 }
  0xa5   :  { %1932 = vmatpush1.bf16.msra.mxu1 %v4840_v38  ;;  %v4937_v38 = vld [vmem:[#allocation5 + $0x18c] ss:$24 sps:$4 sm:$0xff]   ;;  %p5728_p3 = por %p5727_p2, %p5726_p1 }
  0xa6   :  { %1975 = vmatpush1.bf16.msra.mxu0 %v4841_v39  ;;  %1933 = vmatprep.subr.bf16.mxu1 %v4842_v40  ;;  %v4932_v39 = vld [vmem:[#allocation5 + $0x780] ss:$24 sps:$4 sm:$0xff]  }
  0xa7   :  { %1976 = vmatprep.subr.bf16.mxu0 %v4844_v41  ;;  %v4935_v40 = vld [vmem:[#allocation5 + $0x188] ss:$24 sps:$4 sm:$0xff]   ;;  %v4940_v41 = vld [vmem:[#allocation5 + $0x7b4] ss:$24 sps:$4 sm:$0xff]   ;;  %p5729_p4 = pnand %p5728_p3, %p5722_p0 }
  0xa9   :  { %1934 = vmatpush1.bf16.msra.mxu1 %v4846_v42  ;;  %v4943_v42 = vld [vmem:[#allocation5 + $0x1bc] ss:$24 sps:$4 sm:$0xff]  }
  0xaa   :  { %1977 = vmatpush1.bf16.msra.mxu0 %v4847_v43  ;;  %1935 = vmatprep.subr.bf16.mxu1 %v4848_v44  ;;  %v4938_v43 = vld [vmem:[#allocation5 + $0x7b0] ss:$24 sps:$4 sm:$0xff]  }
  0xab   :  { %1978 = vmatprep.subr.bf16.mxu0 %v4850_v45  ;;  %v4941_v44 = vld [vmem:[#allocation5 + $0x1b8] ss:$24 sps:$4 sm:$0xff]   ;;  %v4946_v45 = vld [vmem:[#allocation5 + $0x7e4] ss:$24 sps:$4 sm:$0xff]  }
  0xad   :  { %1936 = vmatpush1.bf16.msra.mxu1 %v4852_v46  ;;  %v4949_v46 = vld [vmem:[#allocation5 + $0x1ec] ss:$24 sps:$4 sm:$0xff]  }
  0xae   :  { %1979 = vmatpush1.bf16.msra.mxu0 %v4853_v47  ;;  %1937 = vmatprep.subr.bf16.mxu1 %v4854_v48  ;;  %v4944_v47 = vld [vmem:[#allocation5 + $0x7e0] ss:$24 sps:$4 sm:$0xff]  }
  0xaf   :  { %1980 = vmatprep.subr.bf16.mxu0 %v4856_v51  ;;  %v4947_v48 = vld [vmem:[#allocation5 + $0x1e8] ss:$24 sps:$4 sm:$0xff]   ;;  %v4952_v51 = vld [vmem:[#allocation5 + $0x814] ss:$24 sps:$4 sm:$0xff]  }
  0xb1   :  { %1938 = vmatpush1.bf16.msra.mxu1 %v4858_v52  ;;  %v4955_v52 = vld [vmem:[#allocation5 + $0x21c] ss:$24 sps:$4 sm:$0xff]  }
  0xb2   :  { %1981 = vmatpush1.bf16.msra.mxu0 %v4859_v53  ;;  %1939 = vmatprep.subr.bf16.mxu1 %v4860_v54  ;;  %v4950_v53 = vld [vmem:[#allocation5 + $0x810] ss:$24 sps:$4 sm:$0xff]  }
  0xb3   :  { %1982 = vmatprep.subr.bf16.mxu0 %v4862_v55  ;;  %v4953_v54 = vld [vmem:[#allocation5 + $0x218] ss:$24 sps:$4 sm:$0xff]   ;;  %v4958_v55 = vld [vmem:[#allocation5 + $0x844] ss:$24 sps:$4 sm:$0xff]  }
  0xb5   :  { %1940 = vmatpush1.bf16.msra.mxu1 %v4864_v56  ;;  %v4961_v56 = vld [vmem:[#allocation5 + $0x24c] ss:$24 sps:$4 sm:$0xff]  }
  0xb6   :  { %1983 = vmatpush1.bf16.msra.mxu0 %v4865_v57  ;;  %1941 = vmatprep.subr.bf16.mxu1 %v4866_v58  ;;  %v4956_v57 = vld [vmem:[#allocation5 + $0x840] ss:$24 sps:$4 sm:$0xff]  }
  0xb7   :  { %1984 = vmatprep.subr.bf16.mxu0 %v4868_v59  ;;  %v4959_v58 = vld [vmem:[#allocation5 + $0x248] ss:$24 sps:$4 sm:$0xff]   ;;  %v4964_v59 = vld [vmem:[#allocation5 + $0x874] ss:$24 sps:$4 sm:$0xff]  }
  0xb9   :  { %1942 = vmatpush1.bf16.msra.mxu1 %v4870_v60  ;;  %v4967_v60 = vld [vmem:[#allocation5 + $0x27c] ss:$24 sps:$4 sm:$0xff]  }
  0xba   :  { %1985 = vmatpush1.bf16.msra.mxu0 %v4871_v61  ;;  %1943 = vmatprep.subr.bf16.mxu1 %v4872_v62  ;;  %v4962_v61 = vld [vmem:[#allocation5 + $0x870] ss:$24 sps:$4 sm:$0xff]  }
  0xbb   :  { %1986 = vmatprep.subr.bf16.mxu0 %v4874_v63  ;;  %v4965_v62 = vld [vmem:[#allocation5 + $0x278] ss:$24 sps:$4 sm:$0xff]   ;;  %v4970_v63 = vld [vmem:[#allocation5 + $0x8a4] ss:$24 sps:$4 sm:$0xff]  }
  0xbd   :  { %1944 = vmatpush1.bf16.msra.mxu1 %v4876_v0  ;;  %v4973_v0 = vld [vmem:[#allocation5 + $0x2ac] ss:$24 sps:$4 sm:$0xff]  }
  0xbe   :  { %1987 = vmatpush1.bf16.msra.mxu0 %v4877_v1  ;;  %2042 = vmatprep.subr.bf16.mxu1 %v4888_v3  ;;  %v4968_v1 = vld [vmem:[#allocation5 + $0x8a0] ss:$24 sps:$4 sm:$0xff]   ;;  %v4976_v3 = vld [vmem:[#allocation5 + $0x8d4] ss:$24 sps:$4 sm:$0xff]  }
  0xbf   :  { %1999 = vmatprep.subr.bf16.mxu0 %v4885_v2  ;;  %v4971_v2 = vld [vmem:[#allocation5 + $0x2a8] ss:$24 sps:$4 sm:$0xff]  }
  0xc0   :  { %1946 = vmatmul.mubr.bf16.vlgmr.msra.gmra.mrb[0].mxu1 %v5912_v4 }
  0xc1   :  { %1989 = vmatmul.mubr.bf16.vlgmr.msra.gmra.mrb[0].mxu0 %v5914_v7  ;;  %2043 = vmatpush1.bf16.msra.mxu1 %v4886_v6  ;;  %v4974_v6 = vld [vmem:[#allocation5 + $0x8d0] ss:$24 sps:$4 sm:$0xff]  }
  0xc2   :  { %2000 = vmatpush1.bf16.msra.mxu0 %v4883_v5  ;;  %2044 = vmatprep.subr.bf16.mxu1 %v4895_v9  ;;  %v4979_v5 = vld [vmem:[#allocation5 + $0x2dc] ss:$24 sps:$4 sm:$0xff]   ;;  %v4985_v9 = vld [vmem:[#allocation5 + $0x30c] ss:$24 sps:$4 sm:$0xff]  }
  0xc3   :  { %2001 = vmatprep.subr.bf16.mxu0 %v4892_v8  ;;  %2074 = vmatprep.mubr.bf16.mxu1 %v5906_v49  ;;  %v4977_v8 = vld [vmem:[#allocation5 + $0x2d8] ss:$24 sps:$4 sm:$0xff]  }
  0xc4   :  { %2031 = vmatprep.mubr.bf16.mxu0 %v5919_v34 }
  0xc5   :  { %2045 = vmatpush1.bf16.msra.mxu1 %v4893_v11  ;;  %v5922_v11 = vld [vmem:[#allocation2 + $0x10] ss:$24 sps:$4 sm:$0xff]  }
  0xc6   :  { %2002 = vmatpush1.bf16.msra.mxu0 %v4890_v10  ;;  %2046 = vmatprep.subr.bf16.mxu1 %v4901_v13  ;;  %v4988_v10 = vld [vmem:[#allocation5 + $0x14] ss:$24 sps:$4 sm:$0xff]   ;;  %v4986_v13 = vld [vmem:[#allocation5 + $0x10] ss:$24 sps:$4 sm:$0xff]  }
  0xc7   :  { %2003 = vmatprep.subr.bf16.mxu0 %v4898_v12  ;;  %v4983_v12 = vld [vmem:[#allocation5 + $0x308] ss:$24 sps:$4 sm:$0xff]  }
  0xc9   :  { %2047 = vmatpush1.bf16.msra.mxu1 %v4899_v15  ;;  %v4994_v15 = vld [vmem:[#allocation5 + $0x44] ss:$24 sps:$4 sm:$0xff]  }
  0xca   :  { %2004 = vmatpush1.bf16.msra.mxu0 %v4896_v14  ;;  %2048 = vmatprep.subr.bf16.mxu1 %v4907_v17  ;;  %v4991_v14 = vld [vmem:[#allocation5 + $0x33c] ss:$24 sps:$4 sm:$0xff]   ;;  %v4992_v17 = vld [vmem:[#allocation5 + $0x40] ss:$24 sps:$4 sm:$0xff]  }
  0xcb   :  { %2005 = vmatprep.subr.bf16.mxu0 %v4904_v16  ;;  %v4989_v16 = vld [vmem:[#allocation5 + $0x338] ss:$24 sps:$4 sm:$0xff]  }
  0xcd   :  { %2049 = vmatpush1.bf16.msra.mxu1 %v4905_v19  ;;  %v5000_v19 = vld [vmem:[#allocation5 + $0x74] ss:$24 sps:$4 sm:$0xff]  }
  0xce   :  { %2006 = vmatpush1.bf16.msra.mxu0 %v4902_v18  ;;  %2050 = vmatprep.subr.bf16.mxu1 %v4913_v21  ;;  %v4997_v18 = vld [vmem:[#allocation5 + $0x36c] ss:$24 sps:$4 sm:$0xff]   ;;  %v4998_v21 = vld [vmem:[#allocation5 + $0x70] ss:$24 sps:$4 sm:$0xff]  }
  0xcf   :  { %2007 = vmatprep.subr.bf16.mxu0 %v4910_v20  ;;  %v4995_v20 = vld [vmem:[#allocation5 + $0x368] ss:$24 sps:$4 sm:$0xff]  }
  0xd1   :  { %2051 = vmatpush1.bf16.msra.mxu1 %v4911_v23  ;;  %v5006_v23 = vld [vmem:[#allocation5 + $0xa4] ss:$24 sps:$4 sm:$0xff]  }
  0xd2   :  { %2008 = vmatpush1.bf16.msra.mxu0 %v4908_v22  ;;  %2052 = vmatprep.subr.bf16.mxu1 %v4919_v25  ;;  %v5003_v22 = vld [vmem:[#allocation5 + $0x39c] ss:$24 sps:$4 sm:$0xff]   ;;  %v5004_v25 = vld [vmem:[#allocation5 + $0xa0] ss:$24 sps:$4 sm:$0xff]  }
  0xd3   :  { %2009 = vmatprep.subr.bf16.mxu0 %v4916_v24  ;;  %v5001_v24 = vld [vmem:[#allocation5 + $0x398] ss:$24 sps:$4 sm:$0xff]  }
  0xd5   :  { %2053 = vmatpush1.bf16.msra.mxu1 %v4917_v27  ;;  %v5012_v27 = vld [vmem:[#allocation5 + $0xd4] ss:$24 sps:$4 sm:$0xff]  }
  0xd6   :  { %2010 = vmatpush1.bf16.msra.mxu0 %v4914_v26  ;;  %2054 = vmatprep.subr.bf16.mxu1 %v4925_v29  ;;  %v5009_v26 = vld [vmem:[#allocation5 + $0x3cc] ss:$24 sps:$4 sm:$0xff]  }
  0xd7   :  { %2011 = vmatprep.subr.bf16.mxu0 %v4922_v28  ;;  %v5007_v28 = vld [vmem:[#allocation5 + $0x3c8] ss:$24 sps:$4 sm:$0xff]   ;;  %v5018_v29 = vld [vmem:[#allocation5 + $0x104] ss:$24 sps:$4 sm:$0xff]  }
  0xd9   :  { %2055 = vmatpush1.bf16.msra.mxu1 %v4923_v31  ;;  %v5016_v31 = vld [vmem:[#allocation5 + $0x100] ss:$24 sps:$4 sm:$0xff]  }
  0xda   :  { %2012 = vmatpush1.bf16.msra.mxu0 %v4920_v30  ;;  %2056 = vmatprep.subr.bf16.mxu1 %v4931_v33  ;;  %v5013_v30 = vld [vmem:[#allocation5 + $0x3f8] ss:$24 sps:$4 sm:$0xff]   ;;  %v5024_v33 = vld [vmem:[#allocation5 + $0x134] ss:$24 sps:$4 sm:$0xff]  }
  0xdb   :  { %2013 = vmatprep.subr.bf16.mxu0 %v4928_v32  ;;  %v5021_v32 = vld [vmem:[#allocation5 + $0x42c] ss:$24 sps:$4 sm:$0xff]  }
  0xdd   :  { %2057 = vmatpush1.bf16.msra.mxu1 %v4929_v36  ;;  %v5022_v36 = vld [vmem:[#allocation5 + $0x130] ss:$24 sps:$4 sm:$0xff]  }
  0xde   :  { %2014 = vmatpush1.bf16.msra.mxu0 %v4926_v35  ;;  %2058 = vmatprep.subr.bf16.mxu1 %v4937_v38  ;;  %v5019_v35 = vld [vmem:[#allocation5 + $0x428] ss:$24 sps:$4 sm:$0xff]   ;;  %v5030_v38 = vld [vmem:[#allocation5 + $0x164] ss:$24 sps:$4 sm:$0xff]  }
  0xdf   :  { %2015 = vmatprep.subr.bf16.mxu0 %v4934_v37  ;;  %v5027_v37 = vld [vmem:[#allocation5 + $0x45c] ss:$24 sps:$4 sm:$0xff]  }
  0xe1   :  { %2059 = vmatpush1.bf16.msra.mxu1 %v4935_v40  ;;  %v5028_v40 = vld [vmem:[#allocation5 + $0x160] ss:$24 sps:$4 sm:$0xff]  }
  0xe2   :  { %2016 = vmatpush1.bf16.msra.mxu0 %v4932_v39  ;;  %2060 = vmatprep.subr.bf16.mxu1 %v4943_v42  ;;  %v5025_v39 = vld [vmem:[#allocation5 + $0x458] ss:$24 sps:$4 sm:$0xff]   ;;  %v5036_v42 = vld [vmem:[#allocation5 + $0x194] ss:$24 sps:$4 sm:$0xff]  }
  0xe3   :  { %2017 = vmatprep.subr.bf16.mxu0 %v4940_v41  ;;  %v5033_v41 = vld [vmem:[#allocation5 + $0x48c] ss:$24 sps:$4 sm:$0xff]  }
  0xe5   :  { %2061 = vmatpush1.bf16.msra.mxu1 %v4941_v44  ;;  %v5034_v44 = vld [vmem:[#allocation5 + $0x190] ss:$24 sps:$4 sm:$0xff]  }
  0xe6   :  { %2018 = vmatpush1.bf16.msra.mxu0 %v4938_v43  ;;  %2062 = vmatprep.subr.bf16.mxu1 %v4949_v46  ;;  %v5031_v43 = vld [vmem:[#allocation5 + $0x488] ss:$24 sps:$4 sm:$0xff]   ;;  %v5042_v46 = vld [vmem:[#allocation5 + $0x1c4] ss:$24 sps:$4 sm:$0xff]  }
  0xe7   :  { %2019 = vmatprep.subr.bf16.mxu0 %v4946_v45  ;;  %v5039_v45 = vld [vmem:[#allocation5 + $0x4bc] ss:$24 sps:$4 sm:$0xff]  }
  0xe9   :  { %2063 = vmatpush1.bf16.msra.mxu1 %v4947_v48  ;;  %v5040_v48 = vld [vmem:[#allocation5 + $0x1c0] ss:$24 sps:$4 sm:$0xff]  }
  0xea   :  { %2020 = vmatpush1.bf16.msra.mxu0 %v4944_v47  ;;  %2064 = vmatprep.subr.bf16.mxu1 %v4955_v52  ;;  %v5037_v47 = vld [vmem:[#allocation5 + $0x4b8] ss:$24 sps:$4 sm:$0xff]   ;;  %v5048_v52 = vld [vmem:[#allocation5 + $0x1f4] ss:$24 sps:$4 sm:$0xff]  }
  0xeb   :  { %2021 = vmatprep.subr.bf16.mxu0 %v4952_v51  ;;  %v5045_v51 = vld [vmem:[#allocation5 + $0x4ec] ss:$24 sps:$4 sm:$0xff]  }
  0xed   :  { %2065 = vmatpush1.bf16.msra.mxu1 %v4953_v54  ;;  %v5046_v54 = vld [vmem:[#allocation5 + $0x1f0] ss:$24 sps:$4 sm:$0xff]  }
  0xee   :  { %2022 = vmatpush1.bf16.msra.mxu0 %v4950_v53  ;;  %2066 = vmatprep.subr.bf16.mxu1 %v4961_v56  ;;  %v5043_v53 = vld [vmem:[#allocation5 + $0x4e8] ss:$24 sps:$4 sm:$0xff]   ;;  %v5054_v56 = vld [vmem:[#allocation5 + $0x224] ss:$24 sps:$4 sm:$0xff]  }
  0xef   :  { %2023 = vmatprep.subr.bf16.mxu0 %v4958_v55  ;;  %v5051_v55 = vld [vmem:[#allocation5 + $0x51c] ss:$24 sps:$4 sm:$0xff]  }
  0xf1   :  { %2067 = vmatpush1.bf16.msra.mxu1 %v4959_v58  ;;  %v5052_v58 = vld [vmem:[#allocation5 + $0x220] ss:$24 sps:$4 sm:$0xff]  }
  0xf2   :  { %2024 = vmatpush1.bf16.msra.mxu0 %v4956_v57  ;;  %2068 = vmatprep.subr.bf16.mxu1 %v4967_v60  ;;  %v5049_v57 = vld [vmem:[#allocation5 + $0x518] ss:$24 sps:$4 sm:$0xff]   ;;  %v5060_v60 = vld [vmem:[#allocation5 + $0x254] ss:$24 sps:$4 sm:$0xff]  }
  0xf3   :  { %2025 = vmatprep.subr.bf16.mxu0 %v4964_v59  ;;  %v5057_v59 = vld [vmem:[#allocation5 + $0x54c] ss:$24 sps:$4 sm:$0xff]  }
  0xf5   :  { %2069 = vmatpush1.bf16.msra.mxu1 %v4965_v62  ;;  %v5058_v62 = vld [vmem:[#allocation5 + $0x250] ss:$24 sps:$4 sm:$0xff]  }
  0xf6   :  { %2026 = vmatpush1.bf16.msra.mxu0 %v4962_v61  ;;  %2070 = vmatprep.subr.bf16.mxu1 %v4973_v0  ;;  %v5055_v61 = vld [vmem:[#allocation5 + $0x548] ss:$24 sps:$4 sm:$0xff]   ;;  %v5066_v0 = vld [vmem:[#allocation5 + $0x284] ss:$24 sps:$4 sm:$0xff]  }
  0xf7   :  { %2027 = vmatprep.subr.bf16.mxu0 %v4970_v63  ;;  %v5063_v63 = vld [vmem:[#allocation5 + $0x57c] ss:$24 sps:$4 sm:$0xff]  }
  0xf9   :  { %2071 = vmatpush1.bf16.msra.mxu1 %v4971_v2  ;;  %v5064_v2 = vld [vmem:[#allocation5 + $0x280] ss:$24 sps:$4 sm:$0xff]  }
  0xfa   :  { %2028 = vmatpush1.bf16.msra.mxu0 %v4968_v1  ;;  %2072 = vmatprep.subr.bf16.mxu1 %v4979_v5  ;;  %v5061_v1 = vld [vmem:[#allocation5 + $0x578] ss:$24 sps:$4 sm:$0xff]   ;;  %v5072_v5 = vld [vmem:[#allocation5 + $0x2b4] ss:$24 sps:$4 sm:$0xff]  }
  0xfb   :  { %2029 = vmatprep.subr.bf16.mxu0 %v4976_v3  ;;  %v5069_v3 = vld [vmem:[#allocation5 + $0x5ac] ss:$24 sps:$4 sm:$0xff]  }
  0xfd   :  { %2073 = vmatpush1.bf16.msra.mxu1 %v4977_v8  ;;  %v5070_v8 = vld [vmem:[#allocation5 + $0x2b0] ss:$24 sps:$4 sm:$0xff]  }
  0xfe   :  { %2030 = vmatpush1.bf16.msra.mxu0 %v4974_v6  ;;  %2085 = vmatprep.subr.bf16.mxu1 %v4985_v9  ;;  %v5067_v6 = vld [vmem:[#allocation5 + $0x5a8] ss:$24 sps:$4 sm:$0xff]   ;;  %v5075_v9 = vld [vmem:[#allocation5 + $0x5dc] ss:$24 sps:$4 sm:$0xff]  }
  0xff   :  { %2171 = vmatprep.subr.bf16.mxu0 %v4988_v10  ;;  %v5078_v10 = vld [vmem:[#allocation5 + $0x2e4] ss:$24 sps:$4 sm:$0xff]  }
 0x100   :  { %2075 = vmatmul.mubr.bf16.vlgmr.msra.gmra.mrb[4].mxu1 %v5912_v4 }
 0x101   :  { %2032 = vmatmul.mubr.bf16.vlgmr.msra.gmra.mrb[0].mxu0 %v5922_v11  ;;  %2086 = vmatpush1.bf16.msra.mxu1 %v4983_v12  ;;  %v5073_v12 = vld [vmem:[#allocation5 + $0x5d8] ss:$24 sps:$4 sm:$0xff]  }
 0x102   :  { %2172 = vmatpush1.bf16.msra.mxu0 %v4986_v13  ;;  %2087 = vmatprep.subr.bf16.mxu1 %v4991_v14  ;;  %v5076_v13 = vld [vmem:[#allocation5 + $0x2e0] ss:$24 sps:$4 sm:$0xff]   ;;  %v5081_v14 = vld [vmem:[#allocation5 + $0x60c] ss:$24 sps:$4 sm:$0xff]  }
 0x103   :  { %2173 = vmatprep.subr.bf16.mxu0 %v4994_v15  ;;  %2117 = vmatprep.mubr.bf16.mxu1 %v5908_v50  ;;  %v5010_v50 = vld [vmem:[#allocation5 + $0xd0] ss:$24 sps:$4 sm:$0xff]   ;;  %v5084_v15 = vld [vmem:[#allocation5 + $0x314] ss:$24 sps:$4 sm:$0xff]  }
 0x104   :  { %2203 = vmatprep.mubr.bf16.mxu0 %v5906_v49  ;;  %v5015_v49 = vld [vmem:[#allocation5 + $0x3fc] ss:$24 sps:$4 sm:$0xff]  }
 0x105   :  { %2088 = vmatpush1.bf16.msra.mxu1 %v4989_v16  ;;  %v5079_v16 = vld [vmem:[#allocation5 + $0x608] ss:$24 sps:$4 sm:$0xff]  }
 0x106   :  { %2174 = vmatpush1.bf16.msra.mxu0 %v4992_v17  ;;  %2089 = vmatprep.subr.bf16.mxu1 %v4997_v18  ;;  %v5082_v17 = vld [vmem:[#allocation5 + $0x310] ss:$24 sps:$4 sm:$0xff]   ;;  %v5087_v18 = vld [vmem:[#allocation5 + $0x63c] ss:$24 sps:$4 sm:$0xff]  }
 0x107   :  { %2175 = vmatprep.subr.bf16.mxu0 %v5000_v19  ;;  %v5090_v19 = vld [vmem:[#allocation5 + $0x344] ss:$24 sps:$4 sm:$0xff]  }
 0x109   :  { %2090 = vmatpush1.bf16.msra.mxu1 %v4995_v20  ;;  %v5085_v20 = vld [vmem:[#allocation5 + $0x638] ss:$24 sps:$4 sm:$0xff]  }
 0x10a   :  { %2176 = vmatpush1.bf16.msra.mxu0 %v4998_v21  ;;  %2091 = vmatprep.subr.bf16.mxu1 %v5003_v22  ;;  %v5088_v21 = vld [vmem:[#allocation5 + $0x340] ss:$24 sps:$4 sm:$0xff]   ;;  %v5093_v22 = vld [vmem:[#allocation5 + $0x66c] ss:$24 sps:$4 sm:$0xff]  }
 0x10b   :  { %2177 = vmatprep.subr.bf16.mxu0 %v5006_v23  ;;  %v5096_v23 = vld [vmem:[#allocation5 + $0x374] ss:$24 sps:$4 sm:$0xff]  }
 0x10d   :  { %2092 = vmatpush1.bf16.msra.mxu1 %v5001_v24  ;;  %v5563_v24 = vld [vmem:[#allocation2 + $0xc] ss:$24 sps:$4 sm:$0xff]  }
 0x10e   :  { %2178 = vmatpush1.bf16.msra.mxu0 %v5004_v25  ;;  %2093 = vmatprep.subr.bf16.mxu1 %v5009_v26  ;;  %v5091_v25 = vld [vmem:[#allocation5 + $0x668] ss:$24 sps:$4 sm:$0xff]  }
 0x10f   :  { %2179 = vmatprep.subr.bf16.mxu0 %v5012_v27  ;;  %v5094_v26 = vld [vmem:[#allocation5 + $0x370] ss:$24 sps:$4 sm:$0xff]  }
 0x110   :  { %v5097_v27 = vld [vmem:[#allocation5 + $0x698] ss:$24 sps:$4 sm:$0xff]  }
 0x111   :  { %2094 = vmatpush1.bf16.msra.mxu1 %v5007_v28  ;;  %v5100_v28 = vld [vmem:[#allocation5 + $0x3a0] ss:$24 sps:$4 sm:$0xff]  }
 0x112   :  { %2180 = vmatpush1.bf16.msra.mxu0 %v5010_v50  ;;  %2095 = vmatprep.subr.bf16.mxu1 %v5015_v49  ;;  %v5105_v50 = vld [vmem:[#allocation5 + $0x6cc] ss:$24 sps:$4 sm:$0xff]  }
 0x113   :  { %2181 = vmatprep.subr.bf16.mxu0 %v5018_v29  ;;  %v5108_v49 = vld [vmem:[#allocation5 + $0x3d4] ss:$24 sps:$4 sm:$0xff]   ;;  %v5103_v29 = vld [vmem:[#allocation5 + $0x6c8] ss:$24 sps:$4 sm:$0xff]  }
 0x115   :  { %2096 = vmatpush1.bf16.msra.mxu1 %v5013_v30  ;;  %v5111_v30 = vld [vmem:[#allocation5 + $0x6fc] ss:$24 sps:$4 sm:$0xff]  }
 0x116   :  { %2182 = vmatpush1.bf16.msra.mxu0 %v5016_v31  ;;  %2097 = vmatprep.subr.bf16.mxu1 %v5021_v32  ;;  %v5114_v31 = vld [vmem:[#allocation5 + $0x404] ss:$24 sps:$4 sm:$0xff]   ;;  %v5109_v32 = vld [vmem:[#allocation5 + $0x6f8] ss:$24 sps:$4 sm:$0xff]  }
 0x117   :  { %2183 = vmatprep.subr.bf16.mxu0 %v5024_v33  ;;  %v5112_v33 = vld [vmem:[#allocation5 + $0x400] ss:$24 sps:$4 sm:$0xff]  }
 0x119   :  { %2098 = vmatpush1.bf16.msra.mxu1 %v5019_v35  ;;  %v5117_v35 = vld [vmem:[#allocation5 + $0x72c] ss:$24 sps:$4 sm:$0xff]  }
 0x11a   :  { %2184 = vmatpush1.bf16.msra.mxu0 %v5022_v36  ;;  %2099 = vmatprep.subr.bf16.mxu1 %v5027_v37  ;;  %v5120_v36 = vld [vmem:[#allocation5 + $0x434] ss:$24 sps:$4 sm:$0xff]   ;;  %v5115_v37 = vld [vmem:[#allocation5 + $0x728] ss:$24 sps:$4 sm:$0xff]  }
 0x11b   :  { %2185 = vmatprep.subr.bf16.mxu0 %v5030_v38  ;;  %v5118_v38 = vld [vmem:[#allocation5 + $0x430] ss:$24 sps:$4 sm:$0xff]  }
 0x11d   :  { %2100 = vmatpush1.bf16.msra.mxu1 %v5025_v39  ;;  %v5123_v39 = vld [vmem:[#allocation5 + $0x75c] ss:$24 sps:$4 sm:$0xff]  }
 0x11e   :  { %2186 = vmatpush1.bf16.msra.mxu0 %v5028_v40  ;;  %2101 = vmatprep.subr.bf16.mxu1 %v5033_v41  ;;  %v5126_v40 = vld [vmem:[#allocation5 + $0x464] ss:$24 sps:$4 sm:$0xff]   ;;  %v5121_v41 = vld [vmem:[#allocation5 + $0x758] ss:$24 sps:$4 sm:$0xff]  }
 0x11f   :  { %2187 = vmatprep.subr.bf16.mxu0 %v5036_v42  ;;  %v5124_v42 = vld [vmem:[#allocation5 + $0x460] ss:$24 sps:$4 sm:$0xff]  }
 0x121   :  { %2102 = vmatpush1.bf16.msra.mxu1 %v5031_v43  ;;  %v5129_v43 = vld [vmem:[#allocation5 + $0x78c] ss:$24 sps:$4 sm:$0xff]  }
 0x122   :  { %2188 = vmatpush1.bf16.msra.mxu0 %v5034_v44  ;;  %2103 = vmatprep.subr.bf16.mxu1 %v5039_v45  ;;  %v5132_v44 = vld [vmem:[#allocation5 + $0x494] ss:$24 sps:$4 sm:$0xff]   ;;  %v5127_v45 = vld [vmem:[#allocation5 + $0x788] ss:$24 sps:$4 sm:$0xff]  }
 0x123   :  { %2189 = vmatprep.subr.bf16.mxu0 %v5042_v46  ;;  %v5130_v46 = vld [vmem:[#allocation5 + $0x490] ss:$24 sps:$4 sm:$0xff]  }
 0x125   :  { %2104 = vmatpush1.bf16.msra.mxu1 %v5037_v47  ;;  %v5135_v47 = vld [vmem:[#allocation5 + $0x7bc] ss:$24 sps:$4 sm:$0xff]  }
 0x126   :  { %2190 = vmatpush1.bf16.msra.mxu0 %v5040_v48  ;;  %2105 = vmatprep.subr.bf16.mxu1 %v5045_v51  ;;  %v5138_v48 = vld [vmem:[#allocation5 + $0x4c4] ss:$24 sps:$4 sm:$0xff]   ;;  %v5133_v51 = vld [vmem:[#allocation5 + $0x7b8] ss:$24 sps:$4 sm:$0xff]  }
 0x127   :  { %2191 = vmatprep.subr.bf16.mxu0 %v5048_v52  ;;  %v5136_v52 = vld [vmem:[#allocation5 + $0x4c0] ss:$24 sps:$4 sm:$0xff]  }
 0x129   :  { %2106 = vmatpush1.bf16.msra.mxu1 %v5043_v53  ;;  %v5141_v53 = vld [vmem:[#allocation5 + $0x7ec] ss:$24 sps:$4 sm:$0xff]  }
 0x12a   :  { %2192 = vmatpush1.bf16.msra.mxu0 %v5046_v54  ;;  %2107 = vmatprep.subr.bf16.mxu1 %v5051_v55  ;;  %v5144_v54 = vld [vmem:[#allocation5 + $0x4f4] ss:$24 sps:$4 sm:$0xff]   ;;  %v5139_v55 = vld [vmem:[#allocation5 + $0x7e8] ss:$24 sps:$4 sm:$0xff]  }
 0x12b   :  { %2193 = vmatprep.subr.bf16.mxu0 %v5054_v56  ;;  %v5142_v56 = vld [vmem:[#allocation5 + $0x4f0] ss:$24 sps:$4 sm:$0xff]  }
 0x12d   :  { %2108 = vmatpush1.bf16.msra.mxu1 %v5049_v57  ;;  %v5147_v57 = vld [vmem:[#allocation5 + $0x81c] ss:$24 sps:$4 sm:$0xff]  }
 0x12e   :  { %2194 = vmatpush1.bf16.msra.mxu0 %v5052_v58  ;;  %2109 = vmatprep.subr.bf16.mxu1 %v5057_v59  ;;  %v5150_v58 = vld [vmem:[#allocation5 + $0x524] ss:$24 sps:$4 sm:$0xff]   ;;  %v5145_v59 = vld [vmem:[#allocation5 + $0x818] ss:$24 sps:$4 sm:$0xff]  }
 0x12f   :  { %2195 = vmatprep.subr.bf16.mxu0 %v5060_v60  ;;  %v5148_v60 = vld [vmem:[#allocation5 + $0x520] ss:$24 sps:$4 sm:$0xff]  }
 0x131   :  { %2110 = vmatpush1.bf16.msra.mxu1 %v5055_v61  ;;  %v5153_v61 = vld [vmem:[#allocation5 + $0x84c] ss:$24 sps:$4 sm:$0xff]  }
 0x132   :  { %2196 = vmatpush1.bf16.msra.mxu0 %v5058_v62  ;;  %2111 = vmatprep.subr.bf16.mxu1 %v5063_v63  ;;  %v5156_v62 = vld [vmem:[#allocation5 + $0x554] ss:$24 sps:$4 sm:$0xff]   ;;  %v5151_v63 = vld [vmem:[#allocation5 + $0x848] ss:$24 sps:$4 sm:$0xff]  }
 0x133   :  { %2197 = vmatprep.subr.bf16.mxu0 %v5066_v0  ;;  %v5154_v0 = vld [vmem:[#allocation5 + $0x550] ss:$24 sps:$4 sm:$0xff]  }
 0x135   :  { %2112 = vmatpush1.bf16.msra.mxu1 %v5061_v1  ;;  %v5159_v1 = vld [vmem:[#allocation5 + $0x87c] ss:$24 sps:$4 sm:$0xff]  }
 0x136   :  { %2198 = vmatpush1.bf16.msra.mxu0 %v5064_v2  ;;  %2113 = vmatprep.subr.bf16.mxu1 %v5069_v3  ;;  %v5162_v2 = vld [vmem:[#allocation5 + $0x584] ss:$24 sps:$4 sm:$0xff]   ;;  %v5157_v3 = vld [vmem:[#allocation5 + $0x878] ss:$24 sps:$4 sm:$0xff]  }
 0x137   :  { %2199 = vmatprep.subr.bf16.mxu0 %v5072_v5  ;;  %v5160_v5 = vld [vmem:[#allocation5 + $0x580] ss:$24 sps:$4 sm:$0xff]  }
 0x139   :  { %2114 = vmatpush1.bf16.msra.mxu1 %v5067_v6  ;;  %v5165_v6 = vld [vmem:[#allocation5 + $0x8ac] ss:$24 sps:$4 sm:$0xff]  }
 0x13a   :  { %2200 = vmatpush1.bf16.msra.mxu0 %v5070_v8  ;;  %2115 = vmatprep.subr.bf16.mxu1 %v5075_v9  ;;  %v5168_v8 = vld [vmem:[#allocation5 + $0x5b4] ss:$24 sps:$4 sm:$0xff]   ;;  %v5163_v9 = vld [vmem:[#allocation5 + $0x8a8] ss:$24 sps:$4 sm:$0xff]  }
 0x13b   :  { %2201 = vmatprep.subr.bf16.mxu0 %v5078_v10  ;;  %v5166_v10 = vld [vmem:[#allocation5 + $0x5b0] ss:$24 sps:$4 sm:$0xff]  }
 0x13d   :  { %2116 = vmatpush1.bf16.msra.mxu1 %v5073_v12  ;;  %v5171_v12 = vld [vmem:[#allocation5 + $0x8dc] ss:$24 sps:$4 sm:$0xff]  }
 0x13e   :  { %2202 = vmatpush1.bf16.msra.mxu0 %v5076_v13  ;;  %2128 = vmatprep.subr.bf16.mxu1 %v5081_v14  ;;  %v5174_v13 = vld [vmem:[#allocation5 + $0x5e4] ss:$24 sps:$4 sm:$0xff]   ;;  %v5169_v14 = vld [vmem:[#allocation5 + $0x8d8] ss:$24 sps:$4 sm:$0xff]  }
 0x13f   :  { %2214 = vmatprep.subr.bf16.mxu0 %v5084_v15  ;;  %v5172_v15 = vld [vmem:[#allocation5 + $0x5e0] ss:$24 sps:$4 sm:$0xff]  }
 0x140   :  { %2118 = vmatmul.mubr.bf16.vlgmr.msra.gmra.mrb[4].mxu1 %v5914_v7  ;;  %v5099_v7 = vld [vmem:[#allocation5 + $0x69c] ss:$24 sps:$4 sm:$0xff]  }
 0x141   :  { %2204 = vmatmul.mubr.bf16.vlgmr.msra.gmra.mrb[4].mxu0 %v5912_v4  ;;  %2129 = vmatpush1.bf16.msra.mxu1 %v5079_v16  ;;  %v5102_v4 = vld [vmem:[#allocation5 + $0x3a4] ss:$24 sps:$4 sm:$0xff]   ;;  %v5177_v16 = vld [vmem:[#allocation5 + $0x614] ss:$24 sps:$4 sm:$0xff]  }
 0x142   :  { %2215 = vmatpush1.bf16.msra.mxu0 %v5082_v17  ;;  %2130 = vmatprep.subr.bf16.mxu1 %v5087_v18  ;;  %v5210_v17 = vld [vmem:[#allocation8 + $0x4] ss:$16 sps:$4 sm:$0xff]  }
 0x143   :  { %2216 = vmatprep.subr.bf16.mxu0 %v5090_v19  ;;  %2160 = vmatprep.mubr.bf16.mxu1 %v5919_v34  ;;  %v5106_v34 = vld [vmem:[#allocation5 + $0x3d0] ss:$24 sps:$4 sm:$0xff]  }
 0x144   :  { %2246 = vmatprep.mubr.bf16.mxu0 %v5563_v24  ;;  %v5175_v18 = vld [vmem:[#allocation5 + $0x610] ss:$24 sps:$4 sm:$0xff]  }
 0x145   :  { %2131 = vmatpush1.bf16.msra.mxu1 %v5085_v20  ;;  %v5208_v19 = vld [vmem:[#allocation8] ss:$16 sps:$4 sm:$0xff]  }
 0x146   :  { %2217 = vmatpush1.bf16.msra.mxu0 %v5088_v21  ;;  %2132 = vmatprep.subr.bf16.mxu1 %v5093_v22  ;;  %v5180_v20 = vld [vmem:[#allocation5 + $0x644] ss:$24 sps:$4 sm:$0xff]   ;;  %v5564_v22 = vld [vmem:[#allocation2 + $0x8] ss:$24 sps:$4 sm:$0xff]  }
 0x147   :  { %2218 = vmatprep.subr.bf16.mxu0 %v5096_v23  ;;  %v5216_v21 = vld [vmem:[#allocation8 + $0x24] ss:$16 sps:$4 sm:$0xff]   ;;  %v5214_v24 = vld [vmem:[#allocation8 + $0x20] ss:$16 sps:$4 sm:$0xff]  }
 0x148   :  { %v5178_v23 = vld [vmem:[#allocation5 + $0x640] ss:$24 sps:$4 sm:$0xff]  }
 0x149   :  { %2133 = vmatpush1.bf16.msra.mxu1 %v5091_v25  ;;  %v5183_v25 = vld [vmem:[#allocation5 + $0x674] ss:$24 sps:$4 sm:$0xff]  }
 0x14a   :  { %2219 = vmatpush1.bf16.msra.mxu0 %v5094_v26  ;;  %2134 = vmatprep.subr.bf16.mxu1 %v5099_v7  ;;  %v5222_v26 = vld [vmem:[#allocation8 + $0x44] ss:$16 sps:$4 sm:$0xff]  }
 0x14b   :  { %2220 = vmatprep.subr.bf16.mxu0 %v5102_v4  ;;  %v5565_v7 = vld [vmem:[#allocation2 + $0x14] ss:$24 sps:$4 sm:$0xff]   ;;  %v5181_v4 = vld [vmem:[#allocation5 + $0x670] ss:$24 sps:$4 sm:$0xff]  }
 0x14d   :  { %2135 = vmatpush1.bf16.msra.mxu1 %v5097_v27  ;;  %v5186_v27 = vld [vmem:[#allocation5 + $0x6a4] ss:$24 sps:$4 sm:$0xff]  }
 0x14e   :  { %2221 = vmatpush1.bf16.msra.mxu0 %v5100_v28  ;;  %2136 = vmatprep.subr.bf16.mxu1 %v5105_v50  ;;  %v5220_v28 = vld [vmem:[#allocation8 + $0x40] ss:$16 sps:$4 sm:$0xff]  }
 0x14f   :  { %2222 = vmatprep.subr.bf16.mxu0 %v5108_v49  ;;  %v5184_v50 = vld [vmem:[#allocation5 + $0x6a0] ss:$24 sps:$4 sm:$0xff]   ;;  %v5189_v49 = vld [vmem:[#allocation5 + $0x6d4] ss:$24 sps:$4 sm:$0xff]  }
 0x151   :  { %2137 = vmatpush1.bf16.msra.mxu1 %v5103_v29  ;;  %v5226_v29 = vld [vmem:[#allocation8 + $0x60] ss:$16 sps:$4 sm:$0xff]  }
 0x152   :  { %2223 = vmatpush1.bf16.msra.mxu0 %v5106_v34  ;;  %2138 = vmatprep.subr.bf16.mxu1 %v5111_v30  ;;  %v5234_v34 = vld [vmem:[#allocation8 + $0x84] ss:$16 sps:$4 sm:$0xff]  }
 0x153   :  { %2224 = vmatprep.subr.bf16.mxu0 %v5114_v31  ;;  %v5187_v30 = vld [vmem:[#allocation5 + $0x6d0] ss:$24 sps:$4 sm:$0xff]   ;;  %v5192_v31 = vld [vmem:[#allocation5 + $0x704] ss:$24 sps:$4 sm:$0xff]  }
 0x155   :  { %2139 = vmatpush1.bf16.msra.mxu1 %v5109_v32  ;;  %v5232_v32 = vld [vmem:[#allocation8 + $0x80] ss:$16 sps:$4 sm:$0xff]  }
 0x156   :  { %2225 = vmatpush1.bf16.msra.mxu0 %v5112_v33  ;;  %2140 = vmatprep.subr.bf16.mxu1 %v5117_v35  ;;  %v5240_v33 = vld [vmem:[#allocation8 + $0xa4] ss:$16 sps:$4 sm:$0xff]  }
 0x157   :  { %2226 = vmatprep.subr.bf16.mxu0 %v5120_v36  ;;  %v5190_v35 = vld [vmem:[#allocation5 + $0x700] ss:$24 sps:$4 sm:$0xff]   ;;  %v5195_v36 = vld [vmem:[#allocation5 + $0x734] ss:$24 sps:$4 sm:$0xff]  }
 0x159   :  { %2141 = vmatpush1.bf16.msra.mxu1 %v5115_v37  ;;  %v5238_v37 = vld [vmem:[#allocation8 + $0xa0] ss:$16 sps:$4 sm:$0xff]  }
 0x15a   :  { %2227 = vmatpush1.bf16.msra.mxu0 %v5118_v38  ;;  %2142 = vmatprep.subr.bf16.mxu1 %v5123_v39  ;;  %v5243_v38 = vld [vmem:[#allocation8 + $0xc4] ss:$16 sps:$4 sm:$0xff]  }
 0x15b   :  { %2228 = vmatprep.subr.bf16.mxu0 %v5126_v40 }
 0x15d   :  { %2143 = vmatpush1.bf16.msra.mxu1 %v5121_v41 }
 0x15e   :  { %2229 = vmatpush1.bf16.msra.mxu0 %v5124_v42  ;;  %2144 = vmatprep.subr.bf16.mxu1 %v5129_v43  ;;  %v5193_v42 = vld [vmem:[#allocation5 + $0x730] ss:$24 sps:$4 sm:$0xff]  }
 0x15f   :  { %2230 = vmatprep.subr.bf16.mxu0 %v5132_v44  ;;  %v5241_v43 = vld [vmem:[#allocation8 + $0xc0] ss:$16 sps:$4 sm:$0xff]  }
 0x161   :  { %2145 = vmatpush1.bf16.msra.mxu1 %v5127_v45  ;;  %v5198_v45 = vld [vmem:[#allocation5 + $0x764] ss:$24 sps:$4 sm:$0xff]  }
 0x162   :  { %2231 = vmatpush1.bf16.msra.mxu0 %v5130_v46  ;;  %2146 = vmatprep.subr.bf16.mxu1 %v5135_v47  ;;  %v5249_v46 = vld [vmem:[#allocation8 + $0xe4] ss:$16 sps:$4 sm:$0xff]  }
 0x163   :  { %2232 = vmatprep.subr.bf16.mxu0 %v5138_v48  ;;  %v5196_v47 = vld [vmem:[#allocation5 + $0x760] ss:$24 sps:$4 sm:$0xff]   ;;  %v5201_v48 = vld [vmem:[#allocation5 + $0x794] ss:$24 sps:$4 sm:$0xff]  }
 0x165   :  { %2147 = vmatpush1.bf16.msra.mxu1 %v5133_v51  ;;  %v5247_v51 = vld [vmem:[#allocation8 + $0xe0] ss:$16 sps:$4 sm:$0xff]  }
 0x166   :  { %2233 = vmatpush1.bf16.msra.mxu0 %v5136_v52  ;;  %2148 = vmatprep.subr.bf16.mxu1 %v5141_v53  ;;  %v5255_v52 = vld [vmem:[#allocation8 + $0x104] ss:$16 sps:$4 sm:$0xff]  }
 0x167   :  { %2234 = vmatprep.subr.bf16.mxu0 %v5144_v54  ;;  %v5199_v53 = vld [vmem:[#allocation5 + $0x790] ss:$24 sps:$4 sm:$0xff]   ;;  %v5204_v54 = vld [vmem:[#allocation5 + $0x7c4] ss:$24 sps:$4 sm:$0xff]  }
 0x169   :  { %2149 = vmatpush1.bf16.msra.mxu1 %v5139_v55  ;;  %v5253_v55 = vld [vmem:[#allocation8 + $0x100] ss:$16 sps:$4 sm:$0xff]  }
 0x16a   :  { %2235 = vmatpush1.bf16.msra.mxu0 %v5142_v56  ;;  %2150 = vmatprep.subr.bf16.mxu1 %v5147_v57  ;;  %v5261_v56 = vld [vmem:[#allocation8 + $0x124] ss:$16 sps:$4 sm:$0xff]  }
 0x16b   :  { %2236 = vmatprep.subr.bf16.mxu0 %v5150_v58  ;;  %v5202_v57 = vld [vmem:[#allocation5 + $0x7c0] ss:$24 sps:$4 sm:$0xff]   ;;  %v5207_v58 = vld [vmem:[#allocation5 + $0x7f4] ss:$24 sps:$4 sm:$0xff]  }
 0x16d   :  { %2151 = vmatpush1.bf16.msra.mxu1 %v5145_v59  ;;  %v5259_v59 = vld [vmem:[#allocation8 + $0x120] ss:$16 sps:$4 sm:$0xff]  }
 0x16e   :  { %2237 = vmatpush1.bf16.msra.mxu0 %v5148_v60  ;;  %2152 = vmatprep.subr.bf16.mxu1 %v5153_v61  ;;  %v5267_v60 = vld [vmem:[#allocation8 + $0x144] ss:$16 sps:$4 sm:$0xff]  }
 0x16f   :  { %2238 = vmatprep.subr.bf16.mxu0 %v5156_v62  ;;  %v5205_v61 = vld [vmem:[#allocation5 + $0x7f0] ss:$24 sps:$4 sm:$0xff]   ;;  %v5213_v62 = vld [vmem:[#allocation5 + $0x824] ss:$24 sps:$4 sm:$0xff]  }
 0x171   :  { %2153 = vmatpush1.bf16.msra.mxu1 %v5151_v63  ;;  %v5265_v63 = vld [vmem:[#allocation8 + $0x140] ss:$16 sps:$4 sm:$0xff]  }
 0x172   :  { %2239 = vmatpush1.bf16.msra.mxu0 %v5154_v0  ;;  %2154 = vmatprep.subr.bf16.mxu1 %v5159_v1  ;;  %v5273_v0 = vld [vmem:[#allocation8 + $0x164] ss:$16 sps:$4 sm:$0xff]  }
 0x173   :  { %2240 = vmatprep.subr.bf16.mxu0 %v5162_v2  ;;  %v5211_v1 = vld [vmem:[#allocation5 + $0x820] ss:$24 sps:$4 sm:$0xff]  }
 0x174   :  { %v5271_v2 = vld [vmem:[#allocation8 + $0x160] ss:$16 sps:$4 sm:$0xff]  }
 0x175   :  { %2155 = vmatpush1.bf16.msra.mxu1 %v5157_v3  ;;  %v5219_v3 = vld [vmem:[#allocation5 + $0x854] ss:$24 sps:$4 sm:$0xff]  }
 0x176   :  { %2241 = vmatpush1.bf16.msra.mxu0 %v5160_v5  ;;  %2156 = vmatprep.subr.bf16.mxu1 %v5165_v6  ;;  %v5279_v5 = vld [vmem:[#allocation8 + $0x184] ss:$16 sps:$4 sm:$0xff]  }
 0x177   :  { %2242 = vmatprep.subr.bf16.mxu0 %v5168_v8  ;;  %v5217_v6 = vld [vmem:[#allocation5 + $0x850] ss:$24 sps:$4 sm:$0xff]  }
 0x178   :  { %v5277_v8 = vld [vmem:[#allocation8 + $0x180] ss:$16 sps:$4 sm:$0xff]  }
 0x179   :  { %2157 = vmatpush1.bf16.msra.mxu1 %v5163_v9  ;;  %v5225_v9 = vld [vmem:[#allocation5 + $0x884] ss:$24 sps:$4 sm:$0xff]  }
 0x17a   :  { %2243 = vmatpush1.bf16.msra.mxu0 %v5166_v10  ;;  %2158 = vmatprep.subr.bf16.mxu1 %v5171_v12  ;;  %v5285_v10 = vld [vmem:[#allocation8 + $0x1a4] ss:$16 sps:$4 sm:$0xff]  }
 0x17b   :  { %2244 = vmatprep.subr.bf16.mxu0 %v5174_v13  ;;  %v5223_v12 = vld [vmem:[#allocation5 + $0x880] ss:$24 sps:$4 sm:$0xff]  }
 0x17c   :  { %v5283_v13 = vld [vmem:[#allocation8 + $0x1a0] ss:$16 sps:$4 sm:$0xff]  }
 0x17d   :  { %2159 = vmatpush1.bf16.msra.mxu1 %v5169_v14  ;;  %v5231_v14 = vld [vmem:[#allocation5 + $0x8b4] ss:$24 sps:$4 sm:$0xff]  }
 0x17e   :  { %2245 = vmatpush1.bf16.msra.mxu0 %v5172_v15  ;;  %3486 = vmatprep.subr.bf16.mxu1 %v5210_v17  ;;  %v5291_v15 = vld [vmem:[#allocation8 + $0x1c4] ss:$16 sps:$4 sm:$0xff]   ;;  %v5289_v17 = vld [vmem:[#allocation8 + $0x1c0] ss:$16 sps:$4 sm:$0xff]  }
 0x17f   :  { %2257 = vmatprep.subr.bf16.mxu0 %v5177_v16  ;;  %v5229_v16 = vld [vmem:[#allocation5 + $0x8b0] ss:$24 sps:$4 sm:$0xff]  }
 0x180   :  { %2161 = vmatmul.mubr.bf16.vlgmr.msra.gmra.mrb[4].mxu1 %v5922_v11  ;;  %v5228_v11 = vld [vmem:[#allocation8 + $0x64] ss:$16 sps:$4 sm:$0xff]  }
 0x181   :  { %2247 = vmatmul.mubr.bf16.vlgmr.msra.gmra.mrb[4].mxu0 %v5564_v22  ;;  %3487 = vmatpush1.bf16.msra.mxu1 %v5208_v19  ;;  %v5297_v19 = vld [vmem:[#allocation8 + $0x1e4] ss:$16 sps:$4 sm:$0xff]   ;;  %v5246_v22 = vld [vmem:[#allocation8 + $0xc] ss:$16 sps:$4 sm:$0xff]  }
 0x182   :  { %2258 = vmatpush1.bf16.msra.mxu0 %v5175_v18  ;;  %3488 = vmatprep.subr.bf16.mxu1 %v5216_v21  ;;  %v5237_v18 = vld [vmem:[#allocation5 + $0x8e4] ss:$24 sps:$4 sm:$0xff]  }
 0x183   :  { %2259 = vmatprep.subr.bf16.mxu0 %v5180_v20  ;;  %2289 = vmatprep.mubr.bf16.mxu0 %v5565_v7  ;;  %v5235_v20 = vld [vmem:[#allocation5 + $0x8e0] ss:$24 sps:$4 sm:$0xff]  }
 0x184   :  { %v5295_v21 = vld [vmem:[#allocation8 + $0x1e0] ss:$16 sps:$4 sm:$0xff]   ;;  %v5250_v7 = vld [vmem:[#allocation8 + $0x28] ss:$16 sps:$4 sm:$0xff]  }
 0x185   :  { %3489 = vmatpush1.bf16.msra.mxu1 %v5214_v24  ;;  %v5244_v24 = vld [vmem:[#allocation8 + $0x8] ss:$16 sps:$4 sm:$0xff]  }
 0x186   :  { %2260 = vmatpush1.bf16.msra.mxu0 %v5178_v23  ;;  %3490 = vmatprep.subr.bf16.mxu1 %v5222_v26  ;;  %v5321_v23 = vld [vmem:[#allocation8 + $0x204] ss:$16 sps:$4 sm:$0xff]  }
 0x187   :  { %2261 = vmatprep.subr.bf16.mxu0 %v5183_v25  ;;  %v5252_v25 = vld [vmem:[#allocation8 + $0x2c] ss:$16 sps:$4 sm:$0xff]  }
 0x188   :  { %v5566_v26 = vld [vmem:[#allocation2 + $0x10] ss:$24 sps:$4 sm:$0xff]  }
 0x189   :  { %3491 = vmatpush1.bf16.msra.mxu1 %v5220_v28  ;;  %v5256_v28 = vld [vmem:[#allocation8 + $0x48] ss:$16 sps:$4 sm:$0xff]  }
 0x18a   :  { %2262 = vmatpush1.bf16.msra.mxu0 %v5181_v4  ;;  %3492 = vmatprep.subr.bf16.mxu1 %v5228_v11  ;;  %v413_v4 = vlaneseq }
 0x18b   :  { %2263 = vmatprep.subr.bf16.mxu0 %v5186_v27  ;;  %v5258_v27 = vld [vmem:[#allocation8 + $0x4c] ss:$16 sps:$4 sm:$0xff]  }
 0x18c   :  { %v5940_v11 = vshrl.u32 %v413_v4, 7  ;;  %v5322_v4 = vld [vmem:[#allocation8 + $0x208] ss:$16 sps:$4 sm:$0xff]  }
 0x18d   :  { %3493 = vmatpush1.bf16.msra.mxu1 %v5226_v29 }
 0x18e   :  { %2264 = vmatpush1.bf16.msra.mxu0 %v5184_v50  ;;  %3494 = vmatprep.subr.bf16.mxu1 %v5234_v34  ;;  %v5264_v50 = vld [vmem:[#allocation8 + $0x6c] ss:$16 sps:$4 sm:$0xff]   ;;  %v415_v29 = vsub.s32 0, %v5940_v11 }
 0x18f   :  { %2265 = vmatprep.subr.bf16.mxu0 %v5189_v49  ;;  %v5262_v49 = vld [vmem:[#allocation8 + $0x68] ss:$16 sps:$4 sm:$0xff]   ;;  %v5270_v34 = vld [vmem:[#allocation8 + $0x8c] ss:$16 sps:$4 sm:$0xff]  }
 0x191   :  { %3495 = vmatpush1.bf16.msra.mxu1 %v5232_v32  ;;  %v5268_v32 = vld [vmem:[#allocation8 + $0x88] ss:$16 sps:$4 sm:$0xff]  }
 0x192   :  { %2266 = vmatpush1.bf16.msra.mxu0 %v5187_v30  ;;  %3496 = vmatprep.subr.bf16.mxu1 %v5240_v33  ;;  %v5943_v30 = vld [vmem:[#allocation7] sm:$0x3f] }
 0x193   :  { %2267 = vmatprep.subr.bf16.mxu0 %v5192_v31  ;;  %v5932_v39 = vpop.f32.mrb[0].mxu1  ;;  %v419_v31 = vsub.s32 1, %v5940_v11  ;;  %v416_v33 = vrot.slane %v5943_v30, %v415_v29 }
 0x194   :  { %v5934_v40 = vpop.f32.mrb[1].mxu1 }
 0x195   :  { %v5936_v41 = vpop.f32.mrb[2].mxu1  ;;  %3497 = vmatpush1.bf16.msra.mxu1 %v5238_v37  ;;  %v5274_v37 = vld [vmem:[#allocation8 + $0xa8] ss:$16 sps:$4 sm:$0xff]  }
 0x196   :  { %2268 = vmatpush1.bf16.msra.mxu0 %v5190_v35  ;;  %v5938_v44 = vpop.f32.mrb[3].mxu1  ;;  %3498 = vmatprep.subr.bf16.mxu1 %v5243_v38  ;;  %v5276_v35 = vld [vmem:[#allocation8 + $0xac] ss:$16 sps:$4 sm:$0xff]   ;;  %v1948_v38 = vadd.f32 %v5932_v39, %v416_v33 }
 0x197   :  { %2269 = vmatprep.subr.bf16.mxu0 %v5195_v36  ;;  %v420_v36 = vrot.slane %v5943_v30, %v419_v31 }
 0x199   :  { %3499 = vmatpush1.bf16.msra.mxu1 %v5241_v43  ;;  %v1950_v43 = vadd.f32 %v5934_v40, %v420_v36  ;;  %v5286_v40 = vld [vmem:[#allocation8 + $0xe8] ss:$16 sps:$4 sm:$0xff]  }
 0x19a   :  { %2270 = vmatpush1.bf16.msra.mxu0 %v5193_v42  ;;  %3500 = vmatprep.subr.bf16.mxu1 %v5249_v46  ;;  %v5282_v42 = vld [vmem:[#allocation8 + $0xcc] ss:$16 sps:$4 sm:$0xff]   ;;  %v1952_v46 = vadd.f32 %v5936_v41, %v416_v33  ;;  %v5292_v41 = vld [vmem:[#allocation8 + $0x108] ss:$16 sps:$4 sm:$0xff]   ;;  %v5369_v33 = vld [vmem:[#allocation8 + $0x304] ss:$16 sps:$4 sm:$0xff]  }
 0x19b   :  { %2271 = vmatprep.subr.bf16.mxu0 %v5198_v45 }
 0x19d   :  { %3501 = vmatpush1.bf16.msra.mxu1 %v5247_v51  ;;  %v1954_v51 = vadd.f32 %v5938_v44, %v420_v36  ;;  %v5300_v44 = vld [vmem:[#allocation8 + $0x12c] ss:$16 sps:$4 sm:$0xff]   ;;  %v5367_v36 = vld [vmem:[#allocation8 + $0x300] ss:$16 sps:$4 sm:$0xff]  }
 0x19e   :  { %2272 = vmatpush1.bf16.msra.mxu0 %v5196_v47  ;;  %3502 = vmatprep.subr.bf16.mxu1 %v5255_v52 }
 0x19f   :  { %2273 = vmatprep.subr.bf16.mxu0 %v5201_v48 }
 0x1a1   :  { %3503 = vmatpush1.bf16.msra.mxu1 %v5253_v55 }
 0x1a2   :  { %2274 = vmatpush1.bf16.msra.mxu0 %v5199_v53  ;;  %3504 = vmatprep.subr.bf16.mxu1 %v5261_v56 }
 0x1a3   :  { %2275 = vmatprep.subr.bf16.mxu0 %v5204_v54  ;;  %v5280_v54 = vld [vmem:[#allocation8 + $0xc8] ss:$16 sps:$4 sm:$0xff]  }
 0x1a5   :  { %3505 = vmatpush1.bf16.msra.mxu1 %v5259_v59 }
 0x1a6   :  { %2276 = vmatpush1.bf16.msra.mxu0 %v5202_v57  ;;  %3506 = vmatprep.subr.bf16.mxu1 %v5267_v60  ;;  %v5288_v57 = vld [vmem:[#allocation8 + $0xec] ss:$16 sps:$4 sm:$0xff]  }
 0x1a7   :  { %2277 = vmatprep.subr.bf16.mxu0 %v5207_v58  ;;  %v5294_v60 = vld [vmem:[#allocation8 + $0x10c] ss:$16 sps:$4 sm:$0xff]  }
 0x1a9   :  { %3507 = vmatpush1.bf16.msra.mxu1 %v5265_v63  ;;  %v5301_v63 = vld [vmem:[#allocation8 + $0x148] ss:$16 sps:$4 sm:$0xff]  }
 0x1aa   :  { %2278 = vmatpush1.bf16.msra.mxu0 %v5205_v61  ;;  %3508 = vmatprep.subr.bf16.mxu1 %v5273_v0  ;;  %v5298_v61 = vld [vmem:[#allocation8 + $0x128] ss:$16 sps:$4 sm:$0xff]   ;;  %v5319_v0 = vld [vmem:[#allocation8 + $0x200] ss:$16 sps:$4 sm:$0xff]  }
 0x1ab   :  { %2279 = vmatprep.subr.bf16.mxu0 %v5213_v62  ;;  %v5303_v62 = vld [vmem:[#allocation8 + $0x14c] ss:$16 sps:$4 sm:$0xff]  }
 0x1ad   :  { %3509 = vmatpush1.bf16.msra.mxu1 %v5271_v2  ;;  %v5306_v2 = vld [vmem:[#allocation8 + $0x16c] ss:$16 sps:$4 sm:$0xff]  }
 0x1ae   :  { %2280 = vmatpush1.bf16.msra.mxu0 %v5211_v1  ;;  %3510 = vmatprep.subr.bf16.mxu1 %v5279_v5 }
 0x1af   :  { %2281 = vmatprep.subr.bf16.mxu0 %v5219_v3  ;;  %v5327_v3 = vld [vmem:[#allocation8 + $0x224] ss:$16 sps:$4 sm:$0xff]  }
 0x1b1   :  { %3511 = vmatpush1.bf16.msra.mxu1 %v5277_v8  ;;  %v5325_v8 = vld [vmem:[#allocation8 + $0x220] ss:$16 sps:$4 sm:$0xff]  }
 0x1b2   :  { %2282 = vmatpush1.bf16.msra.mxu0 %v5217_v6  ;;  %3512 = vmatprep.subr.bf16.mxu1 %v5285_v10  ;;  %v5304_v6 = vld [vmem:[#allocation8 + $0x168] ss:$16 sps:$4 sm:$0xff]   ;;  %v5333_v10 = vld [vmem:[#allocation8 + $0x244] ss:$16 sps:$4 sm:$0xff]  }
 0x1b3   :  { %2283 = vmatprep.subr.bf16.mxu0 %v5225_v9  ;;  %v5309_v9 = vld [vmem:[#allocation8 + $0x18c] ss:$16 sps:$4 sm:$0xff]  }
 0x1b5   :  { %3513 = vmatpush1.bf16.msra.mxu1 %v5283_v13  ;;  %v5331_v13 = vld [vmem:[#allocation8 + $0x240] ss:$16 sps:$4 sm:$0xff]  }
 0x1b6   :  { %2284 = vmatpush1.bf16.msra.mxu0 %v5223_v12  ;;  %3514 = vmatprep.subr.bf16.mxu1 %v5291_v15  ;;  %v5307_v12 = vld [vmem:[#allocation8 + $0x188] ss:$16 sps:$4 sm:$0xff]   ;;  %v5339_v15 = vld [vmem:[#allocation8 + $0x264] ss:$16 sps:$4 sm:$0xff]  }
 0x1b7   :  { %2285 = vmatprep.subr.bf16.mxu0 %v5231_v14  ;;  %v5312_v14 = vld [vmem:[#allocation8 + $0x1ac] ss:$16 sps:$4 sm:$0xff]  }
 0x1b9   :  { %3515 = vmatpush1.bf16.msra.mxu1 %v5289_v17  ;;  %v5337_v17 = vld [vmem:[#allocation8 + $0x260] ss:$16 sps:$4 sm:$0xff]  }
 0x1ba   :  { %2286 = vmatpush1.bf16.msra.mxu0 %v5229_v16  ;;  %3516 = vmatprep.subr.bf16.mxu1 %v5297_v19  ;;  %v5310_v16 = vld [vmem:[#allocation8 + $0x1a8] ss:$16 sps:$4 sm:$0xff]   ;;  %v5345_v19 = vld [vmem:[#allocation8 + $0x284] ss:$16 sps:$4 sm:$0xff]  }
 0x1bb   :  { %2287 = vmatprep.subr.bf16.mxu0 %v5237_v18  ;;  %v5315_v18 = vld [vmem:[#allocation8 + $0x1cc] ss:$16 sps:$4 sm:$0xff]  }
 0x1bd   :  { %3517 = vmatpush1.bf16.msra.mxu1 %v5295_v21  ;;  %v5343_v21 = vld [vmem:[#allocation8 + $0x280] ss:$16 sps:$4 sm:$0xff]  }
 0x1be   :  { %2288 = vmatpush1.bf16.msra.mxu0 %v5235_v20  ;;  %3529 = vmatprep.subr.bf16.mxu1 %v5321_v23  ;;  %v5313_v20 = vld [vmem:[#allocation8 + $0x1c8] ss:$16 sps:$4 sm:$0xff]   ;;  %v5351_v23 = vld [vmem:[#allocation8 + $0x2a4] ss:$16 sps:$4 sm:$0xff]  }
 0x1bf   :  { %3615 = vmatprep.subr.bf16.mxu0 %v5246_v22  ;;  %v5318_v22 = vld [vmem:[#allocation8 + $0x1ec] ss:$16 sps:$4 sm:$0xff]  }
 0x1c1   :  { %2290 = vmatmul.mubr.bf16.vlgmr.msra.gmra.mrb[4].mxu0 %v5566_v26  ;;  %v5324_v26 = vld [vmem:[#allocation8 + $0x20c] ss:$16 sps:$4 sm:$0xff]  }
 0x1c2   :  { %3616 = vmatpush1.bf16.msra.mxu0 %v5244_v24  ;;  %v5316_v24 = vld [vmem:[#allocation8 + $0x1e8] ss:$16 sps:$4 sm:$0xff]  }
 0x1c3   :  { %3617 = vmatprep.subr.bf16.mxu0 %v5252_v25  ;;  %v5349_v25 = vld [vmem:[#allocation8 + $0x2a0] ss:$16 sps:$4 sm:$0xff]  }
 0x1c6   :  { %3618 = vmatpush1.bf16.msra.mxu0 %v5250_v7  ;;  %v5357_v7 = vld [vmem:[#allocation8 + $0x2c4] ss:$16 sps:$4 sm:$0xff]  }
 0x1c7   :  { %3619 = vmatprep.subr.bf16.mxu0 %v5258_v27  ;;  %v5355_v27 = vld [vmem:[#allocation8 + $0x2c0] ss:$16 sps:$4 sm:$0xff]  }
 0x1ca   :  { %3620 = vmatpush1.bf16.msra.mxu0 %v5256_v28  ;;  %v5330_v28 = vld [vmem:[#allocation8 + $0x22c] ss:$16 sps:$4 sm:$0xff]  }
 0x1cb   :  { %3621 = vmatprep.subr.bf16.mxu0 %v5264_v50  ;;  %v5363_v50 = vld [vmem:[#allocation8 + $0x2e4] ss:$16 sps:$4 sm:$0xff]  }
 0x1ce   :  { %3622 = vmatpush1.bf16.msra.mxu0 %v5262_v49  ;;  %v5328_v49 = vld [vmem:[#allocation8 + $0x228] ss:$16 sps:$4 sm:$0xff]  }
 0x1cf   :  { %3623 = vmatprep.subr.bf16.mxu0 %v5270_v34  ;;  %v5361_v34 = vld [vmem:[#allocation8 + $0x2e0] ss:$16 sps:$4 sm:$0xff]  }
 0x1d2   :  { %3624 = vmatpush1.bf16.msra.mxu0 %v5268_v32  ;;  %v5336_v32 = vld [vmem:[#allocation8 + $0x24c] ss:$16 sps:$4 sm:$0xff]  }
 0x1d3   :  { %3625 = vmatprep.subr.bf16.mxu0 %v5276_v35  ;;  %v5334_v35 = vld [vmem:[#allocation8 + $0x248] ss:$16 sps:$4 sm:$0xff]  }
 0x1d4   :  { %v2033_v45 = vpop.f32.mrb[0].mxu0 }
 0x1d5   :  { %v4707_v47 = vadd.f32 %v2033_v45, %v1948_v38  ;;  %v2035_v48 = vpop.f32.mrb[1].mxu0  ;;  %v5375_v38 = vld [vmem:[#allocation8 + $0x324] ss:$16 sps:$4 sm:$0xff]   ;;  %v5348_v45 = vld [vmem:[#allocation8 + $0x28c] ss:$16 sps:$4 sm:$0xff]  }
 0x1d6   :  { %v4709_v52 = vadd.f32 %v2035_v48, %v1950_v43  ;;  %v2037_v53 = vpop.f32.mrb[2].mxu0  ;;  %3626 = vmatpush1.bf16.msra.mxu0 %v5274_v37  ;;  %v5342_v37 = vld [vmem:[#allocation8 + $0x26c] ss:$16 sps:$4 sm:$0xff]   ;;  %v5373_v43 = vld [vmem:[#allocation8 + $0x320] ss:$16 sps:$4 sm:$0xff]  }
 0x1d7   :  { %v4711_v55 = vadd.f32 %v2037_v53, %v1952_v46  ;;  %v2039_v56 = vpop.f32.mrb[3].mxu0  ;;  %3627 = vmatprep.subr.bf16.mxu0 %v5282_v42  ;;  %v5340_v42 = vld [vmem:[#allocation8 + $0x268] ss:$16 sps:$4 sm:$0xff]   ;;  %v5381_v46 = vld [vmem:[#allocation8 + $0x344] ss:$16 sps:$4 sm:$0xff]  }
 0x1d8   :  { %v4713_v39 = vadd.f32 %v2039_v56, %v1954_v51  ;;  %v5379_v48 = vld [vmem:[#allocation8 + $0x340] ss:$16 sps:$4 sm:$0xff]   ;;  %v5354_v51 = vld [vmem:[#allocation8 + $0x2ac] ss:$16 sps:$4 sm:$0xff]   ;;  %v5352_v53 = vld [vmem:[#allocation8 + $0x2a8] ss:$16 sps:$4 sm:$0xff]  }
 0x1d9   :  { %v2300_v58 = vpack.c.bf16 %v4711_v55, %v4707_v47  ;;  %v5346_v47 = vld [vmem:[#allocation8 + $0x288] ss:$16 sps:$4 sm:$0xff]   ;;  %v5360_v55 = vld [vmem:[#allocation8 + $0x2cc] ss:$16 sps:$4 sm:$0xff]   ;;  %v5393_v56 = vld [vmem:[#allocation8 + $0x384] ss:$16 sps:$4 sm:$0xff]  }
 0x1da   :  { %v2301_v59 = vpack.c.bf16 %v4713_v39, %v4709_v52  ;;  %3628 = vmatpush1.bf16.msra.mxu0 %v5280_v54  ;;  %v5387_v52 = vld [vmem:[#allocation8 + $0x364] ss:$16 sps:$4 sm:$0xff]   ;;  %v5385_v54 = vld [vmem:[#allocation8 + $0x360] ss:$16 sps:$4 sm:$0xff]  }
 0x1db   :  { %3629 = vmatprep.subr.bf16.mxu0 %v5288_v57  ;;  %v5358_v57 = vld [vmem:[#allocation8 + $0x2c8] ss:$16 sps:$4 sm:$0xff]   ;;  %v5391_v39 = vld [vmem:[#allocation8 + $0x380] ss:$16 sps:$4 sm:$0xff]  }
 0x1dc   :  { %5543 = vtanh.bf16 %v2301_v59  ;;  %v5399_v59 = vld [vmem:[#allocation8 + $0x3a4] ss:$16 sps:$4 sm:$0xff]  }
 0x1dd   :  { %5545 = vtanh.bf16 %v2300_v58  ;;  %v5366_v58 = vld [vmem:[#allocation8 + $0x2ec] ss:$16 sps:$4 sm:$0xff]  }
 0x1de   :  { %3630 = vmatpush1.bf16.msra.mxu0 %v5286_v40  ;;  %v5364_v40 = vld [vmem:[#allocation8 + $0x2e8] ss:$16 sps:$4 sm:$0xff]  }
 0x1df   :  { %3631 = vmatprep.subr.bf16.mxu0 %v5294_v60  ;;  %v5397_v60 = vld [vmem:[#allocation8 + $0x3a0] ss:$16 sps:$4 sm:$0xff]  }
 0x1e2   :  { %3632 = vmatpush1.bf16.msra.mxu0 %v5292_v41  ;;  %v5372_v41 = vld [vmem:[#allocation8 + $0x30c] ss:$16 sps:$4 sm:$0xff]  }
 0x1e3   :  { %3633 = vmatprep.subr.bf16.mxu0 %v5300_v44  ;;  %v5405_v44 = vld [vmem:[#allocation8 + $0x3c4] ss:$16 sps:$4 sm:$0xff]  }
 0x1e6   :  { %3634 = vmatpush1.bf16.msra.mxu0 %v5298_v61  ;;  %v5370_v61 = vld [vmem:[#allocation8 + $0x308] ss:$16 sps:$4 sm:$0xff]  }
 0x1e7   :  { %v5544_v1 = vpop.eup %5543  ;;  %3635 = vmatprep.subr.bf16.mxu0 %v5303_v62  ;;  %v5403_v62 = vld [vmem:[#allocation8 + $0x3c0] ss:$16 sps:$4 sm:$0xff]  }
 0x1e8   :  { %v5546_v5 = vpop.eup %5545  ;;  %3518 = vmatprep.mubr.bf16.mxu1 %v5544_v1  ;;  %3647 = vmatprep.mubr.bf16.mxu0 %v5544_v1  ;;  %v5376_v1 = vld [vmem:[#allocation8 + $0x328] ss:$16 sps:$4 sm:$0xff]  }
 0x1e9   :  { %3519 = vmatmul.mubr.bf16.vlgmr.msra.gmra.mrb[8].mxu1 %v5546_v5 }
 0x1ea   :  { %3636 = vmatpush1.bf16.msra.mxu0 %v5301_v63  ;;  %3530 = vmatpush1.bf16.msra.mxu1 %v5319_v0  ;;  %v5378_v63 = vld [vmem:[#allocation8 + $0x32c] ss:$16 sps:$4 sm:$0xff]   ;;  %v5411_v0 = vld [vmem:[#allocation8 + $0x3e4] ss:$16 sps:$4 sm:$0xff]  }
 0x1eb   :  { %3637 = vmatprep.subr.bf16.mxu0 %v5306_v2  ;;  %3531 = vmatprep.subr.bf16.mxu1 %v5327_v3  ;;  %v5409_v2 = vld [vmem:[#allocation8 + $0x3e0] ss:$16 sps:$4 sm:$0xff]   ;;  %v5384_v3 = vld [vmem:[#allocation8 + $0x34c] ss:$16 sps:$4 sm:$0xff]  }
 0x1ee   :  { %3638 = vmatpush1.bf16.msra.mxu0 %v5304_v6  ;;  %3532 = vmatpush1.bf16.msra.mxu1 %v5325_v8  ;;  %v5382_v6 = vld [vmem:[#allocation8 + $0x348] ss:$16 sps:$4 sm:$0xff]   ;;  %v5390_v8 = vld [vmem:[#allocation8 + $0x36c] ss:$16 sps:$4 sm:$0xff]  }
 0x1ef   :  { %3639 = vmatprep.subr.bf16.mxu0 %v5309_v9  ;;  %3533 = vmatprep.subr.bf16.mxu1 %v5333_v10  ;;  %v5388_v9 = vld [vmem:[#allocation8 + $0x368] ss:$16 sps:$4 sm:$0xff]   ;;  %v5396_v10 = vld [vmem:[#allocation8 + $0x38c] ss:$16 sps:$4 sm:$0xff]  }
 0x1f2   :  { %3640 = vmatpush1.bf16.msra.mxu0 %v5307_v12  ;;  %3534 = vmatpush1.bf16.msra.mxu1 %v5331_v13  ;;  %v5394_v12 = vld [vmem:[#allocation8 + $0x388] ss:$16 sps:$4 sm:$0xff]   ;;  %v5402_v13 = vld [vmem:[#allocation8 + $0x3ac] ss:$16 sps:$4 sm:$0xff]  }
 0x1f3   :  { %3641 = vmatprep.subr.bf16.mxu0 %v5312_v14  ;;  %3535 = vmatprep.subr.bf16.mxu1 %v5339_v15  ;;  %v5400_v14 = vld [vmem:[#allocation8 + $0x3a8] ss:$16 sps:$4 sm:$0xff]   ;;  %v5408_v15 = vld [vmem:[#allocation8 + $0x3cc] ss:$16 sps:$4 sm:$0xff]  }
 0x1f6   :  { %3642 = vmatpush1.bf16.msra.mxu0 %v5310_v16  ;;  %3536 = vmatpush1.bf16.msra.mxu1 %v5337_v17  ;;  %v5406_v16 = vld [vmem:[#allocation8 + $0x3c8] ss:$16 sps:$4 sm:$0xff]   ;;  %v5414_v17 = vld [vmem:[#allocation8 + $0x3ec] ss:$16 sps:$4 sm:$0xff]  }
 0x1f7   :  { %3643 = vmatprep.subr.bf16.mxu0 %v5315_v18  ;;  %3537 = vmatprep.subr.bf16.mxu1 %v5345_v19  ;;  %v5412_v18 = vld [vmem:[#allocation8 + $0x3e8] ss:$16 sps:$4 sm:$0xff]   ;;  %v5420_v19 = vld [vmem:[#allocation8 + $0x40c] ss:$16 sps:$4 sm:$0xff]  }
 0x1fa   :  { %3644 = vmatpush1.bf16.msra.mxu0 %v5313_v20  ;;  %3538 = vmatpush1.bf16.msra.mxu1 %v5343_v21  ;;  %v423_v20 = vsub.s32 2, %v5940_v11  ;;  %v427_v21 = vsub.s32 3, %v5940_v11 }
 0x1fb   :  { %3645 = vmatprep.subr.bf16.mxu0 %v5318_v22  ;;  %3539 = vmatprep.subr.bf16.mxu1 %v5351_v23 }
 0x1fc   :  { %v424_v22 = vrot.slane %v5943_v30, %v423_v20 }
 0x1fe   :  { %3646 = vmatpush1.bf16.msra.mxu0 %v5316_v24  ;;  %3540 = vmatpush1.bf16.msra.mxu1 %v5349_v25  ;;  %v428_v24 = vrot.slane %v5943_v30, %v427_v21 }
 0x1ff   :  { %3658 = vmatprep.subr.bf16.mxu0 %v5324_v26  ;;  %3541 = vmatprep.subr.bf16.mxu1 %v5357_v7 }
 0x201   :  { %3648 = vmatmul.mubr.bf16.vlgmr.msra.gmra.mrb[8].mxu0 %v5546_v5  ;;  %v5417_v5 = vld [vmem:[#allocation8 + $0x404] ss:$16 sps:$4 sm:$0xff]  }
 0x202   :  { %3659 = vmatpush1.bf16.msra.mxu0 %v5322_v4  ;;  %3542 = vmatpush1.bf16.msra.mxu1 %v5355_v27 }
 0x203   :  { %3660 = vmatprep.subr.bf16.mxu0 %v5330_v28  ;;  %3543 = vmatprep.subr.bf16.mxu1 %v5363_v50 }
 0x206   :  { %3661 = vmatpush1.bf16.msra.mxu0 %v5328_v49  ;;  %3544 = vmatpush1.bf16.msra.mxu1 %v5361_v34 }
 0x207   :  { %3662 = vmatprep.subr.bf16.mxu0 %v5336_v32  ;;  %3545 = vmatprep.subr.bf16.mxu1 %v5369_v33  ;;  %v5415_v32 = vld [vmem:[#allocation8 + $0x400] ss:$16 sps:$4 sm:$0xff]   ;;  %v5418_v33 = vld [vmem:[#allocation8 + $0x408] ss:$16 sps:$4 sm:$0xff]  }
 0x20a   :  { %3663 = vmatpush1.bf16.msra.mxu0 %v5334_v35  ;;  %3546 = vmatpush1.bf16.msra.mxu1 %v5367_v36  ;;  %v5423_v36 = vld [vmem:[#allocation8 + $0x424] ss:$16 sps:$4 sm:$0xff]  }
 0x20b   :  { %3664 = vmatprep.subr.bf16.mxu0 %v5342_v37  ;;  %3547 = vmatprep.subr.bf16.mxu1 %v5375_v38  ;;  %v5426_v37 = vld [vmem:[#allocation8 + $0x42c] ss:$16 sps:$4 sm:$0xff]  }
 0x20e   :  { %3665 = vmatpush1.bf16.msra.mxu0 %v5340_v42  ;;  %3548 = vmatpush1.bf16.msra.mxu1 %v5373_v43  ;;  %v5421_v42 = vld [vmem:[#allocation8 + $0x420] ss:$16 sps:$4 sm:$0xff]   ;;  %v5424_v43 = vld [vmem:[#allocation8 + $0x428] ss:$16 sps:$4 sm:$0xff]  }
 0x20f   :  { %3666 = vmatprep.subr.bf16.mxu0 %v5348_v45  ;;  %3549 = vmatprep.subr.bf16.mxu1 %v5381_v46  ;;  %v5429_v45 = vld [vmem:[#allocation8 + $0x444] ss:$16 sps:$4 sm:$0xff]   ;;  %v5432_v46 = vld [vmem:[#allocation8 + $0x44c] ss:$16 sps:$4 sm:$0xff]  }
 0x212   :  { %3667 = vmatpush1.bf16.msra.mxu0 %v5346_v47  ;;  %3550 = vmatpush1.bf16.msra.mxu1 %v5379_v48  ;;  %v5427_v47 = vld [vmem:[#allocation8 + $0x440] ss:$16 sps:$4 sm:$0xff]   ;;  %v5430_v48 = vld [vmem:[#allocation8 + $0x448] ss:$16 sps:$4 sm:$0xff]  }
 0x213   :  { %3668 = vmatprep.subr.bf16.mxu0 %v5354_v51  ;;  %3551 = vmatprep.subr.bf16.mxu1 %v5387_v52  ;;  %v5435_v51 = vld [vmem:[#allocation8 + $0x464] ss:$16 sps:$4 sm:$0xff]   ;;  %v5438_v52 = vld [vmem:[#allocation8 + $0x46c] ss:$16 sps:$4 sm:$0xff]  }
 0x216   :  { %3669 = vmatpush1.bf16.msra.mxu0 %v5352_v53  ;;  %3552 = vmatpush1.bf16.msra.mxu1 %v5385_v54  ;;  %v5433_v53 = vld [vmem:[#allocation8 + $0x460] ss:$16 sps:$4 sm:$0xff]   ;;  %v5436_v54 = vld [vmem:[#allocation8 + $0x468] ss:$16 sps:$4 sm:$0xff]  }
 0x217   :  { %3670 = vmatprep.subr.bf16.mxu0 %v5360_v55  ;;  %3553 = vmatprep.subr.bf16.mxu1 %v5393_v56  ;;  %v5441_v55 = vld [vmem:[#allocation8 + $0x484] ss:$16 sps:$4 sm:$0xff]   ;;  %v5444_v56 = vld [vmem:[#allocation8 + $0x48c] ss:$16 sps:$4 sm:$0xff]  }
 0x21a   :  { %3671 = vmatpush1.bf16.msra.mxu0 %v5358_v57  ;;  %3554 = vmatpush1.bf16.msra.mxu1 %v5391_v39  ;;  %v5439_v57 = vld [vmem:[#allocation8 + $0x480] ss:$16 sps:$4 sm:$0xff]   ;;  %v5442_v39 = vld [vmem:[#allocation8 + $0x488] ss:$16 sps:$4 sm:$0xff]  }
 0x21b   :  { %3672 = vmatprep.subr.bf16.mxu0 %v5366_v58  ;;  %3555 = vmatprep.subr.bf16.mxu1 %v5399_v59  ;;  %v5447_v58 = vld [vmem:[#allocation8 + $0x4a4] ss:$16 sps:$4 sm:$0xff]   ;;  %v5450_v59 = vld [vmem:[#allocation8 + $0x4ac] ss:$16 sps:$4 sm:$0xff]  }
 0x21e   :  { %3673 = vmatpush1.bf16.msra.mxu0 %v5364_v40  ;;  %3556 = vmatpush1.bf16.msra.mxu1 %v5397_v60  ;;  %v5445_v40 = vld [vmem:[#allocation8 + $0x4a0] ss:$16 sps:$4 sm:$0xff]   ;;  %v5448_v60 = vld [vmem:[#allocation8 + $0x4a8] ss:$16 sps:$4 sm:$0xff]  }
 0x21f   :  { %3674 = vmatprep.subr.bf16.mxu0 %v5372_v41  ;;  %3557 = vmatprep.subr.bf16.mxu1 %v5405_v44  ;;  %v5453_v41 = vld [vmem:[#allocation8 + $0x4c4] ss:$16 sps:$4 sm:$0xff]   ;;  %v5456_v44 = vld [vmem:[#allocation8 + $0x4cc] ss:$16 sps:$4 sm:$0xff]  }
 0x222   :  { %3675 = vmatpush1.bf16.msra.mxu0 %v5370_v61  ;;  %3558 = vmatpush1.bf16.msra.mxu1 %v5403_v62  ;;  %v5451_v61 = vld [vmem:[#allocation8 + $0x4c0] ss:$16 sps:$4 sm:$0xff]   ;;  %v5454_v62 = vld [vmem:[#allocation8 + $0x4c8] ss:$16 sps:$4 sm:$0xff]  }
 0x223   :  { %3676 = vmatprep.subr.bf16.mxu0 %v5378_v63  ;;  %3559 = vmatprep.subr.bf16.mxu1 %v5411_v0  ;;  %v5459_v63 = vld [vmem:[#allocation8 + $0x4e4] ss:$16 sps:$4 sm:$0xff]   ;;  %v5462_v0 = vld [vmem:[#allocation8 + $0x4ec] ss:$16 sps:$4 sm:$0xff]  }
 0x226   :  { %3677 = vmatpush1.bf16.msra.mxu0 %v5376_v1  ;;  %3560 = vmatpush1.bf16.msra.mxu1 %v5409_v2  ;;  %v5457_v1 = vld [vmem:[#allocation8 + $0x4e0] ss:$16 sps:$4 sm:$0xff]   ;;  %v5460_v2 = vld [vmem:[#allocation8 + $0x4e8] ss:$16 sps:$4 sm:$0xff]  }
 0x227   :  { %3678 = vmatprep.subr.bf16.mxu0 %v5384_v3  ;;  %3572 = vmatprep.subr.bf16.mxu1 %v5417_v5  ;;  %v5465_v3 = vld [vmem:[#allocation8 + $0x504] ss:$16 sps:$4 sm:$0xff]   ;;  %v5468_v5 = vld [vmem:[#allocation8 + $0x50c] ss:$16 sps:$4 sm:$0xff]  }
 0x22a   :  { %3679 = vmatpush1.bf16.msra.mxu0 %v5382_v6  ;;  %v5463_v6 = vld [vmem:[#allocation8 + $0x500] ss:$16 sps:$4 sm:$0xff]  }
 0x22b   :  { %3680 = vmatprep.subr.bf16.mxu0 %v5390_v8  ;;  %v5466_v8 = vld [vmem:[#allocation8 + $0x508] ss:$16 sps:$4 sm:$0xff]  }
 0x22e   :  { %3681 = vmatpush1.bf16.msra.mxu0 %v5388_v9  ;;  %v5471_v9 = vld [vmem:[#allocation8 + $0x524] ss:$16 sps:$4 sm:$0xff]  }
 0x22f   :  { %3682 = vmatprep.subr.bf16.mxu0 %v5396_v10  ;;  %v5474_v10 = vld [vmem:[#allocation8 + $0x52c] ss:$16 sps:$4 sm:$0xff]  }
 0x232   :  { %3683 = vmatpush1.bf16.msra.mxu0 %v5394_v12  ;;  %v5469_v12 = vld [vmem:[#allocation8 + $0x520] ss:$16 sps:$4 sm:$0xff]  }
 0x233   :  { %3684 = vmatprep.subr.bf16.mxu0 %v5402_v13  ;;  %v5472_v13 = vld [vmem:[#allocation8 + $0x528] ss:$16 sps:$4 sm:$0xff]  }
 0x236   :  { %3685 = vmatpush1.bf16.msra.mxu0 %v5400_v14  ;;  %v5477_v14 = vld [vmem:[#allocation8 + $0x544] ss:$16 sps:$4 sm:$0xff]  }
 0x237   :  { %3686 = vmatprep.subr.bf16.mxu0 %v5408_v15  ;;  %v5480_v15 = vld [vmem:[#allocation8 + $0x54c] ss:$16 sps:$4 sm:$0xff]  }
 0x23a   :  { %3687 = vmatpush1.bf16.msra.mxu0 %v5406_v16  ;;  %v5475_v16 = vld [vmem:[#allocation8 + $0x540] ss:$16 sps:$4 sm:$0xff]  }
 0x23b   :  { %3688 = vmatprep.subr.bf16.mxu0 %v5414_v17  ;;  %v5478_v17 = vld [vmem:[#allocation8 + $0x548] ss:$16 sps:$4 sm:$0xff]  }
 0x23e   :  { %3689 = vmatpush1.bf16.msra.mxu0 %v5412_v18  ;;  %v431_v18 = vsub.s32 4, %v5940_v11 }
 0x23f   :  { %3701 = vmatprep.subr.bf16.mxu0 %v5420_v19  ;;  %v5483_v19 = vld [vmem:[#allocation8 + $0x564] ss:$16 sps:$4 sm:$0xff]  }
 0x253   :  { %v2162_v23 = vpop.f32.mrb[4].mxu1 }
 0x254   :  { %v2164_v25 = vpop.f32.mrb[5].mxu1  ;;  %v4714_v7 = vadd.f32 %v2162_v23, %v424_v22  ;;  %v435_v23 = vsub.s32 5, %v5940_v11 }
 0x255   :  { %v2166_v26 = vpop.f32.mrb[6].mxu1  ;;  %v4715_v28 = vadd.f32 %v2164_v25, %v428_v24  ;;  %v5484_v25 = vld [vmem:[#allocation8 + $0x568] ss:$16 sps:$4 sm:$0xff]  }
 0x256   :  { %v4716_v4 = vadd.f32 %v2166_v26, %v424_v22  ;;  %v2168_v27 = vpop.f32.mrb[7].mxu1  ;;  %v5486_v22 = vld [vmem:[#allocation8 + $0x56c] ss:$16 sps:$4 sm:$0xff]   ;;  %v432_v26 = vrot.slane %v5943_v30, %v431_v18 }
 0x257   :  { %v4717_v50 = vadd.f32 %v2168_v27, %v428_v24  ;;  %v5481_v24 = vld [vmem:[#allocation8 + $0x560] ss:$16 sps:$4 sm:$0xff]  }
 0x258   :  { %v2302_v49 = vpack.c.bf16 %v4716_v4, %v4714_v7  ;;  %v5489_v7 = vld [vmem:[#allocation8 + $0x584] ss:$16 sps:$4 sm:$0xff]   ;;  %v5492_v4 = vld [vmem:[#allocation8 + $0x58c] ss:$16 sps:$4 sm:$0xff]  }
 0x259   :  { %v2303_v34 = vpack.c.bf16 %v4717_v50, %v4715_v28  ;;  %v436_v28 = vrot.slane %v5943_v30, %v435_v23  ;;  %v5493_v30 = vld [vmem:[#allocation8 + $0x5a0] ss:$16 sps:$4 sm:$0xff]  }
 0x25b   :  { %5547 = vtanh.bf16 %v2303_v34  ;;  %v5487_v34 = vld [vmem:[#allocation8 + $0x580] ss:$16 sps:$4 sm:$0xff]  }
 0x25c   :  { %5549 = vtanh.bf16 %v2302_v49 }
 0x266   :  { %v5548_v35 = vpop.eup %5547 }
 0x267   :  { %v5550_v38 = vpop.eup %5549  ;;  %3561 = vmatprep.mubr.bf16.mxu1 %v5548_v35  ;;  %3690 = vmatprep.mubr.bf16.mxu0 %v5548_v35 }
 0x268   :  { %3562 = vmatmul.mubr.bf16.vlgmr.msra.gmra.mrb[8].mxu1 %v5550_v38  ;;  %3691 = vmatmul.mubr.bf16.vlgmr.msra.gmra.mrb[8].mxu0 %v5550_v38  ;;  %v5498_v38 = vld [vmem:[#allocation8 + $0x5ac] ss:$16 sps:$4 sm:$0xff]  }
 0x269   :  { %3573 = vmatpush1.bf16.msra.mxu1 %v5415_v32  ;;  %3702 = vmatpush1.bf16.msra.mxu0 %v5418_v33  ;;  %v5490_v32 = vld [vmem:[#allocation8 + $0x588] ss:$16 sps:$4 sm:$0xff]  }
 0x26a   :  { %3574 = vmatprep.subr.bf16.mxu1 %v5423_v36  ;;  %3703 = vmatprep.subr.bf16.mxu0 %v5426_v37  ;;  %v5495_v37 = vld [vmem:[#allocation8 + $0x5a4] ss:$16 sps:$4 sm:$0xff]  }
 0x26d   :  { %3575 = vmatpush1.bf16.msra.mxu1 %v5421_v42  ;;  %3704 = vmatpush1.bf16.msra.mxu0 %v5424_v43 }
 0x26e   :  { %3576 = vmatprep.subr.bf16.mxu1 %v5429_v45  ;;  %3705 = vmatprep.subr.bf16.mxu0 %v5432_v46 }
 0x271   :  { %3577 = vmatpush1.bf16.msra.mxu1 %v5427_v47  ;;  %3706 = vmatpush1.bf16.msra.mxu0 %v5430_v48  ;;  %v5496_v47 = vld [vmem:[#allocation8 + $0x5a8] ss:$16 sps:$4 sm:$0xff]   ;;  %v5501_v48 = vld [vmem:[#allocation8 + $0x5c4] ss:$16 sps:$4 sm:$0xff]  }
 0x272   :  { %3578 = vmatprep.subr.bf16.mxu1 %v5435_v51  ;;  %3707 = vmatprep.subr.bf16.mxu0 %v5438_v52  ;;  %v5504_v51 = vld [vmem:[#allocation8 + $0x5cc] ss:$16 sps:$4 sm:$0xff]   ;;  %v5499_v52 = vld [vmem:[#allocation8 + $0x5c0] ss:$16 sps:$4 sm:$0xff]  }
 0x275   :  { %3579 = vmatpush1.bf16.msra.mxu1 %v5433_v53  ;;  %3708 = vmatpush1.bf16.msra.mxu0 %v5436_v54  ;;  %v5502_v53 = vld [vmem:[#allocation8 + $0x5c8] ss:$16 sps:$4 sm:$0xff]   ;;  %v5507_v54 = vld [vmem:[#allocation8 + $0x5e4] ss:$16 sps:$4 sm:$0xff]  }
 0x276   :  { %3580 = vmatprep.subr.bf16.mxu1 %v5441_v55  ;;  %3709 = vmatprep.subr.bf16.mxu0 %v5444_v56  ;;  %v5510_v55 = vld [vmem:[#allocation8 + $0x5ec] ss:$16 sps:$4 sm:$0xff]   ;;  %v5505_v56 = vld [vmem:[#allocation8 + $0x5e0] ss:$16 sps:$4 sm:$0xff]  }
 0x279   :  { %3581 = vmatpush1.bf16.msra.mxu1 %v5439_v57  ;;  %3710 = vmatpush1.bf16.msra.mxu0 %v5442_v39  ;;  %v5508_v57 = vld [vmem:[#allocation8 + $0x5e8] ss:$16 sps:$4 sm:$0xff]  }
 0x27a   :  { %3582 = vmatprep.subr.bf16.mxu1 %v5447_v58  ;;  %3711 = vmatprep.subr.bf16.mxu0 %v5450_v59  ;;  %v5511_v39 = vld [vmem:[#allocation11 + $0x40] sm:$0xff]  }
 0x27b   :  { %v5512_v58 = vld [vmem:[#allocation11] sm:$0xff]  }
 0x27d   :  { %3583 = vmatpush1.bf16.msra.mxu1 %v5445_v40  ;;  %3712 = vmatpush1.bf16.msra.mxu0 %v5448_v60  ;;  %v5513_v40 = vld [vmem:[#allocation11 + $0x48] sm:$0xff]  }
 0x27e   :  { %3584 = vmatprep.subr.bf16.mxu1 %v5453_v41  ;;  %3713 = vmatprep.subr.bf16.mxu0 %v5456_v44  ;;  %v5514_v41 = vld [vmem:[#allocation11 + $0x8] sm:$0xff]   ;;  %v5515_v44 = vld [vmem:[#allocation11 + $0x50] sm:$0xff]  }
 0x281   :  { %3585 = vmatpush1.bf16.msra.mxu1 %v5451_v61  ;;  %3714 = vmatpush1.bf16.msra.mxu0 %v5454_v62  ;;  %v5516_v61 = vld [vmem:[#allocation11 + $0x10] sm:$0xff]   ;;  %v5517_v62 = vld [vmem:[#allocation11 + $0x58] sm:$0xff]  }
 0x282   :  { %3586 = vmatprep.subr.bf16.mxu1 %v5459_v63  ;;  %3715 = vmatprep.subr.bf16.mxu0 %v5462_v0  ;;  %v5518_v63 = vld [vmem:[#allocation11 + $0x18] sm:$0xff]   ;;  %v5519_v0 = vld [vmem:[#allocation11 + $0x60] sm:$0xff]  }
 0x285   :  { %3587 = vmatpush1.bf16.msra.mxu1 %v5457_v1  ;;  %3716 = vmatpush1.bf16.msra.mxu0 %v5460_v2  ;;  %v5520_v1 = vld [vmem:[#allocation11 + $0x20] sm:$0xff]   ;;  %v5521_v2 = vld [vmem:[#allocation11 + $0x68] sm:$0xff]  }
 0x286   :  { %3588 = vmatprep.subr.bf16.mxu1 %v5465_v3  ;;  %3717 = vmatprep.subr.bf16.mxu0 %v5468_v5  ;;  %v5522_v3 = vld [vmem:[#allocation11 + $0x28] sm:$0xff]   ;;  %v5523_v5 = vld [vmem:[#allocation11 + $0x70] sm:$0xff]  }
 0x289   :  { %3589 = vmatpush1.bf16.msra.mxu1 %v5463_v6  ;;  %3718 = vmatpush1.bf16.msra.mxu0 %v5466_v8  ;;  %v5524_v6 = vld [vmem:[#allocation11 + $0x30] sm:$0xff]   ;;  %v5525_v8 = vld [vmem:[#allocation11 + $0x78] sm:$0xff]  }
 0x28a   :  { %3590 = vmatprep.subr.bf16.mxu1 %v5471_v9  ;;  %3719 = vmatprep.subr.bf16.mxu0 %v5474_v10  ;;  %v5526_v9 = vld [vmem:[#allocation11 + $0x38] sm:$0xff]   ;;  %v5527_v10 = vld [vmem:[#allocation11 + $0xc0] sm:$0xff]  }
 0x28d   :  { %3591 = vmatpush1.bf16.msra.mxu1 %v5469_v12  ;;  %3720 = vmatpush1.bf16.msra.mxu0 %v5472_v13  ;;  %v2504_v12 = vld [vmem:[#allocation10] sm:$0xf] }
 0x28e   :  { %3592 = vmatprep.subr.bf16.mxu1 %v5477_v14  ;;  %3721 = vmatprep.subr.bf16.mxu0 %v5480_v15  ;;  %v2509_v13 = vrot.slane %v2504_v12, %v415_v29  ;;  %v2517_v14 = vrot.slane %v2504_v12, %v423_v20  ;;  %v2513_v15 = vrot.slane %v2504_v12, %v419_v31 }
 0x291   :  { %3593 = vmatpush1.bf16.msra.mxu1 %v5475_v16  ;;  %3722 = vmatpush1.bf16.msra.mxu0 %v5478_v17  ;;  %v2521_v16 = vrot.slane %v2504_v12, %v427_v21 }
 0x292   :  { %3594 = vmatprep.subr.bf16.mxu1 %v5483_v19  ;;  %3723 = vmatprep.subr.bf16.mxu0 %v5486_v22 }
 0x294   :  { %v2291_v27 = vpop.f32.mrb[4].mxu0 }
 0x295   :  { %v2293_v50 = vpop.f32.mrb[5].mxu0  ;;  %3595 = vmatpush1.bf16.msra.mxu1 %v5481_v24  ;;  %3724 = vmatpush1.bf16.msra.mxu0 %v5484_v25  ;;  %v4718_v33 = vadd.f32 %v2291_v27, %v432_v26 }
 0x296   :  { %v2295_v49 = vpop.f32.mrb[6].mxu0  ;;  %3596 = vmatprep.subr.bf16.mxu1 %v5489_v7  ;;  %3725 = vmatprep.subr.bf16.mxu0 %v5492_v4  ;;  %v4719_v42 = vadd.f32 %v2293_v50, %v436_v28 }
 0x297   :  { %v4720_v35 = vadd.f32 %v2295_v49, %v432_v26  ;;  %v2297_v36 = vpop.f32.mrb[7].mxu0 }
 0x298   :  { %v4721_v43 = vadd.f32 %v2297_v36, %v436_v28 }
 0x299   :  { %v2304_v45 = vpack.c.bf16 %v4720_v35, %v4718_v33  ;;  %3597 = vmatpush1.bf16.msra.mxu1 %v5487_v34  ;;  %3726 = vmatpush1.bf16.msra.mxu0 %v5490_v32 }
 0x29a   :  { %v2305_v46 = vpack.c.bf16 %v4721_v43, %v4719_v42  ;;  %3598 = vmatprep.subr.bf16.mxu1 %v5495_v37  ;;  %3727 = vmatprep.subr.bf16.mxu0 %v5498_v38 }
 0x29c   :  { %5551 = vtanh.bf16 %v2305_v46  ;;  %v5529_v46 = vld [vmem:[#allocation11 + $0xc8] sm:$0xff]  }
 0x29d   :  { %5553 = vtanh.bf16 %v2304_v45  ;;  %3599 = vmatpush1.bf16.msra.mxu1 %v5493_v30  ;;  %3728 = vmatpush1.bf16.msra.mxu0 %v5496_v47  ;;  %v5528_v45 = vld [vmem:[#allocation11 + $0x80] sm:$0xff]   ;;  %v5530_v30 = vld [vmem:[#allocation11 + $0x88] sm:$0xff]   ;;  %v5531_v47 = vld [vmem:[#allocation11 + $0xd0] sm:$0xff]  }
 0x29e   :  { %3600 = vmatprep.subr.bf16.mxu1 %v5501_v48  ;;  %3729 = vmatprep.subr.bf16.mxu0 %v5504_v51  ;;  %v5532_v48 = vld [vmem:[#allocation11 + $0x90] sm:$0xff]   ;;  %v5533_v51 = vld [vmem:[#allocation11 + $0xd8] sm:$0xff]  }
 0x2a1   :  { %3601 = vmatpush1.bf16.msra.mxu1 %v5499_v52  ;;  %3730 = vmatpush1.bf16.msra.mxu0 %v5502_v53  ;;  %v5534_v52 = vld [vmem:[#allocation11 + $0x98] sm:$0xff]   ;;  %v5535_v53 = vld [vmem:[#allocation11 + $0xe0] sm:$0xff]  }
 0x2a2   :  { %3602 = vmatprep.subr.bf16.mxu1 %v5507_v54  ;;  %3731 = vmatprep.subr.bf16.mxu0 %v5510_v55  ;;  %v5536_v54 = vld [vmem:[#allocation11 + $0xa0] sm:$0xff]   ;;  %v5537_v55 = vld [vmem:[#allocation11 + $0xe8] sm:$0xff]  }
 0x2a5   :  { %3603 = vmatpush1.bf16.msra.mxu1 %v5505_v56  ;;  %3732 = vmatpush1.bf16.msra.mxu0 %v5508_v57  ;;  %v5538_v56 = vld [vmem:[#allocation11 + $0xa8] sm:$0xff]   ;;  %v5539_v57 = vld [vmem:[#allocation11 + $0xf0] sm:$0xff]  }
 0x2a6   :  { %4662 = vmatprep.subr.bf16.mxu1 %v5511_v39  ;;  %v5540_v39 = vld [vmem:[#allocation11 + $0xb0] sm:$0xff]  }
 0x2a7   :  { %v5552_v59 = vpop.eup %5551 }
 0x2a8   :  { %v5554_v60 = vpop.eup %5553  ;;  %3604 = vmatprep.mubr.bf16.mxu1 %v5552_v59  ;;  %3733 = vmatprep.mubr.bf16.mxu0 %v5552_v59  ;;  %v5542_v59 = vld [vmem:[#allocation11 + $0xb8] sm:$0xff]  }
 0x2a9   :  { %3605 = vmatmul.mubr.bf16.vlgmr.msra.gmra.mrb[8].mxu1 %v5554_v60  ;;  %3734 = vmatmul.mubr.bf16.vlgmr.msra.gmra.mrb[8].mxu0 %v5554_v60 }
 0x2aa   :  { %4663 = vmatpush3.bf16.msra.mxu1 %v5512_v58  ;;  %v5541_v58 = vld [vmem:[#allocation11 + $0xf8] sm:$0xff]  }
 0x2ab   :  { %4664 = vmatprep.subr.bf16.mxu1 %v5513_v40 }
 0x2ae   :  { %4665 = vmatpush3.bf16.msra.mxu1 %v5514_v41 }
 0x2af   :  { %4666 = vmatprep.subr.bf16.mxu1 %v5515_v44 }
 0x2b2   :  { %4667 = vmatpush3.bf16.msra.mxu1 %v5516_v61 }
 0x2b3   :  { %4668 = vmatprep.subr.bf16.mxu1 %v5517_v62 }
 0x2b6   :  { %4669 = vmatpush3.bf16.msra.mxu1 %v5518_v63  ;;  %v4629_v63 = vld [vmem:[#allocation13] ss:$0 sm:$0xff] }
 0x2b7   :  { %4670 = vmatprep.subr.bf16.mxu1 %v5519_v0 }
 0x2ba   :  { %4671 = vmatpush3.bf16.msra.mxu1 %v5520_v1 }
 0x2bb   :  { %4672 = vmatprep.subr.bf16.mxu1 %v5521_v2 }
 0x2be   :  { %4673 = vmatpush3.bf16.msra.mxu1 %v5522_v3 }
 0x2bf   :  { %4674 = vmatprep.subr.bf16.mxu1 %v5523_v5 }
 0x2c2   :  { %4675 = vmatpush3.bf16.msra.mxu1 %v5524_v6 }
 0x2c3   :  { %4676 = vmatprep.subr.bf16.mxu1 %v5525_v8 }
 0x2c6   :  { %4677 = vmatpush3.bf16.msra.mxu1 %v5526_v9 }
 0x2c7   :  { %4684 = vmatprep.subr.bf16.mxu1 %v5527_v10 }
 0x37c   :  { %v3606_v17 = vpop.f32.mrb[8].mxu1  ;;  %v3735_v18 = vpop.f32.mrb[8].mxu0 }
 0x37d   :  { %v4722_v19 = vadd.f32 %v3606_v17, %v2509_v13  ;;  %v4726_v22 = vadd.f32 %v3735_v18, %v2517_v14  ;;  %v3608_v23 = vpop.f32.mrb[9].mxu1  ;;  %v3737_v24 = vpop.f32.mrb[9].mxu0 }
 0x37e   :  { %v4723_v25 = vadd.f32 %v3608_v23, %v2513_v15  ;;  %v4727_v26 = vadd.f32 %v3737_v24, %v2521_v16  ;;  %v3610_v7 = vpop.f32.mrb[10].mxu1  ;;  %v3739_v4 = vpop.f32.mrb[10].mxu0 }
 0x37f   :  { %v4724_v29 = vadd.f32 %v3610_v7, %v2509_v13  ;;  %v4728_v27 = vadd.f32 %v3739_v4, %v2517_v14  ;;  %v3612_v28 = vpop.f32.mrb[11].mxu1  ;;  %v3741_v20 = vpop.f32.mrb[11].mxu0  ;;  %v3744_v31 = vmax.f32 %v4722_v19, 0.0  ;;  %v3746_v34 = vmax.f32 %v4726_v22, 0.0 }
 0x380   :  { %v4725_v50 = vadd.f32 %v3612_v28, %v2513_v15  ;;  %v4729_v49 = vadd.f32 %v3741_v20, %v2521_v16  ;;  %v3745_v32 = vmax.f32 %v4723_v25, 0.0  ;;  %v3747_v33 = vmax.f32 %v4727_v26, 0.0 }
 0x381   :  { %v3748_v11 = vmax.f32 %v4724_v29, 0.0  ;;  %v3750_v21 = vmax.f32 %v4728_v27, 0.0 }
 0x382   :  { %v3749_v35 = vmax.f32 %v4725_v50, 0.0  ;;  %v3751_v36 = vmax.f32 %v4729_v49, 0.0 }
 0x383   :  { %v3752_v37 = vpack.c.bf16 %v3748_v11, %v3744_v31  ;;  %v3754_v38 = vpack.c.bf16 %v3750_v21, %v3746_v34 }
 0x384   :  { %v3753_v42 = vpack.c.bf16 %v3749_v35, %v3745_v32  ;;  %v3755_v43 = vpack.c.bf16 %v3751_v36, %v3747_v33 }
 0x386   :  { %4051 = vmatprep.mubr.bf16.mxu1 %v3753_v42 }
 0x387   :  { %4052 = vmatmul.mubr.bf16.vlgmr.msra.gmra.mrb[12].mxu1 %v3752_v37 }
 0x388   :  { %4685 = vmatpush3.bf16.msra.mxu1 %v5528_v45  ;;  %4092 = vmatprep.mubr.bf16.mxu1 %v3755_v43 }
 0x389   :  { %4686 = vmatprep.subr.bf16.mxu1 %v5529_v46 }
 0x38c   :  { %4687 = vmatpush3.bf16.msra.mxu1 %v5530_v30 }
 0x38d   :  { %4688 = vmatprep.subr.bf16.mxu1 %v5531_v47 }
 0x390   :  { %4689 = vmatpush3.bf16.msra.mxu1 %v5532_v48 }
 0x391   :  { %4690 = vmatprep.subr.bf16.mxu1 %v5533_v51 }
 0x394   :  { %4691 = vmatpush3.bf16.msra.mxu1 %v5534_v52 }
 0x395   :  { %4692 = vmatprep.subr.bf16.mxu1 %v5535_v53 }
 0x398   :  { %4693 = vmatpush3.bf16.msra.mxu1 %v5536_v54 }
 0x399   :  { %4694 = vmatprep.subr.bf16.mxu1 %v5537_v55 }
 0x39c   :  { %4695 = vmatpush3.bf16.msra.mxu1 %v5538_v56 }
 0x39d   :  { %4696 = vmatprep.subr.bf16.mxu1 %v5539_v57 }
 0x3a0   :  { %4697 = vmatpush3.bf16.msra.mxu1 %v5540_v39 }
 0x3a1   :  { %4698 = vmatprep.subr.bf16.mxu1 %v5541_v58 }
 0x3a4   :  { %4699 = vmatpush3.bf16.msra.mxu1 %v5542_v59 }
 0x3a7   :  { %4093 = vmatmul.mubr.bf16.vlgmr.msra.gmra.mrb[16].mxu1 %v3754_v38 }
 0x45a   :  { %v4678_v40 = vpop.f32.mrb[12].mxu1 }
 0x45b   :  { %v4679_v60 = vpop.f32.mrb[13].mxu1 }
 0x45c   :  { %v4680_v41 = vadd.f32 %v4679_v60, %v4678_v40  ;;  %v4681_v44 = vpop.f32.mrb[14].mxu1 }
 0x45d   :  { %v4682_v61 = vpop.f32.mrb[15].mxu1 }
 0x45e   :  { %v4683_v62 = vadd.f32 %v4682_v61, %v4681_v44  ;;  %v4054_v2 = vadd.f32 %v4680_v41, %v4629_v63 }
 0x460   :  { %v4057_v8 = vadd.f32 %v4683_v62, %v4629_v63 }
 0x47a   :  { %v4700_v0 = vpop.f32.mrb[16].mxu1 }
 0x47b   :  { %v4701_v1 = vpop.f32.mrb[17].mxu1 }
 0x47c   :  { %v4702_v3 = vadd.f32 %v4701_v1, %v4700_v0  ;;  %v4703_v5 = vpop.f32.mrb[18].mxu1 }
 0x47d   :  { %v4704_v6 = vpop.f32.mrb[19].mxu1 }
 0x47e   :  { %v4705_v9 = vadd.f32 %v4704_v6, %v4703_v5  ;;  %v4095_v10 = vadd.f32 %v4702_v3, %v4054_v2 }
 0x480   :  { %4101 = vmax.xlane.f32.xlu0 %v4095_v10  ;;  %v4098_v12 = vadd.f32 %v4705_v9, %v4057_v8 }
 0x484   :  { %4103 = vmax.xlane.f32.xlu0 %v4098_v12 }
 0x50d   :  { %v4102_v13 = vpop.xlane.xlu0 %4101 }
 0x50e   :  { %v4105_v14 = vsub.f32 %v4095_v10, %v4102_v13 }
 0x510   :  { %v4107_v15 = vmul.f32 1.442695, %v4105_v14 }
 0x511   :  { %v4104_v16 = vpop.xlane.xlu0 %4103 }
 0x512   :  { %v4106_v17 = vsub.f32 %v4098_v12, %v4104_v16  ;;  %5555 = vpow2.f32 %v4107_v15 }
 0x514   :  { %v4109_v18 = vmul.f32 1.442695, %v4106_v17 }
 0x516   :  { %5557 = vpow2.f32 %v4109_v18 }
 0x51c   :  { %v5556_v19 = vpop.eup %5555 }
 0x51d   :  { %4111 = vadd.xlane.f32.xlu1 %v5556_v19 }
 0x520   :  { %v5558_v22 = vpop.eup %5557 }
 0x521   :  { %4113 = vadd.xlane.f32.xlu1 %v5558_v22 }
 0x5aa   :  { %v4112_v23 = vpop.xlane.xlu1 %4111 }
 0x5ab   :  { %5559 = vlog2.f32 %v4112_v23 }
 0x5ae   :  { %v4114_v24 = vpop.xlane.xlu1 %4113 }
 0x5af   :  { %5561 = vlog2.f32 %v4114_v24 }
 0x5b5   :  { %v5560_v25 = vpop.eup %5559 }
 0x5b6   :  { %v4116_v26 = vmul.f32 0.6931472, %v5560_v25 }
 0x5b8   :  { %v4119_v7 = vsub.f32 %v4105_v14, %v4116_v26 }
 0x5b9   :  { %v5562_v4 = vpop.eup %5561 }
 0x5ba   :  { %4121 = vst [vmem:[#allocation14] sm:$0xff] %v4119_v7  ;;  %v4118_v29 = vmul.f32 0.6931472, %v5562_v4 }
 0x5bc   :  { %v4120_v27 = vsub.f32 %v4106_v17, %v4118_v29 }
 0x5be   :  { %4122 = vst [vmem:[#allocation14 + $0x8] sm:$0xff] %v4120_v27 }
 0x5bf   :  { %5732 = shalt.err (!%p5729_p4)
}
 0x5c0   :  { %s5733_s14 = scalar_lea.hbm %s5995_s7, 256 }
 0x5c1   :  { %p5734_p5 = scmp.ne.s32.totalorder %s5995_s7, %s5733_s14  ;;  %p5737_p6 = scmp.lt.u32.totalorder %s5733_s14, %s5995_s7 }
 0x5c3   :  { %p5739_p7 = pnand %p5737_p6, %p5734_p5 }
 0x5c5   :  { %5742 = shalt.err (!%p5739_p7)
}
 0x5c6   :  { %s5767_s22 = smov 128   ;;  %s5768_s24 = smov 8  }
 0x5c7   :  { %4134 = dma.vmem_to_hbm [thread:$0]  %s4129_s3, 256, %s5995_s7, [#allocation4], %s5767_s22, %s5767_s22, %s5768_s24  }
 0x5c8   :  { %5751 = dma.done.wait [#allocation4], 256  }
 0x5c9   :  { %5752 = vsyncadd [#allocation4], 4294967040 }
 0x5ca   :  { %4138 = vsyncpa [#allocation3], 1 }
 0x5cb   :  { %4139 = vsyncpa [#allocation6], 1 }
 0x5cc   :  { %4140 = vsyncpa [#allocation9], 1 }
 0x5cd   :  { %4141 = vsyncpa [#allocation12], 1 }
 0x5ce   :  { %4142 = vsyncpa [#allocation4], 1 }

// kernel: tpu_custom_call.1
= control target key start
LH: loop header
LB: loop body
LE: loop exit
PB: predicated region body
PF: predicated region fallthrough
CT: control target
= control target key end

     0   :  { %12 = vsyncpa [#allocation3], 0  ;;  %s5988_s0 = inlined_call_operand.hbm [shape: bf16[16,768], index: 0, kind: input, shape index: {}]   ;;  %s5989_s1 = inlined_call_operand.hbm [shape: bf16[768,768], index: 1, kind: input, shape index: {}]   ;;  %s5990_s2 = inlined_call_operand.hbm [shape: f32[1,768], index: 2, kind: input, shape index: {}]   ;;  %s5991_s3 = inlined_call_operand.hbm [shape: bf16[768,512], index: 3, kind: input, shape index: {}]   ;;  %s5992_s4 = inlined_call_operand.hbm [shape: f32[1,512], index: 4, kind: input, shape index: {}]   ;;  %s5993_s5 = inlined_call_operand.hbm [shape: bf16[512,128], index: 5, kind: input, shape index: {}]   ;;  %s5994_s6 = inlined_call_operand.hbm [shape: f32[1,128], index: 6, kind: input, shape index: {}]   ;;  %s5995_s7 = inlined_call_operand.hbm [shape: f32[16,128], index: 7, kind: output, shape index: {}]  }
   0x1   :  { %13 = vsyncpa [#allocation6], 0 }
   0x2   :  { %14 = vsyncpa [#allocation9], 0 }
   0x3   :  { %15 = vsyncpa [#allocation12], 0 }
   0x4   :  { %16 = vsyncpa [#allocation4], 0  ;;  %s5753_s24 = smov [#allocation5]   ;;  %s5754_s26 = smov [#allocation8]  }
   0x5   :  { %s34_s25 = sshll.u32 %s5753_s24, 4  ;;  %s56_s27 = sshll.u32 %s5754_s26, 4  ;;  %s35_s25 = int_to_ptr.vmem [resolvable:$true] %s34_s25  ;;  %s5809_s27 = int_to_ptr.vmem [resolvable:$true] %s56_s27 }
   0x6   :  { %s5567_s30 = scalar_lea.hbm %s5989_s1, 36864 }
   0x7   :  { %p5568_p0 = scmp.ne.s32.totalorder %s5989_s1, %s5567_s30  ;;  %p5571_p1 = scmp.lt.u32.totalorder %s5567_s30, %s5989_s1 }
   0x9   :  { %p5573_p2 = pnand %p5571_p1, %p5568_p0 }
   0xb   :  { %5576 = shalt.err (!%p5573_p2)
}
   0xc   :  { %s5577_s12 = scalar_lea.vmem %s35_s25, 36864  ;;  %p5582_p4 = scmp.lt.s32.totalorder %s35_s25, %s35_s25 }
   0xd   :  { %p5578_p3 = scmp.ne.s32.totalorder %s35_s25, %s5577_s12  ;;  %p5583_p5 = scmp.lt.s32.totalorder %s5577_s12, %s5577_s12 }
   0xf   :  { %p5584_p6 = por %p5583_p5, %p5582_p4 }
  0x11   :  { %p5585_p7 = pnand %p5584_p6, %p5578_p3 }
  0x13   :  { %5588 = shalt.err (!%p5585_p7)
}
  0x14   :  { %s5755_s13 = smov 384   ;;  %s5756_s14 = smov 24  }
  0x15   :  { %40 = dma.hbm_to_vmem [thread:$0]  %s5989_s1, 36864, %s35_s25, [#allocation6], %s5755_s13, %s5755_s13, %s5756_s14  }
  0x16   :  { %s5589_s19 = scalar_lea.hbm %s5991_s3, 24576 }
  0x17   :  { %p5590_p8 = scmp.ne.s32.totalorder %s5991_s3, %s5589_s19  ;;  %p5593_p9 = scmp.lt.u32.totalorder %s5589_s19, %s5991_s3 }
  0x19   :  { %p5595_p10 = pnand %p5593_p9, %p5590_p8 }
  0x1b   :  { %5598 = shalt.err (!%p5595_p10)
}
  0x1c   :  { %s5599_s24 = scalar_lea.vmem %s5809_s27, 24576  ;;  %p5604_p12 = scmp.lt.s32.totalorder %s5809_s27, %s5809_s27 }
  0x1d   :  { %p5600_p11 = scmp.ne.s32.totalorder %s5809_s27, %s5599_s24  ;;  %p5605_p13 = scmp.lt.s32.totalorder %s5599_s24, %s5599_s24 }
  0x1f   :  { %p5606_p0 = por %p5605_p13, %p5604_p12 }
  0x21   :  { %p5607_p1 = pnand %p5606_p0, %p5600_p11 }
  0x23   :  { %5610 = shalt.err (!%p5607_p1)
}
  0x24   :  { %s5757_s1 = smov 256   ;;  %s5758_s25 = smov 16  }
  0x25   :  { %62 = dma.hbm_to_vmem [thread:$0]  %s5991_s3, 24576, %s5809_s27, [#allocation9], %s5757_s1, %s5757_s1, %s5758_s25  }
  0x26   :  { %s5759_s29 = smov [#allocation11]   ;;  %s5611_s10 = scalar_lea.hbm %s5993_s5, 4096 }
  0x27   :  { %s78_s30 = sshll.u32 %s5759_s29, 4  ;;  %p5612_p2 = scmp.ne.s32.totalorder %s5993_s5, %s5611_s10  ;;  %s79_s30 = int_to_ptr.vmem [resolvable:$true] %s78_s30 }
  0x28   :  { %p5615_p3 = scmp.lt.u32.totalorder %s5611_s10, %s5993_s5 }
  0x2a   :  { %p5617_p4 = pnand %p5615_p3, %p5612_p2 }
  0x2c   :  { %5620 = shalt.err (!%p5617_p4)
}
  0x2d   :  { %s5621_s17 = scalar_lea.vmem %s79_s30, 4096  ;;  %p5626_p6 = scmp.lt.s32.totalorder %s79_s30, %s79_s30 }
  0x2e   :  { %p5622_p5 = scmp.ne.s32.totalorder %s79_s30, %s5621_s17  ;;  %p5627_p7 = scmp.lt.s32.totalorder %s5621_s17, %s5621_s17 }
  0x30   :  { %p5628_p8 = por %p5627_p7, %p5626_p6 }
  0x32   :  { %p5629_p9 = pnand %p5628_p8, %p5622_p5 }
  0x34   :  { %5632 = shalt.err (!%p5629_p9)
}
  0x35   :  { %s5760_s3 = smov 64   ;;  %s5761_s27 = smov 4  }
  0x36   :  { %84 = dma.hbm_to_vmem [thread:$0]  %s5993_s5, 4096, %s79_s30, [#allocation12], %s5760_s3, %s5760_s3, %s5761_s27  }
  0x37   :  { %s5762_s20 = smov [#allocation2]   ;;  %s5763_s22 = smov [#allocation7]  }
  0x38   :  { %s22_s21 = sshll.u32 %s5762_s20, 4  ;;  %s47_s23 = sshll.u32 %s5763_s22, 4  ;;  %s23_s21 = int_to_ptr.vmem [resolvable:$true] %s22_s21  ;;  %s48_s23 = int_to_ptr.vmem [resolvable:$true] %s47_s23 }
  0x39   :  { %s5633_s25 = scalar_lea.hbm %s5988_s0, 768 }
  0x3a   :  { %p5634_p10 = scmp.ne.s32.totalorder %s5988_s0, %s5633_s25  ;;  %p5637_p11 = scmp.lt.u32.totalorder %s5633_s25, %s5988_s0 }
  0x3c   :  { %p5639_p12 = pnand %p5637_p11, %p5634_p10 }
  0x3e   :  { %5642 = shalt.err (!%p5639_p12)
}
  0x3f   :  { %s5643_s5 = scalar_lea.vmem %s23_s21, 768  ;;  %p5648_p0 = scmp.lt.s32.totalorder %s23_s21, %s23_s21 }
  0x40   :  { %p5644_p13 = scmp.ne.s32.totalorder %s23_s21, %s5643_s5  ;;  %p5649_p1 = scmp.lt.s32.totalorder %s5643_s5, %s5643_s5 }
  0x42   :  { %p5650_p2 = por %p5649_p1, %p5648_p0 }
  0x44   :  { %p5651_p3 = pnand %p5650_p2, %p5644_p13 }
  0x46   :  { %5654 = shalt.err (!%p5651_p3)
}
  0x47   :  { %28 = dma.hbm_to_vmem [thread:$0]  %s5988_s0, 768, %s23_s21, [#allocation3], %s5755_s13, %s5755_s13, %s5756_s14  }
  0x48   :  { %s5655_s12 = scalar_lea.hbm %s5990_s2, 96 }
  0x49   :  { %p5656_p4 = scmp.ne.s32.totalorder %s5990_s2, %s5655_s12  ;;  %p5659_p5 = scmp.lt.u32.totalorder %s5655_s12, %s5990_s2 }
  0x4b   :  { %p5661_p6 = pnand %p5659_p5, %p5656_p4 }
  0x4d   :  { %5664 = shalt.err (!%p5661_p6)
}
  0x4e   :  { %s5665_s27 = scalar_lea.vmem %s48_s23, 96  ;;  %p5670_p8 = scmp.lt.s32.totalorder %s48_s23, %s48_s23 }
  0x4f   :  { %p5666_p7 = scmp.ne.s32.totalorder %s48_s23, %s5665_s27  ;;  %p5671_p9 = scmp.lt.s32.totalorder %s5665_s27, %s5665_s27 }
  0x51   :  { %p5672_p10 = por %p5671_p9, %p5670_p8 }
  0x53   :  { %p5673_p11 = pnand %p5672_p10, %p5666_p7 }
  0x55   :  { %5676 = shalt.err (!%p5673_p11)
}
  0x56   :  { %50 = dma.hbm_to_vmem [thread:$0]  %s5990_s2, 96, %s48_s23, [#allocation6]  }
  0x57   :  { %s5764_s14 = smov [#allocation10]   ;;  %s5765_s19 = smov [#allocation13]  }
  0x58   :  { %s69_s18 = sshll.u32 %s5764_s14, 4  ;;  %s91_s20 = sshll.u32 %s5765_s19, 4  ;;  %s70_s18 = int_to_ptr.vmem [resolvable:$true] %s69_s18  ;;  %s92_s20 = int_to_ptr.vmem [resolvable:$true] %s91_s20 }
  0x59   :  { %s5677_s24 = scalar_lea.hbm %s5992_s4, 64 }
  0x5a   :  { %p5678_p12 = scmp.ne.s32.totalorder %s5992_s4, %s5677_s24  ;;  %p5681_p13 = scmp.lt.u32.totalorder %s5677_s24, %s5992_s4 }
  0x5c   :  { %p5683_p0 = pnand %p5681_p13, %p5678_p12 }
  0x5e   :  { %5686 = shalt.err (!%p5683_p0)
}
  0x5f   :  { %s5687_s2 = scalar_lea.vmem %s70_s18, 64  ;;  %p5692_p2 = scmp.lt.s32.totalorder %s70_s18, %s70_s18 }
  0x60   :  { %p5688_p1 = scmp.ne.s32.totalorder %s70_s18, %s5687_s2  ;;  %p5693_p3 = scmp.lt.s32.totalorder %s5687_s2, %s5687_s2 }
  0x62   :  { %p5694_p4 = por %p5693_p3, %p5692_p2 }
  0x64   :  { %p5695_p5 = pnand %p5694_p4, %p5688_p1 }
  0x66   :  { %5698 = shalt.err (!%p5695_p5)
}
  0x67   :  { %72 = dma.hbm_to_vmem [thread:$0]  %s5992_s4, 64, %s70_s18, [#allocation9]  }
  0x68   :  { %s5699_s30 = scalar_lea.hbm %s5994_s6, 16 }
  0x69   :  { %p5700_p6 = scmp.ne.s32.totalorder %s5994_s6, %s5699_s30  ;;  %p5703_p7 = scmp.lt.u32.totalorder %s5699_s30, %s5994_s6 }
  0x6b   :  { %p5705_p8 = pnand %p5703_p7, %p5700_p6 }
  0x6d   :  { %5708 = shalt.err (!%p5705_p8)
}
  0x6e   :  { %s5709_s15 = scalar_lea.vmem %s92_s20, 16  ;;  %s5713_s16 = scalar_lea.vmem %s92_s20, 32 }
  0x6f   :  { %p5710_p9 = scmp.ne.s32.totalorder %s92_s20, %s5709_s15  ;;  %p5714_p10 = scmp.lt.s32.totalorder %s92_s20, %s92_s20 }
  0x70   :  { %p5715_p11 = scmp.lt.s32.totalorder %s5713_s16, %s5709_s15 }
  0x72   :  { %p5716_p12 = por %p5715_p11, %p5714_p10 }
  0x74   :  { %p5717_p13 = pnand %p5716_p12, %p5710_p9 }
  0x76   :  { %5720 = shalt.err (!%p5717_p13)
}
  0x77   :  { %94 = dma.hbm_to_vmem [thread:$0]  %s5994_s6, 16, %s92_s20, [#allocation12]  }
  0x78   :  { %5743 = dma.done.wait [#allocation3], 768  }
  0x79   :  { %5744 = vsyncadd [#allocation3], 4294966528 }
  0x7a   :  { %5745 = dma.done.wait [#allocation6], 36960  }
  0x7b   :  { %5746 = vsyncadd [#allocation6], 4294930336 }
  0x7c   :  { %5747 = dma.done.wait [#allocation9], 24640  }
  0x7d   :  { %5748 = vsyncadd [#allocation9], 4294942656 }
  0x7e   :  { %5749 = dma.done.wait [#allocation12], 4112  }
  0x7f   :  { %5750 = vsyncadd [#allocation12], 4294963184  ;;  %v4782_v0 = vld [vmem:[#allocation5 + $0x4] ss:$24 sps:$4 sm:$0xff]   ;;  %v4786_v2 = vld [vmem:[#allocation5] ss:$24 sps:$4 sm:$0xff]  }
  0x80   :  { %v4784_v1 = vld [vmem:[#allocation5 + $0x304] ss:$24 sps:$4 sm:$0xff]   ;;  %1913 = vmatprep.subr.bf16.mxu1 %v4782_v0  ;;  %v4787_v3 = vld [vmem:[#allocation5 + $0x300] ss:$24 sps:$4 sm:$0xff]   ;;  %v4788_v4 = vld [vmem:[#allocation5 + $0x34] ss:$24 sps:$4 sm:$0xff]  }
  0x81   :  { %1956 = vmatprep.subr.bf16.mxu0 %v4784_v1  ;;  %1914 = vmatpush1.bf16.msra.mxu1 %v4786_v2  ;;  %v4790_v5 = vld [vmem:[#allocation5 + $0x334] ss:$24 sps:$4 sm:$0xff]   ;;  %v4792_v6 = vld [vmem:[#allocation5 + $0x30] ss:$24 sps:$4 sm:$0xff]   ;;  %v4794_v8 = vld [vmem:[#allocation5 + $0x64] ss:$24 sps:$4 sm:$0xff]  }
  0x82   :  { %1957 = vmatpush1.bf16.msra.mxu0 %v4787_v3  ;;  %1915 = vmatprep.subr.bf16.mxu1 %v4788_v4  ;;  %v4793_v7 = vld [vmem:[#allocation5 + $0x330] ss:$24 sps:$4 sm:$0xff]   ;;  %v4796_v9 = vld [vmem:[#allocation5 + $0x364] ss:$24 sps:$4 sm:$0xff]   ;;  %v4798_v10 = vld [vmem:[#allocation5 + $0x60] ss:$24 sps:$4 sm:$0xff]  }
  0x83   :  { %1958 = vmatprep.subr.bf16.mxu0 %v4790_v5  ;;  %v4799_v11 = vld [vmem:[#allocation5 + $0x360] ss:$24 sps:$4 sm:$0xff]   ;;  %v4800_v12 = vld [vmem:[#allocation5 + $0x94] ss:$24 sps:$4 sm:$0xff]   ;;  %v4804_v14 = vld [vmem:[#allocation5 + $0x90] ss:$24 sps:$4 sm:$0xff]  }
  0x84   :  { %v4802_v13 = vld [vmem:[#allocation5 + $0x394] ss:$24 sps:$4 sm:$0xff]   ;;  %v4805_v15 = vld [vmem:[#allocation5 + $0x390] ss:$24 sps:$4 sm:$0xff]   ;;  %v4806_v16 = vld [vmem:[#allocation5 + $0xc4] ss:$24 sps:$4 sm:$0xff]  }
  0x85   :  { %1916 = vmatpush1.bf16.msra.mxu1 %v4792_v6  ;;  %v4808_v17 = vld [vmem:[#allocation5 + $0x3c4] ss:$24 sps:$4 sm:$0xff]   ;;  %v4810_v18 = vld [vmem:[#allocation5 + $0xc0] ss:$24 sps:$4 sm:$0xff]   ;;  %v4812_v20 = vld [vmem:[#allocation5 + $0xf4] ss:$24 sps:$4 sm:$0xff]  }
  0x86   :  { %1959 = vmatpush1.bf16.msra.mxu0 %v4793_v7  ;;  %1917 = vmatprep.subr.bf16.mxu1 %v4794_v8  ;;  %v4811_v19 = vld [vmem:[#allocation5 + $0x3c0] ss:$24 sps:$4 sm:$0xff]   ;;  %v4814_v21 = vld [vmem:[#allocation5 + $0x3f4] ss:$24 sps:$4 sm:$0xff]   ;;  %v4816_v22 = vld [vmem:[#allocation5 + $0xf0] ss:$24 sps:$4 sm:$0xff]  }
  0x87   :  { %1960 = vmatprep.subr.bf16.mxu0 %v4796_v9  ;;  %v4817_v23 = vld [vmem:[#allocation5 + $0x3f0] ss:$24 sps:$4 sm:$0xff]   ;;  %v4818_v24 = vld [vmem:[#allocation5 + $0x124] ss:$24 sps:$4 sm:$0xff]   ;;  %v4822_v26 = vld [vmem:[#allocation5 + $0x120] ss:$24 sps:$4 sm:$0xff]  }
  0x88   :  { %v4820_v25 = vld [vmem:[#allocation5 + $0x424] ss:$24 sps:$4 sm:$0xff]   ;;  %v4823_v27 = vld [vmem:[#allocation5 + $0x420] ss:$24 sps:$4 sm:$0xff]   ;;  %v4824_v28 = vld [vmem:[#allocation5 + $0x154] ss:$24 sps:$4 sm:$0xff]  }
  0x89   :  { %1918 = vmatpush1.bf16.msra.mxu1 %v4798_v10  ;;  %v4826_v29 = vld [vmem:[#allocation5 + $0x454] ss:$24 sps:$4 sm:$0xff]   ;;  %v4828_v30 = vld [vmem:[#allocation5 + $0x150] ss:$24 sps:$4 sm:$0xff]   ;;  %v4830_v32 = vld [vmem:[#allocation5 + $0x184] ss:$24 sps:$4 sm:$0xff]  }
  0x8a   :  { %1961 = vmatpush1.bf16.msra.mxu0 %v4799_v11  ;;  %1919 = vmatprep.subr.bf16.mxu1 %v4800_v12  ;;  %v4829_v31 = vld [vmem:[#allocation5 + $0x450] ss:$24 sps:$4 sm:$0xff]   ;;  %v4832_v33 = vld [vmem:[#allocation5 + $0x484] ss:$24 sps:$4 sm:$0xff]   ;;  %v4834_v34 = vld [vmem:[#allocation5 + $0x180] ss:$24 sps:$4 sm:$0xff]  }
  0x8b   :  { %1962 = vmatprep.subr.bf16.mxu0 %v4802_v13  ;;  %v4835_v35 = vld [vmem:[#allocation5 + $0x480] ss:$24 sps:$4 sm:$0xff]   ;;  %v4836_v36 = vld [vmem:[#allocation5 + $0x1b4] ss:$24 sps:$4 sm:$0xff]   ;;  %v4840_v38 = vld [vmem:[#allocation5 + $0x1b0] ss:$24 sps:$4 sm:$0xff]  }
  0x8c   :  { %v4838_v37 = vld [vmem:[#allocation5 + $0x4b4] ss:$24 sps:$4 sm:$0xff]   ;;  %v4841_v39 = vld [vmem:[#allocation5 + $0x4b0] ss:$24 sps:$4 sm:$0xff]   ;;  %v4842_v40 = vld [vmem:[#allocation5 + $0x1e4] ss:$24 sps:$4 sm:$0xff]  }
  0x8d   :  { %1920 = vmatpush1.bf16.msra.mxu1 %v4804_v14  ;;  %v4844_v41 = vld [vmem:[#allocation5 + $0x4e4] ss:$24 sps:$4 sm:$0xff]   ;;  %v4846_v42 = vld [vmem:[#allocation5 + $0x1e0] ss:$24 sps:$4 sm:$0xff]   ;;  %v4848_v44 = vld [vmem:[#allocation5 + $0x214] ss:$24 sps:$4 sm:$0xff]  }
  0x8e   :  { %1963 = vmatpush1.bf16.msra.mxu0 %v4805_v15  ;;  %1921 = vmatprep.subr.bf16.mxu1 %v4806_v16  ;;  %v4847_v43 = vld [vmem:[#allocation5 + $0x4e0] ss:$24 sps:$4 sm:$0xff]   ;;  %v4850_v45 = vld [vmem:[#allocation5 + $0x514] ss:$24 sps:$4 sm:$0xff]   ;;  %v4852_v46 = vld [vmem:[#allocation5 + $0x210] ss:$24 sps:$4 sm:$0xff]  }
  0x8f   :  { %1964 = vmatprep.subr.bf16.mxu0 %v4808_v17  ;;  %v4853_v47 = vld [vmem:[#allocation5 + $0x510] ss:$24 sps:$4 sm:$0xff]   ;;  %v4854_v48 = vld [vmem:[#allocation5 + $0x244] ss:$24 sps:$4 sm:$0xff]   ;;  %v5906_v49 = vld [vmem:[#allocation2 + $0x4] ss:$24 sps:$4 sm:$0xff]  }
  0x90   :  { %v5908_v50 = vld [vmem:[#allocation2 + $0xc] ss:$24 sps:$4 sm:$0xff]   ;;  %1945 = vmatprep.mubr.bf16.mxu1 %v5906_v49  ;;  %v4858_v52 = vld [vmem:[#allocation5 + $0x240] ss:$24 sps:$4 sm:$0xff]   ;;  %v4864_v56 = vld [vmem:[#allocation5 + $0x270] ss:$24 sps:$4 sm:$0xff]  }
  0x91   :  { %1922 = vmatpush1.bf16.msra.mxu1 %v4810_v18  ;;  %v4856_v51 = vld [vmem:[#allocation5 + $0x544] ss:$24 sps:$4 sm:$0xff]   ;;  %1988 = vmatprep.mubr.bf16.mxu0 %v5908_v50  ;;  %v4859_v53 = vld [vmem:[#allocation5 + $0x540] ss:$24 sps:$4 sm:$0xff]   ;;  %v4860_v54 = vld [vmem:[#allocation5 + $0x274] ss:$24 sps:$4 sm:$0xff]  }
  0x92   :  { %1965 = vmatpush1.bf16.msra.mxu0 %v4811_v19  ;;  %1923 = vmatprep.subr.bf16.mxu1 %v4812_v20  ;;  %v4862_v55 = vld [vmem:[#allocation5 + $0x574] ss:$24 sps:$4 sm:$0xff]   ;;  %v4865_v57 = vld [vmem:[#allocation5 + $0x570] ss:$24 sps:$4 sm:$0xff]   ;;  %v4866_v58 = vld [vmem:[#allocation5 + $0x2a4] ss:$24 sps:$4 sm:$0xff]  }
  0x93   :  { %1966 = vmatprep.subr.bf16.mxu0 %v4814_v21  ;;  %v4868_v59 = vld [vmem:[#allocation5 + $0x5a4] ss:$24 sps:$4 sm:$0xff]   ;;  %v4870_v60 = vld [vmem:[#allocation5 + $0x2a0] ss:$24 sps:$4 sm:$0xff]   ;;  %v4872_v62 = vld [vmem:[#allocation5 + $0x2d4] ss:$24 sps:$4 sm:$0xff]  }
  0x94   :  { %v4871_v61 = vld [vmem:[#allocation5 + $0x5a0] ss:$24 sps:$4 sm:$0xff]   ;;  %v4874_v63 = vld [vmem:[#allocation5 + $0x5d4] ss:$24 sps:$4 sm:$0xff]   ;;  %v4876_v0 = vld [vmem:[#allocation5 + $0x2d0] ss:$24 sps:$4 sm:$0xff]  }
  0x95   :  { %1924 = vmatpush1.bf16.msra.mxu1 %v4816_v22  ;;  %v4877_v1 = vld [vmem:[#allocation5 + $0x5d0] ss:$24 sps:$4 sm:$0xff]   ;;  %v4885_v2 = vld [vmem:[#allocation5 + $0x604] ss:$24 sps:$4 sm:$0xff]   ;;  %v4883_v5 = vld [vmem:[#allocation5 + $0x600] ss:$24 sps:$4 sm:$0xff]  }
  0x96   :  { %1967 = vmatpush1.bf16.msra.mxu0 %v4817_v23  ;;  %1925 = vmatprep.subr.bf16.mxu1 %v4818_v24  ;;  %v4888_v3 = vld [vmem:[#allocation5 + $0xc] ss:$24 sps:$4 sm:$0xff]   ;;  %v5912_v4 = vld [vmem:[#allocation2] ss:$24 sps:$4 sm:$0xff]   ;;  %v4895_v9 = vld [vmem:[#allocation5 + $0x3c] ss:$24 sps:$4 sm:$0xff]  }
  0x97   :  { %1968 = vmatprep.subr.bf16.mxu0 %v4820_v25  ;;  %v4886_v6 = vld [vmem:[#allocation5 + $0x8] ss:$24 sps:$4 sm:$0xff]   ;;  %v5914_v7 = vld [vmem:[#allocation2 + $0x8] ss:$24 sps:$4 sm:$0xff]   ;;  %v4892_v8 = vld [vmem:[#allocation5 + $0x634] ss:$24 sps:$4 sm:$0xff]  }
  0x98   :  { %v4890_v10 = vld [vmem:[#allocation5 + $0x630] ss:$24 sps:$4 sm:$0xff]   ;;  %v4898_v12 = vld [vmem:[#allocation5 + $0x664] ss:$24 sps:$4 sm:$0xff]   ;;  %v4896_v14 = vld [vmem:[#allocation5 + $0x660] ss:$24 sps:$4 sm:$0xff]  }
  0x99   :  { %1926 = vmatpush1.bf16.msra.mxu1 %v4822_v26  ;;  %v4893_v11 = vld [vmem:[#allocation5 + $0x38] ss:$24 sps:$4 sm:$0xff]   ;;  %v4901_v13 = vld [vmem:[#allocation5 + $0x6c] ss:$24 sps:$4 sm:$0xff]   ;;  %v4899_v15 = vld [vmem:[#allocation5 + $0x68] ss:$24 sps:$4 sm:$0xff]  }
  0x9a   :  { %1969 = vmatpush1.bf16.msra.mxu0 %v4823_v27  ;;  %1927 = vmatprep.subr.bf16.mxu1 %v4824_v28  ;;  %v4904_v16 = vld [vmem:[#allocation5 + $0x694] ss:$24 sps:$4 sm:$0xff]   ;;  %v4902_v18 = vld [vmem:[#allocation5 + $0x690] ss:$24 sps:$4 sm:$0xff]   ;;  %v4910_v20 = vld [vmem:[#allocation5 + $0x6c4] ss:$24 sps:$4 sm:$0xff]  }
  0x9b   :  { %1970 = vmatprep.subr.bf16.mxu0 %v4826_v29  ;;  %v4907_v17 = vld [vmem:[#allocation5 + $0x9c] ss:$24 sps:$4 sm:$0xff]   ;;  %v4905_v19 = vld [vmem:[#allocation5 + $0x98] ss:$24 sps:$4 sm:$0xff]   ;;  %v4913_v21 = vld [vmem:[#allocation5 + $0xcc] ss:$24 sps:$4 sm:$0xff]  }
  0x9c   :  { %v4908_v22 = vld [vmem:[#allocation5 + $0x6c0] ss:$24 sps:$4 sm:$0xff]   ;;  %v4916_v24 = vld [vmem:[#allocation5 + $0x6f4] ss:$24 sps:$4 sm:$0xff]   ;;  %v4914_v26 = vld [vmem:[#allocation5 + $0x6f0] ss:$24 sps:$4 sm:$0xff]  }
  0x9d   :  { %1928 = vmatpush1.bf16.msra.mxu1 %v4828_v30  ;;  %v4911_v23 = vld [vmem:[#allocation5 + $0xc8] ss:$24 sps:$4 sm:$0xff]   ;;  %v4919_v25 = vld [vmem:[#allocation5 + $0xfc] ss:$24 sps:$4 sm:$0xff]   ;;  %v4917_v27 = vld [vmem:[#allocation5 + $0xf8] ss:$24 sps:$4 sm:$0xff]  }
  0x9e   :  { %1971 = vmatpush1.bf16.msra.mxu0 %v4829_v31  ;;  %1929 = vmatprep.subr.bf16.mxu1 %v4830_v32  ;;  %v4922_v28 = vld [vmem:[#allocation5 + $0x724] ss:$24 sps:$4 sm:$0xff]   ;;  %v4920_v30 = vld [vmem:[#allocation5 + $0x720] ss:$24 sps:$4 sm:$0xff]   ;;  %v4928_v32 = vld [vmem:[#allocation5 + $0x754] ss:$24 sps:$4 sm:$0xff]  }
  0x9f   :  { %1972 = vmatprep.subr.bf16.mxu0 %v4832_v33  ;;  %v4925_v29 = vld [vmem:[#allocation5 + $0x12c] ss:$24 sps:$4 sm:$0xff]   ;;  %v4923_v31 = vld [vmem:[#allocation5 + $0x128] ss:$24 sps:$4 sm:$0xff]   ;;  %v4931_v33 = vld [vmem:[#allocation5 + $0x15c] ss:$24 sps:$4 sm:$0xff]  }
  0xa0   :  { %s5766_s6 = smov [#allocation14]  }
  0xa1   :  { %1930 = vmatpush1.bf16.msra.mxu1 %v4834_v34  ;;  %v5919_v34 = vld [vmem:[#allocation2 + $0x14] ss:$24 sps:$4 sm:$0xff]   ;;  %s4128_s3 = sshll.u32 %s5766_s6, 4  ;;  %s4129_s3 = int_to_ptr.vmem [resolvable:$true] %s4128_s3 }
  0xa2   :  { %1973 = vmatpush1.bf16.msra.mxu0 %v4835_v35  ;;  %1931 = vmatprep.subr.bf16.mxu1 %v4836_v36  ;;  %v4926_v35 = vld [vmem:[#allocation5 + $0x750] ss:$24 sps:$4 sm:$0xff]   ;;  %s5721_s27 = scalar_lea.vmem %s4129_s3, 256  ;;  %p5726_p1 = scmp.lt.s32.totalorder %s4129_s3, %s4129_s3 }
  0xa3   :  { %1974 = vmatprep.subr.bf16.mxu0 %v4838_v37  ;;  %v4929_v36 = vld [vmem:[#allocation5 + $0x158] ss:$24 sps:$4 sm:$0xff]   ;;  %v4934_v37 = vld [vmem:[#allocation5 + $0x784] ss:$24 sps:$4 sm:$0xff]   ;;  %p5722_p0 = scmp.ne.s32.totalorder %s4129_s3, %s5721_s27  ;;  %p5727_p2 = scmp.lt.s32.totalorder %s5721_s27, %s5721_s27 }
  0xa5   :  { %1932 = vmatpush1.bf16.msra.mxu1 %v4840_v38  ;;  %v4937_v38 = vld [vmem:[#allocation5 + $0x18c] ss:$24 sps:$4 sm:$0xff]   ;;  %p5728_p3 = por %p5727_p2, %p5726_p1 }
  0xa6   :  { %1975 = vmatpush1.bf16.msra.mxu0 %v4841_v39  ;;  %1933 = vmatprep.subr.bf16.mxu1 %v4842_v40  ;;  %v4932_v39 = vld [vmem:[#allocation5 + $0x780] ss:$24 sps:$4 sm:$0xff]  }
  0xa7   :  { %1976 = vmatprep.subr.bf16.mxu0 %v4844_v41  ;;  %v4935_v40 = vld [vmem:[#allocation5 + $0x188] ss:$24 sps:$4 sm:$0xff]   ;;  %v4940_v41 = vld [vmem:[#allocation5 + $0x7b4] ss:$24 sps:$4 sm:$0xff]   ;;  %p5729_p4 = pnand %p5728_p3, %p5722_p0 }
  0xa9   :  { %1934 = vmatpush1.bf16.msra.mxu1 %v4846_v42  ;;  %v4943_v42 = vld [vmem:[#allocation5 + $0x1bc] ss:$24 sps:$4 sm:$0xff]  }
  0xaa   :  { %1977 = vmatpush1.bf16.msra.mxu0 %v4847_v43  ;;  %1935 = vmatprep.subr.bf16.mxu1 %v4848_v44  ;;  %v4938_v43 = vld [vmem:[#allocation5 + $0x7b0] ss:$24 sps:$4 sm:$0xff]  }
  0xab   :  { %1978 = vmatprep.subr.bf16.mxu0 %v4850_v45  ;;  %v4941_v44 = vld [vmem:[#allocation5 + $0x1b8] ss:$24 sps:$4 sm:$0xff]   ;;  %v4946_v45 = vld [vmem:[#allocation5 + $0x7e4] ss:$24 sps:$4 sm:$0xff]  }
  0xad   :  { %1936 = vmatpush1.bf16.msra.mxu1 %v4852_v46  ;;  %v4949_v46 = vld [vmem:[#allocation5 + $0x1ec] ss:$24 sps:$4 sm:$0xff]  }
  0xae   :  { %1979 = vmatpush1.bf16.msra.mxu0 %v4853_v47  ;;  %1937 = vmatprep.subr.bf16.mxu1 %v4854_v48  ;;  %v4944_v47 = vld [vmem:[#allocation5 + $0x7e0] ss:$24 sps:$4 sm:$0xff]  }
  0xaf   :  { %1980 = vmatprep.subr.bf16.mxu0 %v4856_v51  ;;  %v4947_v48 = vld [vmem:[#allocation5 + $0x1e8] ss:$24 sps:$4 sm:$0xff]   ;;  %v4952_v51 = vld [vmem:[#allocation5 + $0x814] ss:$24 sps:$4 sm:$0xff]  }
  0xb1   :  { %1938 = vmatpush1.bf16.msra.mxu1 %v4858_v52  ;;  %v4955_v52 = vld [vmem:[#allocation5 + $0x21c] ss:$24 sps:$4 sm:$0xff]  }
  0xb2   :  { %1981 = vmatpush1.bf16.msra.mxu0 %v4859_v53  ;;  %1939 = vmatprep.subr.bf16.mxu1 %v4860_v54  ;;  %v4950_v53 = vld [vmem:[#allocation5 + $0x810] ss:$24 sps:$4 sm:$0xff]  }
  0xb3   :  { %1982 = vmatprep.subr.bf16.mxu0 %v4862_v55  ;;  %v4953_v54 = vld [vmem:[#allocation5 + $0x218] ss:$24 sps:$4 sm:$0xff]   ;;  %v4958_v55 = vld [vmem:[#allocation5 + $0x844] ss:$24 sps:$4 sm:$0xff]  }
  0xb5   :  { %1940 = vmatpush1.bf16.msra.mxu1 %v4864_v56  ;;  %v4961_v56 = vld [vmem:[#allocation5 + $0x24c] ss:$24 sps:$4 sm:$0xff]  }
  0xb6   :  { %1983 = vmatpush1.bf16.msra.mxu0 %v4865_v57  ;;  %1941 = vmatprep.subr.bf16.mxu1 %v4866_v58  ;;  %v4956_v57 = vld [vmem:[#allocation5 + $0x840] ss:$24 sps:$4 sm:$0xff]  }
  0xb7   :  { %1984 = vmatprep.subr.bf16.mxu0 %v4868_v59  ;;  %v4959_v58 = vld [vmem:[#allocation5 + $0x248] ss:$24 sps:$4 sm:$0xff]   ;;  %v4964_v59 = vld [vmem:[#allocation5 + $0x874] ss:$24 sps:$4 sm:$0xff]  }
  0xb9   :  { %1942 = vmatpush1.bf16.msra.mxu1 %v4870_v60  ;;  %v4967_v60 = vld [vmem:[#allocation5 + $0x27c] ss:$24 sps:$4 sm:$0xff]  }
  0xba   :  { %1985 = vmatpush1.bf16.msra.mxu0 %v4871_v61  ;;  %1943 = vmatprep.subr.bf16.mxu1 %v4872_v62  ;;  %v4962_v61 = vld [vmem:[#allocation5 + $0x870] ss:$24 sps:$4 sm:$0xff]  }
  0xbb   :  { %1986 = vmatprep.subr.bf16.mxu0 %v4874_v63  ;;  %v4965_v62 = vld [vmem:[#allocation5 + $0x278] ss:$24 sps:$4 sm:$0xff]   ;;  %v4970_v63 = vld [vmem:[#allocation5 + $0x8a4] ss:$24 sps:$4 sm:$0xff]  }
  0xbd   :  { %1944 = vmatpush1.bf16.msra.mxu1 %v4876_v0  ;;  %v4973_v0 = vld [vmem:[#allocation5 + $0x2ac] ss:$24 sps:$4 sm:$0xff]  }
  0xbe   :  { %1987 = vmatpush1.bf16.msra.mxu0 %v4877_v1  ;;  %2042 = vmatprep.subr.bf16.mxu1 %v4888_v3  ;;  %v4968_v1 = vld [vmem:[#allocation5 + $0x8a0] ss:$24 sps:$4 sm:$0xff]   ;;  %v4976_v3 = vld [vmem:[#allocation5 + $0x8d4] ss:$24 sps:$4 sm:$0xff]  }
  0xbf   :  { %1999 = vmatprep.subr.bf16.mxu0 %v4885_v2  ;;  %v4971_v2 = vld [vmem:[#allocation5 + $0x2a8] ss:$24 sps:$4 sm:$0xff]  }
  0xc0   :  { %1946 = vmatmul.mubr.bf16.vlgmr.msra.gmra.mrb[0].mxu1 %v5912_v4 }
  0xc1   :  { %1989 = vmatmul.mubr.bf16.vlgmr.msra.gmra.mrb[0].mxu0 %v5914_v7  ;;  %2043 = vmatpush1.bf16.msra.mxu1 %v4886_v6  ;;  %v4974_v6 = vld [vmem:[#allocation5 + $0x8d0] ss:$24 sps:$4 sm:$0xff]  }
  0xc2   :  { %2000 = vmatpush1.bf16.msra.mxu0 %v4883_v5  ;;  %2044 = vmatprep.subr.bf16.mxu1 %v4895_v9  ;;  %v4979_v5 = vld [vmem:[#allocation5 + $0x2dc] ss:$24 sps:$4 sm:$0xff]   ;;  %v4985_v9 = vld [vmem:[#allocation5 + $0x30c] ss:$24 sps:$4 sm:$0xff]  }
  0xc3   :  { %2001 = vmatprep.subr.bf16.mxu0 %v4892_v8  ;;  %2074 = vmatprep.mubr.bf16.mxu1 %v5906_v49  ;;  %v4977_v8 = vld [vmem:[#allocation5 + $0x2d8] ss:$24 sps:$4 sm:$0xff]  }
  0xc4   :  { %2031 = vmatprep.mubr.bf16.mxu0 %v5919_v34 }
  0xc5   :  { %2045 = vmatpush1.bf16.msra.mxu1 %v4893_v11  ;;  %v5922_v11 = vld [vmem:[#allocation2 + $0x10] ss:$24 sps:$4 sm:$0xff]  }
  0xc6   :  { %2002 = vmatpush1.bf16.msra.mxu0 %v4890_v10  ;;  %2046 = vmatprep.subr.bf16.mxu1 %v4901_v13  ;;  %v4988_v10 = vld [vmem:[#allocation5 + $0x14] ss:$24 sps:$4 sm:$0xff]   ;;  %v4986_v13 = vld [vmem:[#allocation5 + $0x10] ss:$24 sps:$4 sm:$0xff]  }
  0xc7   :  { %2003 = vmatprep.subr.bf16.mxu0 %v4898_v12  ;;  %v4983_v12 = vld [vmem:[#allocation5 + $0x308] ss:$24 sps:$4 sm:$0xff]  }
  0xc9   :  { %2047 = vmatpush1.bf16.msra.mxu1 %v4899_v15  ;;  %v4994_v15 = vld [vmem:[#allocation5 + $0x44] ss:$24 sps:$4 sm:$0xff]  }
  0xca   :  { %2004 = vmatpush1.bf16.msra.mxu0 %v4896_v14  ;;  %2048 = vmatprep.subr.bf16.mxu1 %v4907_v17  ;;  %v4991_v14 = vld [vmem:[#allocation5 + $0x33c] ss:$24 sps:$4 sm:$0xff]   ;;  %v4992_v17 = vld [vmem:[#allocation5 + $0x40] ss:$24 sps:$4 sm:$0xff]  }
  0xcb   :  { %2005 = vmatprep.subr.bf16.mxu0 %v4904_v16  ;;  %v4989_v16 = vld [vmem:[#allocation5 + $0x338] ss:$24 sps:$4 sm:$0xff]  }
  0xcd   :  { %2049 = vmatpush1.bf16.msra.mxu1 %v4905_v19  ;;  %v5000_v19 = vld [vmem:[#allocation5 + $0x74] ss:$24 sps:$4 sm:$0xff]  }
  0xce   :  { %2006 = vmatpush1.bf16.msra.mxu0 %v4902_v18  ;;  %2050 = vmatprep.subr.bf16.mxu1 %v4913_v21  ;;  %v4997_v18 = vld [vmem:[#allocation5 + $0x36c] ss:$24 sps:$4 sm:$0xff]   ;;  %v4998_v21 = vld [vmem:[#allocation5 + $0x70] ss:$24 sps:$4 sm:$0xff]  }
  0xcf   :  { %2007 = vmatprep.subr.bf16.mxu0 %v4910_v20  ;;  %v4995_v20 = vld [vmem:[#allocation5 + $0x368] ss:$24 sps:$4 sm:$0xff]  }
  0xd1   :  { %2051 = vmatpush1.bf16.msra.mxu1 %v4911_v23  ;;  %v5006_v23 = vld [vmem:[#allocation5 + $0xa4] ss:$24 sps:$4 sm:$0xff]  }
  0xd2   :  { %2008 = vmatpush1.bf16.msra.mxu0 %v4908_v22  ;;  %2052 = vmatprep.subr.bf16.mxu1 %v4919_v25  ;;  %v5003_v22 = vld [vmem:[#allocation5 + $0x39c] ss:$24 sps:$4 sm:$0xff]   ;;  %v5004_v25 = vld [vmem:[#allocation5 + $0xa0] ss:$24 sps:$4 sm:$0xff]  }
  0xd3   :  { %2009 = vmatprep.subr.bf16.mxu0 %v4916_v24  ;;  %v5001_v24 = vld [vmem:[#allocation5 + $0x398] ss:$24 sps:$4 sm:$0xff]  }
  0xd5   :  { %2053 = vmatpush1.bf16.msra.mxu1 %v4917_v27  ;;  %v5012_v27 = vld [vmem:[#allocation5 + $0xd4] ss:$24 sps:$4 sm:$0xff]  }
  0xd6   :  { %2010 = vmatpush1.bf16.msra.mxu0 %v4914_v26  ;;  %2054 = vmatprep.subr.bf16.mxu1 %v4925_v29  ;;  %v5009_v26 = vld [vmem:[#allocation5 + $0x3cc] ss:$24 sps:$4 sm:$0xff]  }
  0xd7   :  { %2011 = vmatprep.subr.bf16.mxu0 %v4922_v28  ;;  %v5007_v28 = vld [vmem:[#allocation5 + $0x3c8] ss:$24 sps:$4 sm:$0xff]   ;;  %v5018_v29 = vld [vmem:[#allocation5 + $0x104] ss:$24 sps:$4 sm:$0xff]  }
  0xd9   :  { %2055 = vmatpush1.bf16.msra.mxu1 %v4923_v31  ;;  %v5016_v31 = vld [vmem:[#allocation5 + $0x100] ss:$24 sps:$4 sm:$0xff]  }
  0xda   :  { %2012 = vmatpush1.bf16.msra.mxu0 %v4920_v30  ;;  %2056 = vmatprep.subr.bf16.mxu1 %v4931_v33  ;;  %v5013_v30 = vld [vmem:[#allocation5 + $0x3f8] ss:$24 sps:$4 sm:$0xff]   ;;  %v5024_v33 = vld [vmem:[#allocation5 + $0x134] ss:$24 sps:$4 sm:$0xff]  }
  0xdb   :  { %2013 = vmatprep.subr.bf16.mxu0 %v4928_v32  ;;  %v5021_v32 = vld [vmem:[#allocation5 + $0x42c] ss:$24 sps:$4 sm:$0xff]  }
  0xdd   :  { %2057 = vmatpush1.bf16.msra.mxu1 %v4929_v36  ;;  %v5022_v36 = vld [vmem:[#allocation5 + $0x130] ss:$24 sps:$4 sm:$0xff]  }
  0xde   :  { %2014 = vmatpush1.bf16.msra.mxu0 %v4926_v35  ;;  %2058 = vmatprep.subr.bf16.mxu1 %v4937_v38  ;;  %v5019_v35 = vld [vmem:[#allocation5 + $0x428] ss:$24 sps:$4 sm:$0xff]   ;;  %v5030_v38 = vld [vmem:[#allocation5 + $0x164] ss:$24 sps:$4 sm:$0xff]  }
  0xdf   :  { %2015 = vmatprep.subr.bf16.mxu0 %v4934_v37  ;;  %v5027_v37 = vld [vmem:[#allocation5 + $0x45c] ss:$24 sps:$4 sm:$0xff]  }
  0xe1   :  { %2059 = vmatpush1.bf16.msra.mxu1 %v4935_v40  ;;  %v5028_v40 = vld [vmem:[#allocation5 + $0x160] ss:$24 sps:$4 sm:$0xff]  }
  0xe2   :  { %2016 = vmatpush1.bf16.msra.mxu0 %v4932_v39  ;;  %2060 = vmatprep.subr.bf16.mxu1 %v4943_v42  ;;  %v5025_v39 = vld [vmem:[#allocation5 + $0x458] ss:$24 sps:$4 sm:$0xff]   ;;  %v5036_v42 = vld [vmem:[#allocation5 + $0x194] ss:$24 sps:$4 sm:$0xff]  }
  0xe3   :  { %2017 = vmatprep.subr.bf16.mxu0 %v4940_v41  ;;  %v5033_v41 = vld [vmem:[#allocation5 + $0x48c] ss:$24 sps:$4 sm:$0xff]  }
  0xe5   :  { %2061 = vmatpush1.bf16.msra.mxu1 %v4941_v44  ;;  %v5034_v44 = vld [vmem:[#allocation5 + $0x190] ss:$24 sps:$4 sm:$0xff]  }
  0xe6   :  { %2018 = vmatpush1.bf16.msra.mxu0 %v4938_v43  ;;  %2062 = vmatprep.subr.bf16.mxu1 %v4949_v46  ;;  %v5031_v43 = vld [vmem:[#allocation5 + $0x488] ss:$24 sps:$4 sm:$0xff]   ;;  %v5042_v46 = vld [vmem:[#allocation5 + $0x1c4] ss:$24 sps:$4 sm:$0xff]  }
  0xe7   :  { %2019 = vmatprep.subr.bf16.mxu0 %v4946_v45  ;;  %v5039_v45 = vld [vmem:[#allocation5 + $0x4bc] ss:$24 sps:$4 sm:$0xff]  }
  0xe9   :  { %2063 = vmatpush1.bf16.msra.mxu1 %v4947_v48  ;;  %v5040_v48 = vld [vmem:[#allocation5 + $0x1c0] ss:$24 sps:$4 sm:$0xff]  }
  0xea   :  { %2020 = vmatpush1.bf16.msra.mxu0 %v4944_v47  ;;  %2064 = vmatprep.subr.bf16.mxu1 %v4955_v52  ;;  %v5037_v47 = vld [vmem:[#allocation5 + $0x4b8] ss:$24 sps:$4 sm:$0xff]   ;;  %v5048_v52 = vld [vmem:[#allocation5 + $0x1f4] ss:$24 sps:$4 sm:$0xff]  }
  0xeb   :  { %2021 = vmatprep.subr.bf16.mxu0 %v4952_v51  ;;  %v5045_v51 = vld [vmem:[#allocation5 + $0x4ec] ss:$24 sps:$4 sm:$0xff]  }
  0xed   :  { %2065 = vmatpush1.bf16.msra.mxu1 %v4953_v54  ;;  %v5046_v54 = vld [vmem:[#allocation5 + $0x1f0] ss:$24 sps:$4 sm:$0xff]  }
  0xee   :  { %2022 = vmatpush1.bf16.msra.mxu0 %v4950_v53  ;;  %2066 = vmatprep.subr.bf16.mxu1 %v4961_v56  ;;  %v5043_v53 = vld [vmem:[#allocation5 + $0x4e8] ss:$24 sps:$4 sm:$0xff]   ;;  %v5054_v56 = vld [vmem:[#allocation5 + $0x224] ss:$24 sps:$4 sm:$0xff]  }
  0xef   :  { %2023 = vmatprep.subr.bf16.mxu0 %v4958_v55  ;;  %v5051_v55 = vld [vmem:[#allocation5 + $0x51c] ss:$24 sps:$4 sm:$0xff]  }
  0xf1   :  { %2067 = vmatpush1.bf16.msra.mxu1 %v4959_v58  ;;  %v5052_v58 = vld [vmem:[#allocation5 + $0x220] ss:$24 sps:$4 sm:$0xff]  }
  0xf2   :  { %2024 = vmatpush1.bf16.msra.mxu0 %v4956_v57  ;;  %2068 = vmatprep.subr.bf16.mxu1 %v4967_v60  ;;  %v5049_v57 = vld [vmem:[#allocation5 + $0x518] ss:$24 sps:$4 sm:$0xff]   ;;  %v5060_v60 = vld [vmem:[#allocation5 + $0x254] ss:$24 sps:$4 sm:$0xff]  }
  0xf3   :  { %2025 = vmatprep.subr.bf16.mxu0 %v4964_v59  ;;  %v5057_v59 = vld [vmem:[#allocation5 + $0x54c] ss:$24 sps:$4 sm:$0xff]  }
  0xf5   :  { %2069 = vmatpush1.bf16.msra.mxu1 %v4965_v62  ;;  %v5058_v62 = vld [vmem:[#allocation5 + $0x250] ss:$24 sps:$4 sm:$0xff]  }
  0xf6   :  { %2026 = vmatpush1.bf16.msra.mxu0 %v4962_v61  ;;  %2070 = vmatprep.subr.bf16.mxu1 %v4973_v0  ;;  %v5055_v61 = vld [vmem:[#allocation5 + $0x548] ss:$24 sps:$4 sm:$0xff]   ;;  %v5066_v0 = vld [vmem:[#allocation5 + $0x284] ss:$24 sps:$4 sm:$0xff]  }
  0xf7   :  { %2027 = vmatprep.subr.bf16.mxu0 %v4970_v63  ;;  %v5063_v63 = vld [vmem:[#allocation5 + $0x57c] ss:$24 sps:$4 sm:$0xff]  }
  0xf9   :  { %2071 = vmatpush1.bf16.msra.mxu1 %v4971_v2  ;;  %v5064_v2 = vld [vmem:[#allocation5 + $0x280] ss:$24 sps:$4 sm:$0xff]  }
  0xfa   :  { %2028 = vmatpush1.bf16.msra.mxu0 %v4968_v1  ;;  %2072 = vmatprep.subr.bf16.mxu1 %v4979_v5  ;;  %v5061_v1 = vld [vmem:[#allocation5 + $0x578] ss:$24 sps:$4 sm:$0xff]   ;;  %v5072_v5 = vld [vmem:[#allocation5 + $0x2b4] ss:$24 sps:$4 sm:$0xff]  }
  0xfb   :  { %2029 = vmatprep.subr.bf16.mxu0 %v4976_v3  ;;  %v5069_v3 = vld [vmem:[#allocation5 + $0x5ac] ss:$24 sps:$4 sm:$0xff]  }
  0xfd   :  { %2073 = vmatpush1.bf16.msra.mxu1 %v4977_v8  ;;  %v5070_v8 = vld [vmem:[#allocation5 + $0x2b0] ss:$24 sps:$4 sm:$0xff]  }
  0xfe   :  { %2030 = vmatpush1.bf16.msra.mxu0 %v4974_v6  ;;  %2085 = vmatprep.subr.bf16.mxu1 %v4985_v9  ;;  %v5067_v6 = vld [vmem:[#allocation5 + $0x5a8] ss:$24 sps:$4 sm:$0xff]   ;;  %v5075_v9 = vld [vmem:[#allocation5 + $0x5dc] ss:$24 sps:$4 sm:$0xff]  }
  0xff   :  { %2171 = vmatprep.subr.bf16.mxu0 %v4988_v10  ;;  %v5078_v10 = vld [vmem:[#allocation5 + $0x2e4] ss:$24 sps:$4 sm:$0xff]  }
 0x100   :  { %2075 = vmatmul.mubr.bf16.vlgmr.msra.gmra.mrb[4].mxu1 %v5912_v4 }
 0x101   :  { %2032 = vmatmul.mubr.bf16.vlgmr.msra.gmra.mrb[0].mxu0 %v5922_v11  ;;  %2086 = vmatpush1.bf16.msra.mxu1 %v4983_v12  ;;  %v5073_v12 = vld [vmem:[#allocation5 + $0x5d8] ss:$24 sps:$4 sm:$0xff]  }
 0x102   :  { %2172 = vmatpush1.bf16.msra.mxu0 %v4986_v13  ;;  %2087 = vmatprep.subr.bf16.mxu1 %v4991_v14  ;;  %v5076_v13 = vld [vmem:[#allocation5 + $0x2e0] ss:$24 sps:$4 sm:$0xff]   ;;  %v5081_v14 = vld [vmem:[#allocation5 + $0x60c] ss:$24 sps:$4 sm:$0xff]  }
 0x103   :  { %2173 = vmatprep.subr.bf16.mxu0 %v4994_v15  ;;  %2117 = vmatprep.mubr.bf16.mxu1 %v5908_v50  ;;  %v5010_v50 = vld [vmem:[#allocation5 + $0xd0] ss:$24 sps:$4 sm:$0xff]   ;;  %v5084_v15 = vld [vmem:[#allocation5 + $0x314] ss:$24 sps:$4 sm:$0xff]  }
 0x104   :  { %2203 = vmatprep.mubr.bf16.mxu0 %v5906_v49  ;;  %v5015_v49 = vld [vmem:[#allocation5 + $0x3fc] ss:$24 sps:$4 sm:$0xff]  }
 0x105   :  { %2088 = vmatpush1.bf16.msra.mxu1 %v4989_v16  ;;  %v5079_v16 = vld [vmem:[#allocation5 + $0x608] ss:$24 sps:$4 sm:$0xff]  }
 0x106   :  { %2174 = vmatpush1.bf16.msra.mxu0 %v4992_v17  ;;  %2089 = vmatprep.subr.bf16.mxu1 %v4997_v18  ;;  %v5082_v17 = vld [vmem:[#allocation5 + $0x310] ss:$24 sps:$4 sm:$0xff]   ;;  %v5087_v18 = vld [vmem:[#allocation5 + $0x63c] ss:$24 sps:$4 sm:$0xff]  }
 0x107   :  { %2175 = vmatprep.subr.bf16.mxu0 %v5000_v19  ;;  %v5090_v19 = vld [vmem:[#allocation5 + $0x344] ss:$24 sps:$4 sm:$0xff]  }
 0x109   :  { %2090 = vmatpush1.bf16.msra.mxu1 %v4995_v20  ;;  %v5085_v20 = vld [vmem:[#allocation5 + $0x638] ss:$24 sps:$4 sm:$0xff]  }
 0x10a   :  { %2176 = vmatpush1.bf16.msra.mxu0 %v4998_v21  ;;  %2091 = vmatprep.subr.bf16.mxu1 %v5003_v22  ;;  %v5088_v21 = vld [vmem:[#allocation5 + $0x340] ss:$24 sps:$4 sm:$0xff]   ;;  %v5093_v22 = vld [vmem:[#allocation5 + $0x66c] ss:$24 sps:$4 sm:$0xff]  }
 0x10b   :  { %2177 = vmatprep.subr.bf16.mxu0 %v5006_v23  ;;  %v5096_v23 = vld [vmem:[#allocation5 + $0x374] ss:$24 sps:$4 sm:$0xff]  }
 0x10d   :  { %2092 = vmatpush1.bf16.msra.mxu1 %v5001_v24  ;;  %v5563_v24 = vld [vmem:[#allocation2 + $0xc] ss:$24 sps:$4 sm:$0xff]  }
 0x10e   :  { %2178 = vmatpush1.bf16.msra.mxu0 %v5004_v25  ;;  %2093 = vmatprep.subr.bf16.mxu1 %v5009_v26  ;;  %v5091_v25 = vld [vmem:[#allocation5 + $0x668] ss:$24 sps:$4 sm:$0xff]  }
 0x10f   :  { %2179 = vmatprep.subr.bf16.mxu0 %v5012_v27  ;;  %v5094_v26 = vld [vmem:[#allocation5 + $0x370] ss:$24 sps:$4 sm:$0xff]  }
 0x110   :  { %v5097_v27 = vld [vmem:[#allocation5 + $0x698] ss:$24 sps:$4 sm:$0xff]  }
 0x111   :  { %2094 = vmatpush1.bf16.msra.mxu1 %v5007_v28  ;;  %v5100_v28 = vld [vmem:[#allocation5 + $0x3a0] ss:$24 sps:$4 sm:$0xff]  }
 0x112   :  { %2180 = vmatpush1.bf16.msra.mxu0 %v5010_v50  ;;  %2095 = vmatprep.subr.bf16.mxu1 %v5015_v49  ;;  %v5105_v50 = vld [vmem:[#allocation5 + $0x6cc] ss:$24 sps:$4 sm:$0xff]  }
 0x113   :  { %2181 = vmatprep.subr.bf16.mxu0 %v5018_v29  ;;  %v5108_v49 = vld [vmem:[#allocation5 + $0x3d4] ss:$24 sps:$4 sm:$0xff]   ;;  %v5103_v29 = vld [vmem:[#allocation5 + $0x6c8] ss:$24 sps:$4 sm:$0xff]  }
 0x115   :  { %2096 = vmatpush1.bf16.msra.mxu1 %v5013_v30  ;;  %v5111_v30 = vld [vmem:[#allocation5 + $0x6fc] ss:$24 sps:$4 sm:$0xff]  }
 0x116   :  { %2182 = vmatpush1.bf16.msra.mxu0 %v5016_v31  ;;  %2097 = vmatprep.subr.bf16.mxu1 %v5021_v32  ;;  %v5114_v31 = vld [vmem:[#allocation5 + $0x404] ss:$24 sps:$4 sm:$0xff]   ;;  %v5109_v32 = vld [vmem:[#allocation5 + $0x6f8] ss:$24 sps:$4 sm:$0xff]  }
 0x117   :  { %2183 = vmatprep.subr.bf16.mxu0 %v5024_v33  ;;  %v5112_v33 = vld [vmem:[#allocation5 + $0x400] ss:$24 sps:$4 sm:$0xff]  }
 0x119   :  { %2098 = vmatpush1.bf16.msra.mxu1 %v5019_v35  ;;  %v5117_v35 = vld [vmem:[#allocation5 + $0x72c] ss:$24 sps:$4 sm:$0xff]  }
 0x11a   :  { %2184 = vmatpush1.bf16.msra.mxu0 %v5022_v36  ;;  %2099 = vmatprep.subr.bf16.mxu1 %v5027_v37  ;;  %v5120_v36 = vld [vmem:[#allocation5 + $0x434] ss:$24 sps:$4 sm:$0xff]   ;;  %v5115_v37 = vld [vmem:[#allocation5 + $0x728] ss:$24 sps:$4 sm:$0xff]  }
 0x11b   :  { %2185 = vmatprep.subr.bf16.mxu0 %v5030_v38  ;;  %v5118_v38 = vld [vmem:[#allocation5 + $0x430] ss:$24 sps:$4 sm:$0xff]  }
 0x11d   :  { %2100 = vmatpush1.bf16.msra.mxu1 %v5025_v39  ;;  %v5123_v39 = vld [vmem:[#allocation5 + $0x75c] ss:$24 sps:$4 sm:$0xff]  }
 0x11e   :  { %2186 = vmatpush1.bf16.msra.mxu0 %v5028_v40  ;;  %2101 = vmatprep.subr.bf16.mxu1 %v5033_v41  ;;  %v5126_v40 = vld [vmem:[#allocation5 + $0x464] ss:$24 sps:$4 sm:$0xff]   ;;  %v5121_v41 = vld [vmem:[#allocation5 + $0x758] ss:$24 sps:$4 sm:$0xff]  }
 0x11f   :  { %2187 = vmatprep.subr.bf16.mxu0 %v5036_v42  ;;  %v5124_v42 = vld [vmem:[#allocation5 + $0x460] ss:$24 sps:$4 sm:$0xff]  }
 0x121   :  { %2102 = vmatpush1.bf16.msra.mxu1 %v5031_v43  ;;  %v5129_v43 = vld [vmem:[#allocation5 + $0x78c] ss:$24 sps:$4 sm:$0xff]  }
 0x122   :  { %2188 = vmatpush1.bf16.msra.mxu0 %v5034_v44  ;;  %2103 = vmatprep.subr.bf16.mxu1 %v5039_v45  ;;  %v5132_v44 = vld [vmem:[#allocation5 + $0x494] ss:$24 sps:$4 sm:$0xff]   ;;  %v5127_v45 = vld [vmem:[#allocation5 + $0x788] ss:$24 sps:$4 sm:$0xff]  }
 0x123   :  { %2189 = vmatprep.subr.bf16.mxu0 %v5042_v46  ;;  %v5130_v46 = vld [vmem:[#allocation5 + $0x490] ss:$24 sps:$4 sm:$0xff]  }
 0x125   :  { %2104 = vmatpush1.bf16.msra.mxu1 %v5037_v47  ;;  %v5135_v47 = vld [vmem:[#allocation5 + $0x7bc] ss:$24 sps:$4 sm:$0xff]  }
 0x126   :  { %2190 = vmatpush1.bf16.msra.mxu0 %v5040_v48  ;;  %2105 = vmatprep.subr.bf16.mxu1 %v5045_v51  ;;  %v5138_v48 = vld [vmem:[#allocation5 + $0x4c4] ss:$24 sps:$4 sm:$0xff]   ;;  %v5133_v51 = vld [vmem:[#allocation5 + $0x7b8] ss:$24 sps:$4 sm:$0xff]  }
 0x127   :  { %2191 = vmatprep.subr.bf16.mxu0 %v5048_v52  ;;  %v5136_v52 = vld [vmem:[#allocation5 + $0x4c0] ss:$24 sps:$4 sm:$0xff]  }
 0x129   :  { %2106 = vmatpush1.bf16.msra.mxu1 %v5043_v53  ;;  %v5141_v53 = vld [vmem:[#allocation5 + $0x7ec] ss:$24 sps:$4 sm:$0xff]  }
 0x12a   :  { %2192 = vmatpush1.bf16.msra.mxu0 %v5046_v54  ;;  %2107 = vmatprep.subr.bf16.mxu1 %v5051_v55  ;;  %v5144_v54 = vld [vmem:[#allocation5 + $0x4f4] ss:$24 sps:$4 sm:$0xff]   ;;  %v5139_v55 = vld [vmem:[#allocation5 + $0x7e8] ss:$24 sps:$4 sm:$0xff]  }
 0x12b   :  { %2193 = vmatprep.subr.bf16.mxu0 %v5054_v56  ;;  %v5142_v56 = vld [vmem:[#allocation5 + $0x4f0] ss:$24 sps:$4 sm:$0xff]  }
 0x12d   :  { %2108 = vmatpush1.bf16.msra.mxu1 %v5049_v57  ;;  %v5147_v57 = vld [vmem:[#allocation5 + $0x81c] ss:$24 sps:$4 sm:$0xff]  }
 0x12e   :  { %2194 = vmatpush1.bf16.msra.mxu0 %v5052_v58  ;;  %2109 = vmatprep.subr.bf16.mxu1 %v5057_v59  ;;  %v5150_v58 = vld [vmem:[#allocation5 + $0x524] ss:$24 sps:$4 sm:$0xff]   ;;  %v5145_v59 = vld [vmem:[#allocation5 + $0x818] ss:$24 sps:$4 sm:$0xff]  }
 0x12f   :  { %2195 = vmatprep.subr.bf16.mxu0 %v5060_v60  ;;  %v5148_v60 = vld [vmem:[#allocation5 + $0x520] ss:$24 sps:$4 sm:$0xff]  }
 0x131   :  { %2110 = vmatpush1.bf16.msra.mxu1 %v5055_v61  ;;  %v5153_v61 = vld [vmem:[#allocation5 + $0x84c] ss:$24 sps:$4 sm:$0xff]  }
 0x132   :  { %2196 = vmatpush1.bf16.msra.mxu0 %v5058_v62  ;;  %2111 = vmatprep.subr.bf16.mxu1 %v5063_v63  ;;  %v5156_v62 = vld [vmem:[#allocation5 + $0x554] ss:$24 sps:$4 sm:$0xff]   ;;  %v5151_v63 = vld [vmem:[#allocation5 + $0x848] ss:$24 sps:$4 sm:$0xff]  }
 0x133   :  { %2197 = vmatprep.subr.bf16.mxu0 %v5066_v0  ;;  %v5154_v0 = vld [vmem:[#allocation5 + $0x550] ss:$24 sps:$4 sm:$0xff]  }
 0x135   :  { %2112 = vmatpush1.bf16.msra.mxu1 %v5061_v1  ;;  %v5159_v1 = vld [vmem:[#allocation5 + $0x87c] ss:$24 sps:$4 sm:$0xff]  }
 0x136   :  { %2198 = vmatpush1.bf16.msra.mxu0 %v5064_v2  ;;  %2113 = vmatprep.subr.bf16.mxu1 %v5069_v3  ;;  %v5162_v2 = vld [vmem:[#allocation5 + $0x584] ss:$24 sps:$4 sm:$0xff]   ;;  %v5157_v3 = vld [vmem:[#allocation5 + $0x878] ss:$24 sps:$4 sm:$0xff]  }
 0x137   :  { %2199 = vmatprep.subr.bf16.mxu0 %v5072_v5  ;;  %v5160_v5 = vld [vmem:[#allocation5 + $0x580] ss:$24 sps:$4 sm:$0xff]  }
 0x139   :  { %2114 = vmatpush1.bf16.msra.mxu1 %v5067_v6  ;;  %v5165_v6 = vld [vmem:[#allocation5 + $0x8ac] ss:$24 sps:$4 sm:$0xff]  }
 0x13a   :  { %2200 = vmatpush1.bf16.msra.mxu0 %v5070_v8  ;;  %2115 = vmatprep.subr.bf16.mxu1 %v5075_v9  ;;  %v5168_v8 = vld [vmem:[#allocation5 + $0x5b4] ss:$24 sps:$4 sm:$0xff]   ;;  %v5163_v9 = vld [vmem:[#allocation5 + $0x8a8] ss:$24 sps:$4 sm:$0xff]  }
 0x13b   :  { %2201 = vmatprep.subr.bf16.mxu0 %v5078_v10  ;;  %v5166_v10 = vld [vmem:[#allocation5 + $0x5b0] ss:$24 sps:$4 sm:$0xff]  }
 0x13d   :  { %2116 = vmatpush1.bf16.msra.mxu1 %v5073_v12  ;;  %v5171_v12 = vld [vmem:[#allocation5 + $0x8dc] ss:$24 sps:$4 sm:$0xff]  }
 0x13e   :  { %2202 = vmatpush1.bf16.msra.mxu0 %v5076_v13  ;;  %2128 = vmatprep.subr.bf16.mxu1 %v5081_v14  ;;  %v5174_v13 = vld [vmem:[#allocation5 + $0x5e4] ss:$24 sps:$4 sm:$0xff]   ;;  %v5169_v14 = vld [vmem:[#allocation5 + $0x8d8] ss:$24 sps:$4 sm:$0xff]  }
 0x13f   :  { %2214 = vmatprep.subr.bf16.mxu0 %v5084_v15  ;;  %v5172_v15 = vld [vmem:[#allocation5 + $0x5e0] ss:$24 sps:$4 sm:$0xff]  }
 0x140   :  { %2118 = vmatmul.mubr.bf16.vlgmr.msra.gmra.mrb[4].mxu1 %v5914_v7  ;;  %v5099_v7 = vld [vmem:[#allocation5 + $0x69c] ss:$24 sps:$4 sm:$0xff]  }
 0x141   :  { %2204 = vmatmul.mubr.bf16.vlgmr.msra.gmra.mrb[4].mxu0 %v5912_v4  ;;  %2129 = vmatpush1.bf16.msra.mxu1 %v5079_v16  ;;  %v5102_v4 = vld [vmem:[#allocation5 + $0x3a4] ss:$24 sps:$4 sm:$0xff]   ;;  %v5177_v16 = vld [vmem:[#allocation5 + $0x614] ss:$24 sps:$4 sm:$0xff]  }
 0x142   :  { %2215 = vmatpush1.bf16.msra.mxu0 %v5082_v17  ;;  %2130 = vmatprep.subr.bf16.mxu1 %v5087_v18  ;;  %v5210_v17 = vld [vmem:[#allocation8 + $0x4] ss:$16 sps:$4 sm:$0xff]  }
 0x143   :  { %2216 = vmatprep.subr.bf16.mxu0 %v5090_v19  ;;  %2160 = vmatprep.mubr.bf16.mxu1 %v5919_v34  ;;  %v5106_v34 = vld [vmem:[#allocation5 + $0x3d0] ss:$24 sps:$4 sm:$0xff]  }
 0x144   :  { %2246 = vmatprep.mubr.bf16.mxu0 %v5563_v24  ;;  %v5175_v18 = vld [vmem:[#allocation5 + $0x610] ss:$24 sps:$4 sm:$0xff]  }
 0x145   :  { %2131 = vmatpush1.bf16.msra.mxu1 %v5085_v20  ;;  %v5208_v19 = vld [vmem:[#allocation8] ss:$16 sps:$4 sm:$0xff]  }
 0x146   :  { %2217 = vmatpush1.bf16.msra.mxu0 %v5088_v21  ;;  %2132 = vmatprep.subr.bf16.mxu1 %v5093_v22  ;;  %v5180_v20 = vld [vmem:[#allocation5 + $0x644] ss:$24 sps:$4 sm:$0xff]   ;;  %v5564_v22 = vld [vmem:[#allocation2 + $0x8] ss:$24 sps:$4 sm:$0xff]  }
 0x147   :  { %2218 = vmatprep.subr.bf16.mxu0 %v5096_v23  ;;  %v5216_v21 = vld [vmem:[#allocation8 + $0x24] ss:$16 sps:$4 sm:$0xff]   ;;  %v5214_v24 = vld [vmem:[#allocation8 + $0x20] ss:$16 sps:$4 sm:$0xff]  }
 0x148   :  { %v5178_v23 = vld [vmem:[#allocation5 + $0x640] ss:$24 sps:$4 sm:$0xff]  }
 0x149   :  { %2133 = vmatpush1.bf16.msra.mxu1 %v5091_v25  ;;  %v5183_v25 = vld [vmem:[#allocation5 + $0x674] ss:$24 sps:$4 sm:$0xff]  }
 0x14a   :  { %2219 = vmatpush1.bf16.msra.mxu0 %v5094_v26  ;;  %2134 = vmatprep.subr.bf16.mxu1 %v5099_v7  ;;  %v5222_v26 = vld [vmem:[#allocation8 + $0x44] ss:$16 sps:$4 sm:$0xff]  }
 0x14b   :  { %2220 = vmatprep.subr.bf16.mxu0 %v5102_v4  ;;  %v5565_v7 = vld [vmem:[#allocation2 + $0x14] ss:$24 sps:$4 sm:$0xff]   ;;  %v5181_v4 = vld [vmem:[#allocation5 + $0x670] ss:$24 sps:$4 sm:$0xff]  }
 0x14d   :  { %2135 = vmatpush1.bf16.msra.mxu1 %v5097_v27  ;;  %v5186_v27 = vld [vmem:[#allocation5 + $0x6a4] ss:$24 sps:$4 sm:$0xff]  }
 0x14e   :  { %2221 = vmatpush1.bf16.msra.mxu0 %v5100_v28  ;;  %2136 = vmatprep.subr.bf16.mxu1 %v5105_v50  ;;  %v5220_v28 = vld [vmem:[#allocation8 + $0x40] ss:$16 sps:$4 sm:$0xff]  }
 0x14f   :  { %2222 = vmatprep.subr.bf16.mxu0 %v5108_v49  ;;  %v5184_v50 = vld [vmem:[#allocation5 + $0x6a0] ss:$24 sps:$4 sm:$0xff]   ;;  %v5189_v49 = vld [vmem:[#allocation5 + $0x6d4] ss:$24 sps:$4 sm:$0xff]  }
 0x151   :  { %2137 = vmatpush1.bf16.msra.mxu1 %v5103_v29  ;;  %v5226_v29 = vld [vmem:[#allocation8 + $0x60] ss:$16 sps:$4 sm:$0xff]  }
 0x152   :  { %2223 = vmatpush1.bf16.msra.mxu0 %v5106_v34  ;;  %2138 = vmatprep.subr.bf16.mxu1 %v5111_v30  ;;  %v5234_v34 = vld [vmem:[#allocation8 + $0x84] ss:$16 sps:$4 sm:$0xff]  }
 0x153   :  { %2224 = vmatprep.subr.bf16.mxu0 %v5114_v31  ;;  %v5187_v30 = vld [vmem:[#allocation5 + $0x6d0] ss:$24 sps:$4 sm:$0xff]   ;;  %v5192_v31 = vld [vmem:[#allocation5 + $0x704] ss:$24 sps:$4 sm:$0xff]  }
 0x155   :  { %2139 = vmatpush1.bf16.msra.mxu1 %v5109_v32  ;;  %v5232_v32 = vld [vmem:[#allocation8 + $0x80] ss:$16 sps:$4 sm:$0xff]  }
 0x156   :  { %2225 = vmatpush1.bf16.msra.mxu0 %v5112_v33  ;;  %2140 = vmatprep.subr.bf16.mxu1 %v5117_v35  ;;  %v5240_v33 = vld [vmem:[#allocation8 + $0xa4] ss:$16 sps:$4 sm:$0xff]  }
 0x157   :  { %2226 = vmatprep.subr.bf16.mxu0 %v5120_v36  ;;  %v5190_v35 = vld [vmem:[#allocation5 + $0x700] ss:$24 sps:$4 sm:$0xff]   ;;  %v5195_v36 = vld [vmem:[#allocation5 + $0x734] ss:$24 sps:$4 sm:$0xff]  }
 0x159   :  { %2141 = vmatpush1.bf16.msra.mxu1 %v5115_v37  ;;  %v5238_v37 = vld [vmem:[#allocation8 + $0xa0] ss:$16 sps:$4 sm:$0xff]  }
 0x15a   :  { %2227 = vmatpush1.bf16.msra.mxu0 %v5118_v38  ;;  %2142 = vmatprep.subr.bf16.mxu1 %v5123_v39  ;;  %v5243_v38 = vld [vmem:[#allocation8 + $0xc4] ss:$16 sps:$4 sm:$0xff]  }
 0x15b   :  { %2228 = vmatprep.subr.bf16.mxu0 %v5126_v40 }
 0x15d   :  { %2143 = vmatpush1.bf16.msra.mxu1 %v5121_v41 }
 0x15e   :  { %2229 = vmatpush1.bf16.msra.mxu0 %v5124_v42  ;;  %2144 = vmatprep.subr.bf16.mxu1 %v5129_v43  ;;  %v5193_v42 = vld [vmem:[#allocation5 + $0x730] ss:$24 sps:$4 sm:$0xff]  }
 0x15f   :  { %2230 = vmatprep.subr.bf16.mxu0 %v5132_v44  ;;  %v5241_v43 = vld [vmem:[#allocation8 + $0xc0] ss:$16 sps:$4 sm:$0xff]  }
 0x161   :  { %2145 = vmatpush1.bf16.msra.mxu1 %v5127_v45  ;;  %v5198_v45 = vld [vmem:[#allocation5 + $0x764] ss:$24 sps:$4 sm:$0xff]  }
 0x162   :  { %2231 = vmatpush1.bf16.msra.mxu0 %v5130_v46  ;;  %2146 = vmatprep.subr.bf16.mxu1 %v5135_v47  ;;  %v5249_v46 = vld [vmem:[#allocation8 + $0xe4] ss:$16 sps:$4 sm:$0xff]  }
 0x163   :  { %2232 = vmatprep.subr.bf16.mxu0 %v5138_v48  ;;  %v5196_v47 = vld [vmem:[#allocation5 + $0x760] ss:$24 sps:$4 sm:$0xff]   ;;  %v5201_v48 = vld [vmem:[#allocation5 + $0x794] ss:$24 sps:$4 sm:$0xff]  }
 0x165   :  { %2147 = vmatpush1.bf16.msra.mxu1 %v5133_v51  ;;  %v5247_v51 = vld [vmem:[#allocation8 + $0xe0] ss:$16 sps:$4 sm:$0xff]  }
 0x166   :  { %2233 = vmatpush1.bf16.msra.mxu0 %v5136_v52  ;;  %2148 = vmatprep.subr.bf16.mxu1 %v5141_v53  ;;  %v5255_v52 = vld [vmem:[#allocation8 + $0x104] ss:$16 sps:$4 sm:$0xff]  }
 0x167   :  { %2234 = vmatprep.subr.bf16.mxu0 %v5144_v54  ;;  %v5199_v53 = vld [vmem:[#allocation5 + $0x790] ss:$24 sps:$4 sm:$0xff]   ;;  %v5204_v54 = vld [vmem:[#allocation5 + $0x7c4] ss:$24 sps:$4 sm:$0xff]  }
 0x169   :  { %2149 = vmatpush1.bf16.msra.mxu1 %v5139_v55  ;;  %v5253_v55 = vld [vmem:[#allocation8 + $0x100] ss:$16 sps:$4 sm:$0xff]  }
 0x16a   :  { %2235 = vmatpush1.bf16.msra.mxu0 %v5142_v56  ;;  %2150 = vmatprep.subr.bf16.mxu1 %v5147_v57  ;;  %v5261_v56 = vld [vmem:[#allocation8 + $0x124] ss:$16 sps:$4 sm:$0xff]  }
 0x16b   :  { %2236 = vmatprep.subr.bf16.mxu0 %v5150_v58  ;;  %v5202_v57 = vld [vmem:[#allocation5 + $0x7c0] ss:$24 sps:$4 sm:$0xff]   ;;  %v5207_v58 = vld [vmem:[#allocation5 + $0x7f4] ss:$24 sps:$4 sm:$0xff]  }
 0x16d   :  { %2151 = vmatpush1.bf16.msra.mxu1 %v5145_v59  ;;  %v5259_v59 = vld [vmem:[#allocation8 + $0x120] ss:$16 sps:$4 sm:$0xff]  }
 0x16e   :  { %2237 = vmatpush1.bf16.msra.mxu0 %v5148_v60  ;;  %2152 = vmatprep.subr.bf16.mxu1 %v5153_v61  ;;  %v5267_v60 = vld [vmem:[#allocation8 + $0x144] ss:$16 sps:$4 sm:$0xff]  }
 0x16f   :  { %2238 = vmatprep.subr.bf16.mxu0 %v5156_v62  ;;  %v5205_v61 = vld [vmem:[#allocation5 + $0x7f0] ss:$24 sps:$4 sm:$0xff]   ;;  %v5213_v62 = vld [vmem:[#allocation5 + $0x824] ss:$24 sps:$4 sm:$0xff]  }
 0x171   :  { %2153 = vmatpush1.bf16.msra.mxu1 %v5151_v63  ;;  %v5265_v63 = vld [vmem:[#allocation8 + $0x140] ss:$16 sps:$4 sm:$0xff]  }
 0x172   :  { %2239 = vmatpush1.bf16.msra.mxu0 %v5154_v0  ;;  %2154 = vmatprep.subr.bf16.mxu1 %v5159_v1  ;;  %v5273_v0 = vld [vmem:[#allocation8 + $0x164] ss:$16 sps:$4 sm:$0xff]  }
 0x173   :  { %2240 = vmatprep.subr.bf16.mxu0 %v5162_v2  ;;  %v5211_v1 = vld [vmem:[#allocation5 + $0x820] ss:$24 sps:$4 sm:$0xff]  }
 0x174   :  { %v5271_v2 = vld [vmem:[#allocation8 + $0x160] ss:$16 sps:$4 sm:$0xff]  }
 0x175   :  { %2155 = vmatpush1.bf16.msra.mxu1 %v5157_v3  ;;  %v5219_v3 = vld [vmem:[#allocation5 + $0x854] ss:$24 sps:$4 sm:$0xff]  }
 0x176   :  { %2241 = vmatpush1.bf16.msra.mxu0 %v5160_v5  ;;  %2156 = vmatprep.subr.bf16.mxu1 %v5165_v6  ;;  %v5279_v5 = vld [vmem:[#allocation8 + $0x184] ss:$16 sps:$4 sm:$0xff]  }
 0x177   :  { %2242 = vmatprep.subr.bf16.mxu0 %v5168_v8  ;;  %v5217_v6 = vld [vmem:[#allocation5 + $0x850] ss:$24 sps:$4 sm:$0xff]  }
 0x178   :  { %v5277_v8 = vld [vmem:[#allocation8 + $0x180] ss:$16 sps:$4 sm:$0xff]  }
 0x179   :  { %2157 = vmatpush1.bf16.msra.mxu1 %v5163_v9  ;;  %v5225_v9 = vld [vmem:[#allocation5 + $0x884] ss:$24 sps:$4 sm:$0xff]  }
 0x17a   :  { %2243 = vmatpush1.bf16.msra.mxu0 %v5166_v10  ;;  %2158 = vmatprep.subr.bf16.mxu1 %v5171_v12  ;;  %v5285_v10 = vld [vmem:[#allocation8 + $0x1a4] ss:$16 sps:$4 sm:$0xff]  }
 0x17b   :  { %2244 = vmatprep.subr.bf16.mxu0 %v5174_v13  ;;  %v5223_v12 = vld [vmem:[#allocation5 + $0x880] ss:$24 sps:$4 sm:$0xff]  }
 0x17c   :  { %v5283_v13 = vld [vmem:[#allocation8 + $0x1a0] ss:$16 sps:$4 sm:$0xff]  }
 0x17d   :  { %2159 = vmatpush1.bf16.msra.mxu1 %v5169_v14  ;;  %v5231_v14 = vld [vmem:[#allocation5 + $0x8b4] ss:$24 sps:$4 sm:$0xff]  }
 0x17e   :  { %2245 = vmatpush1.bf16.msra.mxu0 %v5172_v15  ;;  %3486 = vmatprep.subr.bf16.mxu1 %v5210_v17  ;;  %v5291_v15 = vld [vmem:[#allocation8 + $0x1c4] ss:$16 sps:$4 sm:$0xff]   ;;  %v5289_v17 = vld [vmem:[#allocation8 + $0x1c0] ss:$16 sps:$4 sm:$0xff]  }
 0x17f   :  { %2257 = vmatprep.subr.bf16.mxu0 %v5177_v16  ;;  %v5229_v16 = vld [vmem:[#allocation5 + $0x8b0] ss:$24 sps:$4 sm:$0xff]  }
 0x180   :  { %2161 = vmatmul.mubr.bf16.vlgmr.msra.gmra.mrb[4].mxu1 %v5922_v11  ;;  %v5228_v11 = vld [vmem:[#allocation8 + $0x64] ss:$16 sps:$4 sm:$0xff]  }
 0x181   :  { %2247 = vmatmul.mubr.bf16.vlgmr.msra.gmra.mrb[4].mxu0 %v5564_v22  ;;  %3487 = vmatpush1.bf16.msra.mxu1 %v5208_v19  ;;  %v5297_v19 = vld [vmem:[#allocation8 + $0x1e4] ss:$16 sps:$4 sm:$0xff]   ;;  %v5246_v22 = vld [vmem:[#allocation8 + $0xc] ss:$16 sps:$4 sm:$0xff]  }
 0x182   :  { %2258 = vmatpush1.bf16.msra.mxu0 %v5175_v18  ;;  %3488 = vmatprep.subr.bf16.mxu1 %v5216_v21  ;;  %v5237_v18 = vld [vmem:[#allocation5 + $0x8e4] ss:$24 sps:$4 sm:$0xff]  }
 0x183   :  { %2259 = vmatprep.subr.bf16.mxu0 %v5180_v20  ;;  %2289 = vmatprep.mubr.bf16.mxu0 %v5565_v7  ;;  %v5235_v20 = vld [vmem:[#allocation5 + $0x8e0] ss:$24 sps:$4 sm:$0xff]  }
 0x184   :  { %v5295_v21 = vld [vmem:[#allocation8 + $0x1e0] ss:$16 sps:$4 sm:$0xff]   ;;  %v5250_v7 = vld [vmem:[#allocation8 + $0x28] ss:$16 sps:$4 sm:$0xff]  }
 0x185   :  { %3489 = vmatpush1.bf16.msra.mxu1 %v5214_v24  ;;  %v5244_v24 = vld [vmem:[#allocation8 + $0x8] ss:$16 sps:$4 sm:$0xff]  }
 0x186   :  { %2260 = vmatpush1.bf16.msra.mxu0 %v5178_v23  ;;  %3490 = vmatprep.subr.bf16.mxu1 %v5222_v26  ;;  %v5321_v23 = vld [vmem:[#allocation8 + $0x204] ss:$16 sps:$4 sm:$0xff]  }
 0x187   :  { %2261 = vmatprep.subr.bf16.mxu0 %v5183_v25  ;;  %v5252_v25 = vld [vmem:[#allocation8 + $0x2c] ss:$16 sps:$4 sm:$0xff]  }
 0x188   :  { %v5566_v26 = vld [vmem:[#allocation2 + $0x10] ss:$24 sps:$4 sm:$0xff]  }
 0x189   :  { %3491 = vmatpush1.bf16.msra.mxu1 %v5220_v28  ;;  %v5256_v28 = vld [vmem:[#allocation8 + $0x48] ss:$16 sps:$4 sm:$0xff]  }
 0x18a   :  { %2262 = vmatpush1.bf16.msra.mxu0 %v5181_v4  ;;  %3492 = vmatprep.subr.bf16.mxu1 %v5228_v11  ;;  %v413_v4 = vlaneseq }
 0x18b   :  { %2263 = vmatprep.subr.bf16.mxu0 %v5186_v27  ;;  %v5258_v27 = vld [vmem:[#allocation8 + $0x4c] ss:$16 sps:$4 sm:$0xff]  }
 0x18c   :  { %v5940_v11 = vshrl.u32 %v413_v4, 7  ;;  %v5322_v4 = vld [vmem:[#allocation8 + $0x208] ss:$16 sps:$4 sm:$0xff]  }
 0x18d   :  { %3493 = vmatpush1.bf16.msra.mxu1 %v5226_v29 }
 0x18e   :  { %2264 = vmatpush1.bf16.msra.mxu0 %v5184_v50  ;;  %3494 = vmatprep.subr.bf16.mxu1 %v5234_v34  ;;  %v5264_v50 = vld [vmem:[#allocation8 + $0x6c] ss:$16 sps:$4 sm:$0xff]   ;;  %v415_v29 = vsub.s32 0, %v5940_v11 }
 0x18f   :  { %2265 = vmatprep.subr.bf16.mxu0 %v5189_v49  ;;  %v5262_v49 = vld [vmem:[#allocation8 + $0x68] ss:$16 sps:$4 sm:$0xff]   ;;  %v5270_v34 = vld [vmem:[#allocation8 + $0x8c] ss:$16 sps:$4 sm:$0xff]  }
 0x191   :  { %3495 = vmatpush1.bf16.msra.mxu1 %v5232_v32  ;;  %v5268_v32 = vld [vmem:[#allocation8 + $0x88] ss:$16 sps:$4 sm:$0xff]  }
 0x192   :  { %2266 = vmatpush1.bf16.msra.mxu0 %v5187_v30  ;;  %3496 = vmatprep.subr.bf16.mxu1 %v5240_v33  ;;  %v5943_v30 = vld [vmem:[#allocation7] sm:$0x3f] }
 0x193   :  { %2267 = vmatprep.subr.bf16.mxu0 %v5192_v31  ;;  %v5932_v39 = vpop.f32.mrb[0].mxu1  ;;  %v419_v31 = vsub.s32 1, %v5940_v11  ;;  %v416_v33 = vrot.slane %v5943_v30, %v415_v29 }
 0x194   :  { %v5934_v40 = vpop.f32.mrb[1].mxu1 }
 0x195   :  { %v5936_v41 = vpop.f32.mrb[2].mxu1  ;;  %3497 = vmatpush1.bf16.msra.mxu1 %v5238_v37  ;;  %v5274_v37 = vld [vmem:[#allocation8 + $0xa8] ss:$16 sps:$4 sm:$0xff]  }
 0x196   :  { %2268 = vmatpush1.bf16.msra.mxu0 %v5190_v35  ;;  %v5938_v44 = vpop.f32.mrb[3].mxu1  ;;  %3498 = vmatprep.subr.bf16.mxu1 %v5243_v38  ;;  %v5276_v35 = vld [vmem:[#allocation8 + $0xac] ss:$16 sps:$4 sm:$0xff]   ;;  %v1948_v38 = vadd.f32 %v5932_v39, %v416_v33 }
 0x197   :  { %2269 = vmatprep.subr.bf16.mxu0 %v5195_v36  ;;  %v420_v36 = vrot.slane %v5943_v30, %v419_v31 }
 0x199   :  { %3499 = vmatpush1.bf16.msra.mxu1 %v5241_v43  ;;  %v1950_v43 = vadd.f32 %v5934_v40, %v420_v36  ;;  %v5286_v40 = vld [vmem:[#allocation8 + $0xe8] ss:$16 sps:$4 sm:$0xff]  }
 0x19a   :  { %2270 = vmatpush1.bf16.msra.mxu0 %v5193_v42  ;;  %3500 = vmatprep.subr.bf16.mxu1 %v5249_v46  ;;  %v5282_v42 = vld [vmem:[#allocation8 + $0xcc] ss:$16 sps:$4 sm:$0xff]   ;;  %v1952_v46 = vadd.f32 %v5936_v41, %v416_v33  ;;  %v5292_v41 = vld [vmem:[#allocation8 + $0x108] ss:$16 sps:$4 sm:$0xff]   ;;  %v5369_v33 = vld [vmem:[#allocation8 + $0x304] ss:$16 sps:$4 sm:$0xff]  }
 0x19b   :  { %2271 = vmatprep.subr.bf16.mxu0 %v5198_v45 }
 0x19d   :  { %3501 = vmatpush1.bf16.msra.mxu1 %v5247_v51  ;;  %v1954_v51 = vadd.f32 %v5938_v44, %v420_v36  ;;  %v5300_v44 = vld [vmem:[#allocation8 + $0x12c] ss:$16 sps:$4 sm:$0xff]   ;;  %v5367_v36 = vld [vmem:[#allocation8 + $0x300] ss:$16 sps:$4 sm:$0xff]  }
 0x19e   :  { %2272 = vmatpush1.bf16.msra.mxu0 %v5196_v47  ;;  %3502 = vmatprep.subr.bf16.mxu1 %v5255_v52 }
 0x19f   :  { %2273 = vmatprep.subr.bf16.mxu0 %v5201_v48 }
 0x1a1   :  { %3503 = vmatpush1.bf16.msra.mxu1 %v5253_v55 }
 0x1a2   :  { %2274 = vmatpush1.bf16.msra.mxu0 %v5199_v53  ;;  %3504 = vmatprep.subr.bf16.mxu1 %v5261_v56 }
 0x1a3   :  { %2275 = vmatprep.subr.bf16.mxu0 %v5204_v54  ;;  %v5280_v54 = vld [vmem:[#allocation8 + $0xc8] ss:$16 sps:$4 sm:$0xff]  }
 0x1a5   :  { %3505 = vmatpush1.bf16.msra.mxu1 %v5259_v59 }
 0x1a6   :  { %2276 = vmatpush1.bf16.msra.mxu0 %v5202_v57  ;;  %3506 = vmatprep.subr.bf16.mxu1 %v5267_v60  ;;  %v5288_v57 = vld [vmem:[#allocation8 + $0xec] ss:$16 sps:$4 sm:$0xff]  }
 0x1a7   :  { %2277 = vmatprep.subr.bf16.mxu0 %v5207_v58  ;;  %v5294_v60 = vld [vmem:[#allocation8 + $0x10c] ss:$16 sps:$4 sm:$0xff]  }
 0x1a9   :  { %3507 = vmatpush1.bf16.msra.mxu1 %v5265_v63  ;;  %v5301_v63 = vld [vmem:[#allocation8 + $0x148] ss:$16 sps:$4 sm:$0xff]  }
 0x1aa   :  { %2278 = vmatpush1.bf16.msra.mxu0 %v5205_v61  ;;  %3508 = vmatprep.subr.bf16.mxu1 %v5273_v0  ;;  %v5298_v61 = vld [vmem:[#allocation8 + $0x128] ss:$16 sps:$4 sm:$0xff]   ;;  %v5319_v0 = vld [vmem:[#allocation8 + $0x200] ss:$16 sps:$4 sm:$0xff]  }
 0x1ab   :  { %2279 = vmatprep.subr.bf16.mxu0 %v5213_v62  ;;  %v5303_v62 = vld [vmem:[#allocation8 + $0x14c] ss:$16 sps:$4 sm:$0xff]  }
 0x1ad   :  { %3509 = vmatpush1.bf16.msra.mxu1 %v5271_v2  ;;  %v5306_v2 = vld [vmem:[#allocation8 + $0x16c] ss:$16 sps:$4 sm:$0xff]  }
 0x1ae   :  { %2280 = vmatpush1.bf16.msra.mxu0 %v5211_v1  ;;  %3510 = vmatprep.subr.bf16.mxu1 %v5279_v5 }
 0x1af   :  { %2281 = vmatprep.subr.bf16.mxu0 %v5219_v3  ;;  %v5327_v3 = vld [vmem:[#allocation8 + $0x224] ss:$16 sps:$4 sm:$0xff]  }
 0x1b1   :  { %3511 = vmatpush1.bf16.msra.mxu1 %v5277_v8  ;;  %v5325_v8 = vld [vmem:[#allocation8 + $0x220] ss:$16 sps:$4 sm:$0xff]  }
 0x1b2   :  { %2282 = vmatpush1.bf16.msra.mxu0 %v5217_v6  ;;  %3512 = vmatprep.subr.bf16.mxu1 %v5285_v10  ;;  %v5304_v6 = vld [vmem:[#allocation8 + $0x168] ss:$16 sps:$4 sm:$0xff]   ;;  %v5333_v10 = vld [vmem:[#allocation8 + $0x244] ss:$16 sps:$4 sm:$0xff]  }
 0x1b3   :  { %2283 = vmatprep.subr.bf16.mxu0 %v5225_v9  ;;  %v5309_v9 = vld [vmem:[#allocation8 + $0x18c] ss:$16 sps:$4 sm:$0xff]  }
 0x1b5   :  { %3513 = vmatpush1.bf16.msra.mxu1 %v5283_v13  ;;  %v5331_v13 = vld [vmem:[#allocation8 + $0x240] ss:$16 sps:$4 sm:$0xff]  }
 0x1b6   :  { %2284 = vmatpush1.bf16.msra.mxu0 %v5223_v12  ;;  %3514 = vmatprep.subr.bf16.mxu1 %v5291_v15  ;;  %v5307_v12 = vld [vmem:[#allocation8 + $0x188] ss:$16 sps:$4 sm:$0xff]   ;;  %v5339_v15 = vld [vmem:[#allocation8 + $0x264] ss:$16 sps:$4 sm:$0xff]  }
 0x1b7   :  { %2285 = vmatprep.subr.bf16.mxu0 %v5231_v14  ;;  %v5312_v14 = vld [vmem:[#allocation8 + $0x1ac] ss:$16 sps:$4 sm:$0xff]  }
 0x1b9   :  { %3515 = vmatpush1.bf16.msra.mxu1 %v5289_v17  ;;  %v5337_v17 = vld [vmem:[#allocation8 + $0x260] ss:$16 sps:$4 sm:$0xff]  }
 0x1ba   :  { %2286 = vmatpush1.bf16.msra.mxu0 %v5229_v16  ;;  %3516 = vmatprep.subr.bf16.mxu1 %v5297_v19  ;;  %v5310_v16 = vld [vmem:[#allocation8 + $0x1a8] ss:$16 sps:$4 sm:$0xff]   ;;  %v5345_v19 = vld [vmem:[#allocation8 + $0x284] ss:$16 sps:$4 sm:$0xff]  }
 0x1bb   :  { %2287 = vmatprep.subr.bf16.mxu0 %v5237_v18  ;;  %v5315_v18 = vld [vmem:[#allocation8 + $0x1cc] ss:$16 sps:$4 sm:$0xff]  }
 0x1bd   :  { %3517 = vmatpush1.bf16.msra.mxu1 %v5295_v21  ;;  %v5343_v21 = vld [vmem:[#allocation8 + $0x280] ss:$16 sps:$4 sm:$0xff]  }
 0x1be   :  { %2288 = vmatpush1.bf16.msra.mxu0 %v5235_v20  ;;  %3529 = vmatprep.subr.bf16.mxu1 %v5321_v23  ;;  %v5313_v20 = vld [vmem:[#allocation8 + $0x1c8] ss:$16 sps:$4 sm:$0xff]   ;;  %v5351_v23 = vld [vmem:[#allocation8 + $0x2a4] ss:$16 sps:$4 sm:$0xff]  }
 0x1bf   :  { %3615 = vmatprep.subr.bf16.mxu0 %v5246_v22  ;;  %v5318_v22 = vld [vmem:[#allocation8 + $0x1ec] ss:$16 sps:$4 sm:$0xff]  }
 0x1c1   :  { %2290 = vmatmul.mubr.bf16.vlgmr.msra.gmra.mrb[4].mxu0 %v5566_v26  ;;  %v5324_v26 = vld [vmem:[#allocation8 + $0x20c] ss:$16 sps:$4 sm:$0xff]  }
 0x1c2   :  { %3616 = vmatpush1.bf16.msra.mxu0 %v5244_v24  ;;  %v5316_v24 = vld [vmem:[#allocation8 + $0x1e8] ss:$16 sps:$4 sm:$0xff]  }
 0x1c3   :  { %3617 = vmatprep.subr.bf16.mxu0 %v5252_v25  ;;  %v5349_v25 = vld [vmem:[#allocation8 + $0x2a0] ss:$16 sps:$4 sm:$0xff]  }
 0x1c6   :  { %3618 = vmatpush1.bf16.msra.mxu0 %v5250_v7  ;;  %v5357_v7 = vld [vmem:[#allocation8 + $0x2c4] ss:$16 sps:$4 sm:$0xff]  }
 0x1c7   :  { %3619 = vmatprep.subr.bf16.mxu0 %v5258_v27  ;;  %v5355_v27 = vld [vmem:[#allocation8 + $0x2c0] ss:$16 sps:$4 sm:$0xff]  }
 0x1ca   :  { %3620 = vmatpush1.bf16.msra.mxu0 %v5256_v28  ;;  %v5330_v28 = vld [vmem:[#allocation8 + $0x22c] ss:$16 sps:$4 sm:$0xff]  }
 0x1cb   :  { %3621 = vmatprep.subr.bf16.mxu0 %v5264_v50  ;;  %v5363_v50 = vld [vmem:[#allocation8 + $0x2e4] ss:$16 sps:$4 sm:$0xff]  }
 0x1ce   :  { %3622 = vmatpush1.bf16.msra.mxu0 %v5262_v49  ;;  %v5328_v49 = vld [vmem:[#allocation8 + $0x228] ss:$16 sps:$4 sm:$0xff]  }
 0x1cf   :  { %3623 = vmatprep.subr.bf16.mxu0 %v5270_v34  ;;  %v5361_v34 = vld [vmem:[#allocation8 + $0x2e0] ss:$16 sps:$4 sm:$0xff]  }
 0x1d2   :  { %3624 = vmatpush1.bf16.msra.mxu0 %v5268_v32  ;;  %v5336_v32 = vld [vmem:[#allocation8 + $0x24c] ss:$16 sps:$4 sm:$0xff]  }
 0x1d3   :  { %3625 = vmatprep.subr.bf16.mxu0 %v5276_v35  ;;  %v5334_v35 = vld [vmem:[#allocation8 + $0x248] ss:$16 sps:$4 sm:$0xff]  }
 0x1d4   :  { %v2033_v45 = vpop.f32.mrb[0].mxu0 }
 0x1d5   :  { %v4707_v47 = vadd.f32 %v2033_v45, %v1948_v38  ;;  %v2035_v48 = vpop.f32.mrb[1].mxu0  ;;  %v5375_v38 = vld [vmem:[#allocation8 + $0x324] ss:$16 sps:$4 sm:$0xff]   ;;  %v5348_v45 = vld [vmem:[#allocation8 + $0x28c] ss:$16 sps:$4 sm:$0xff]  }
 0x1d6   :  { %v4709_v52 = vadd.f32 %v2035_v48, %v1950_v43  ;;  %v2037_v53 = vpop.f32.mrb[2].mxu0  ;;  %3626 = vmatpush1.bf16.msra.mxu0 %v5274_v37  ;;  %v5342_v37 = vld [vmem:[#allocation8 + $0x26c] ss:$16 sps:$4 sm:$0xff]   ;;  %v5373_v43 = vld [vmem:[#allocation8 + $0x320] ss:$16 sps:$4 sm:$0xff]  }
 0x1d7   :  { %v4711_v55 = vadd.f32 %v2037_v53, %v1952_v46  ;;  %v2039_v56 = vpop.f32.mrb[3].mxu0  ;;  %3627 = vmatprep.subr.bf16.mxu0 %v5282_v42  ;;  %v5340_v42 = vld [vmem:[#allocation8 + $0x268] ss:$16 sps:$4 sm:$0xff]   ;;  %v5381_v46 = vld [vmem:[#allocation8 + $0x344] ss:$16 sps:$4 sm:$0xff]  }
 0x1d8   :  { %v4713_v39 = vadd.f32 %v2039_v56, %v1954_v51  ;;  %v5379_v48 = vld [vmem:[#allocation8 + $0x340] ss:$16 sps:$4 sm:$0xff]   ;;  %v5354_v51 = vld [vmem:[#allocation8 + $0x2ac] ss:$16 sps:$4 sm:$0xff]   ;;  %v5352_v53 = vld [vmem:[#allocation8 + $0x2a8] ss:$16 sps:$4 sm:$0xff]  }
 0x1d9   :  { %v2300_v58 = vpack.c.bf16 %v4711_v55, %v4707_v47  ;;  %v5346_v47 = vld [vmem:[#allocation8 + $0x288] ss:$16 sps:$4 sm:$0xff]   ;;  %v5360_v55 = vld [vmem:[#allocation8 + $0x2cc] ss:$16 sps:$4 sm:$0xff]   ;;  %v5393_v56 = vld [vmem:[#allocation8 + $0x384] ss:$16 sps:$4 sm:$0xff]  }
 0x1da   :  { %v2301_v59 = vpack.c.bf16 %v4713_v39, %v4709_v52  ;;  %3628 = vmatpush1.bf16.msra.mxu0 %v5280_v54  ;;  %v5387_v52 = vld [vmem:[#allocation8 + $0x364] ss:$16 sps:$4 sm:$0xff]   ;;  %v5385_v54 = vld [vmem:[#allocation8 + $0x360] ss:$16 sps:$4 sm:$0xff]  }
 0x1db   :  { %3629 = vmatprep.subr.bf16.mxu0 %v5288_v57  ;;  %v5358_v57 = vld [vmem:[#allocation8 + $0x2c8] ss:$16 sps:$4 sm:$0xff]   ;;  %v5391_v39 = vld [vmem:[#allocation8 + $0x380] ss:$16 sps:$4 sm:$0xff]  }
 0x1dc   :  { %5543 = vtanh.bf16 %v2301_v59  ;;  %v5399_v59 = vld [vmem:[#allocation8 + $0x3a4] ss:$16 sps:$4 sm:$0xff]  }
 0x1dd   :  { %5545 = vtanh.bf16 %v2300_v58  ;;  %v5366_v58 = vld [vmem:[#allocation8 + $0x2ec] ss:$16 sps:$4 sm:$0xff]  }
 0x1de   :  { %3630 = vmatpush1.bf16.msra.mxu0 %v5286_v40  ;;  %v5364_v40 = vld [vmem:[#allocation8 + $0x2e8] ss:$16 sps:$4 sm:$0xff]  }
 0x1df   :  { %3631 = vmatprep.subr.bf16.mxu0 %v5294_v60  ;;  %v5397_v60 = vld [vmem:[#allocation8 + $0x3a0] ss:$16 sps:$4 sm:$0xff]  }
 0x1e2   :  { %3632 = vmatpush1.bf16.msra.mxu0 %v5292_v41  ;;  %v5372_v41 = vld [vmem:[#allocation8 + $0x30c] ss:$16 sps:$4 sm:$0xff]  }
 0x1e3   :  { %3633 = vmatprep.subr.bf16.mxu0 %v5300_v44  ;;  %v5405_v44 = vld [vmem:[#allocation8 + $0x3c4] ss:$16 sps:$4 sm:$0xff]  }
 0x1e6   :  { %3634 = vmatpush1.bf16.msra.mxu0 %v5298_v61  ;;  %v5370_v61 = vld [vmem:[#allocation8 + $0x308] ss:$16 sps:$4 sm:$0xff]  }
 0x1e7   :  { %v5544_v1 = vpop.eup %5543  ;;  %3635 = vmatprep.subr.bf16.mxu0 %v5303_v62  ;;  %v5403_v62 = vld [vmem:[#allocation8 + $0x3c0] ss:$16 sps:$4 sm:$0xff]  }
 0x1e8   :  { %v5546_v5 = vpop.eup %5545  ;;  %3518 = vmatprep.mubr.bf16.mxu1 %v5544_v1  ;;  %3647 = vmatprep.mubr.bf16.mxu0 %v5544_v1  ;;  %v5376_v1 = vld [vmem:[#allocation8 + $0x328] ss:$16 sps:$4 sm:$0xff]  }
 0x1e9   :  { %3519 = vmatmul.mubr.bf16.vlgmr.msra.gmra.mrb[8].mxu1 %v5546_v5 }
 0x1ea   :  { %3636 = vmatpush1.bf16.msra.mxu0 %v5301_v63  ;;  %3530 = vmatpush1.bf16.msra.mxu1 %v5319_v0  ;;  %v5378_v63 = vld [vmem:[#allocation8 + $0x32c] ss:$16 sps:$4 sm:$0xff]   ;;  %v5411_v0 = vld [vmem:[#allocation8 + $0x3e4] ss:$16 sps:$4 sm:$0xff]  }
 0x1eb   :  { %3637 = vmatprep.subr.bf16.mxu0 %v5306_v2  ;;  %3531 = vmatprep.subr.bf16.mxu1 %v5327_v3  ;;  %v5409_v2 = vld [vmem:[#allocation8 + $0x3e0] ss:$16 sps:$4 sm:$0xff]   ;;  %v5384_v3 = vld [vmem:[#allocation8 + $0x34c] ss:$16 sps:$4 sm:$0xff]  }
 0x1ee   :  { %3638 = vmatpush1.bf16.msra.mxu0 %v5304_v6  ;;  %3532 = vmatpush1.bf16.msra.mxu1 %v5325_v8  ;;  %v5382_v6 = vld [vmem:[#allocation8 + $0x348] ss:$16 sps:$4 sm:$0xff]   ;;  %v5390_v8 = vld [vmem:[#allocation8 + $0x36c] ss:$16 sps:$4 sm:$0xff]  }
 0x1ef   :  { %3639 = vmatprep.subr.bf16.mxu0 %v5309_v9  ;;  %3533 = vmatprep.subr.bf16.mxu1 %v5333_v10  ;;  %v5388_v9 = vld [vmem:[#allocation8 + $0x368] ss:$16 sps:$4 sm:$0xff]   ;;  %v5396_v10 = vld [vmem:[#allocation8 + $0x38c] ss:$16 sps:$4 sm:$0xff]  }
 0x1f2   :  { %3640 = vmatpush1.bf16.msra.mxu0 %v5307_v12  ;;  %3534 = vmatpush1.bf16.msra.mxu1 %v5331_v13  ;;  %v5394_v12 = vld [vmem:[#allocation8 + $0x388] ss:$16 sps:$4 sm:$0xff]   ;;  %v5402_v13 = vld [vmem:[#allocation8 + $0x3ac] ss:$16 sps:$4 sm:$0xff]  }
 0x1f3   :  { %3641 = vmatprep.subr.bf16.mxu0 %v5312_v14  ;;  %3535 = vmatprep.subr.bf16.mxu1 %v5339_v15  ;;  %v5400_v14 = vld [vmem:[#allocation8 + $0x3a8] ss:$16 sps:$4 sm:$0xff]   ;;  %v5408_v15 = vld [vmem:[#allocation8 + $0x3cc] ss:$16 sps:$4 sm:$0xff]  }
 0x1f6   :  { %3642 = vmatpush1.bf16.msra.mxu0 %v5310_v16  ;;  %3536 = vmatpush1.bf16.msra.mxu1 %v5337_v17  ;;  %v5406_v16 = vld [vmem:[#allocation8 + $0x3c8] ss:$16 sps:$4 sm:$0xff]   ;;  %v5414_v17 = vld [vmem:[#allocation8 + $0x3ec] ss:$16 sps:$4 sm:$0xff]  }
 0x1f7   :  { %3643 = vmatprep.subr.bf16.mxu0 %v5315_v18  ;;  %3537 = vmatprep.subr.bf16.mxu1 %v5345_v19  ;;  %v5412_v18 = vld [vmem:[#allocation8 + $0x3e8] ss:$16 sps:$4 sm:$0xff]   ;;  %v5420_v19 = vld [vmem:[#allocation8 + $0x40c] ss:$16 sps:$4 sm:$0xff]  }
 0x1fa   :  { %3644 = vmatpush1.bf16.msra.mxu0 %v5313_v20  ;;  %3538 = vmatpush1.bf16.msra.mxu1 %v5343_v21  ;;  %v423_v20 = vsub.s32 2, %v5940_v11  ;;  %v427_v21 = vsub.s32 3, %v5940_v11 }
 0x1fb   :  { %3645 = vmatprep.subr.bf16.mxu0 %v5318_v22  ;;  %3539 = vmatprep.subr.bf16.mxu1 %v5351_v23 }
 0x1fc   :  { %v424_v22 = vrot.slane %v5943_v30, %v423_v20 }
 0x1fe   :  { %3646 = vmatpush1.bf16.msra.mxu0 %v5316_v24  ;;  %3540 = vmatpush1.bf16.msra.mxu1 %v5349_v25  ;;  %v428_v24 = vrot.slane %v5943_v30, %v427_v21 }
 0x1ff   :  { %3658 = vmatprep.subr.bf16.mxu0 %v5324_v26  ;;  %3541 = vmatprep.subr.bf16.mxu1 %v5357_v7 }
 0x201   :  { %3648 = vmatmul.mubr.bf16.vlgmr.msra.gmra.mrb[8].mxu0 %v5546_v5  ;;  %v5417_v5 = vld [vmem:[#allocation8 + $0x404] ss:$16 sps:$4 sm:$0xff]  }
 0x202   :  { %3659 = vmatpush1.bf16.msra.mxu0 %v5322_v4  ;;  %3542 = vmatpush1.bf16.msra.mxu1 %v5355_v27 }
 0x203   :  { %3660 = vmatprep.subr.bf16.mxu0 %v5330_v28  ;;  %3543 = vmatprep.subr.bf16.mxu1 %v5363_v50 }
 0x206   :  { %3661 = vmatpush1.bf16.msra.mxu0 %v5328_v49  ;;  %3544 = vmatpush1.bf16.msra.mxu1 %v5361_v34 }
 0x207   :  { %3662 = vmatprep.subr.bf16.mxu0 %v5336_v32  ;;  %3545 = vmatprep.subr.bf16.mxu1 %v5369_v33  ;;  %v5415_v32 = vld [vmem:[#allocation8 + $0x400] ss:$16 sps:$4 sm:$0xff]   ;;  %v5418_v33 = vld [vmem:[#allocation8 + $0x408] ss:$16 sps:$4 sm:$0xff]  }
 0x20a   :  { %3663 = vmatpush1.bf16.msra.mxu0 %v5334_v35  ;;  %3546 = vmatpush1.bf16.msra.mxu1 %v5367_v36  ;;  %v5423_v36 = vld [vmem:[#allocation8 + $0x424] ss:$16 sps:$4 sm:$0xff]  }
 0x20b   :  { %3664 = vmatprep.subr.bf16.mxu0 %v5342_v37  ;;  %3547 = vmatprep.subr.bf16.mxu1 %v5375_v38  ;;  %v5426_v37 = vld [vmem:[#allocation8 + $0x42c] ss:$16 sps:$4 sm:$0xff]  }
 0x20e   :  { %3665 = vmatpush1.bf16.msra.mxu0 %v5340_v42  ;;  %3548 = vmatpush1.bf16.msra.mxu1 %v5373_v43  ;;  %v5421_v42 = vld [vmem:[#allocation8 + $0x420] ss:$16 sps:$4 sm:$0xff]   ;;  %v5424_v43 = vld [vmem:[#allocation8 + $0x428] ss:$16 sps:$4 sm:$0xff]  }
 0x20f   :  { %3666 = vmatprep.subr.bf16.mxu0 %v5348_v45  ;;  %3549 = vmatprep.subr.bf16.mxu1 %v5381_v46  ;;  %v5429_v45 = vld [vmem:[#allocation8 + $0x444] ss:$16 sps:$4 sm:$0xff]   ;;  %v5432_v46 = vld [vmem:[#allocation8 + $0x44c] ss:$16 sps:$4 sm:$0xff]  }
 0x212   :  { %3667 = vmatpush1.bf16.msra.mxu0 %v5346_v47  ;;  %3550 = vmatpush1.bf16.msra.mxu1 %v5379_v48  ;;  %v5427_v47 = vld [vmem:[#allocation8 + $0x440] ss:$16 sps:$4 sm:$0xff]   ;;  %v5430_v48 = vld [vmem:[#allocation8 + $0x448] ss:$16 sps:$4 sm:$0xff]  }
 0x213   :  { %3668 = vmatprep.subr.bf16.mxu0 %v5354_v51  ;;  %3551 = vmatprep.subr.bf16.mxu1 %v5387_v52  ;;  %v5435_v51 = vld [vmem:[#allocation8 + $0x464] ss:$16 sps:$4 sm:$0xff]   ;;  %v5438_v52 = vld [vmem:[#allocation8 + $0x46c] ss:$16 sps:$4 sm:$0xff]  }
 0x216   :  { %3669 = vmatpush1.bf16.msra.mxu0 %v5352_v53  ;;  %3552 = vmatpush1.bf16.msra.mxu1 %v5385_v54  ;;  %v5433_v53 = vld [vmem:[#allocation8 + $0x460] ss:$16 sps:$4 sm:$0xff]   ;;  %v5436_v54 = vld [vmem:[#allocation8 + $0x468] ss:$16 sps:$4 sm:$0xff]  }
 0x217   :  { %3670 = vmatprep.subr.bf16.mxu0 %v5360_v55  ;;  %3553 = vmatprep.subr.bf16.mxu1 %v5393_v56  ;;  %v5441_v55 = vld [vmem:[#allocation8 + $0x484] ss:$16 sps:$4 sm:$0xff]   ;;  %v5444_v56 = vld [vmem:[#allocation8 + $0x48c] ss:$16 sps:$4 sm:$0xff]  }
 0x21a   :  { %3671 = vmatpush1.bf16.msra.mxu0 %v5358_v57  ;;  %3554 = vmatpush1.bf16.msra.mxu1 %v5391_v39  ;;  %v5439_v57 = vld [vmem:[#allocation8 + $0x480] ss:$16 sps:$4 sm:$0xff]   ;;  %v5442_v39 = vld [vmem:[#allocation8 + $0x488] ss:$16 sps:$4 sm:$0xff]  }
 0x21b   :  { %3672 = vmatprep.subr.bf16.mxu0 %v5366_v58  ;;  %3555 = vmatprep.subr.bf16.mxu1 %v5399_v59  ;;  %v5447_v58 = vld [vmem:[#allocation8 + $0x4a4] ss:$16 sps:$4 sm:$0xff]   ;;  %v5450_v59 = vld [vmem:[#allocation8 + $0x4ac] ss:$16 sps:$4 sm:$0xff]  }
 0x21e   :  { %3673 = vmatpush1.bf16.msra.mxu0 %v5364_v40  ;;  %3556 = vmatpush1.bf16.msra.mxu1 %v5397_v60  ;;  %v5445_v40 = vld [vmem:[#allocation8 + $0x4a0] ss:$16 sps:$4 sm:$0xff]   ;;  %v5448_v60 = vld [vmem:[#allocation8 + $0x4a8] ss:$16 sps:$4 sm:$0xff]  }
 0x21f   :  { %3674 = vmatprep.subr.bf16.mxu0 %v5372_v41  ;;  %3557 = vmatprep.subr.bf16.mxu1 %v5405_v44  ;;  %v5453_v41 = vld [vmem:[#allocation8 + $0x4c4] ss:$16 sps:$4 sm:$0xff]   ;;  %v5456_v44 = vld [vmem:[#allocation8 + $0x4cc] ss:$16 sps:$4 sm:$0xff]  }
 0x222   :  { %3675 = vmatpush1.bf16.msra.mxu0 %v5370_v61  ;;  %3558 = vmatpush1.bf16.msra.mxu1 %v5403_v62  ;;  %v5451_v61 = vld [vmem:[#allocation8 + $0x4c0] ss:$16 sps:$4 sm:$0xff]   ;;  %v5454_v62 = vld [vmem:[#allocation8 + $0x4c8] ss:$16 sps:$4 sm:$0xff]  }
 0x223   :  { %3676 = vmatprep.subr.bf16.mxu0 %v5378_v63  ;;  %3559 = vmatprep.subr.bf16.mxu1 %v5411_v0  ;;  %v5459_v63 = vld [vmem:[#allocation8 + $0x4e4] ss:$16 sps:$4 sm:$0xff]   ;;  %v5462_v0 = vld [vmem:[#allocation8 + $0x4ec] ss:$16 sps:$4 sm:$0xff]  }
 0x226   :  { %3677 = vmatpush1.bf16.msra.mxu0 %v5376_v1  ;;  %3560 = vmatpush1.bf16.msra.mxu1 %v5409_v2  ;;  %v5457_v1 = vld [vmem:[#allocation8 + $0x4e0] ss:$16 sps:$4 sm:$0xff]   ;;  %v5460_v2 = vld [vmem:[#allocation8 + $0x4e8] ss:$16 sps:$4 sm:$0xff]  }
 0x227   :  { %3678 = vmatprep.subr.bf16.mxu0 %v5384_v3  ;;  %3572 = vmatprep.subr.bf16.mxu1 %v5417_v5  ;;  %v5465_v3 = vld [vmem:[#allocation8 + $0x504] ss:$16 sps:$4 sm:$0xff]   ;;  %v5468_v5 = vld [vmem:[#allocation8 + $0x50c] ss:$16 sps:$4 sm:$0xff]  }
 0x22a   :  { %3679 = vmatpush1.bf16.msra.mxu0 %v5382_v6  ;;  %v5463_v6 = vld [vmem:[#allocation8 + $0x500] ss:$16 sps:$4 sm:$0xff]  }
 0x22b   :  { %3680 = vmatprep.subr.bf16.mxu0 %v5390_v8  ;;  %v5466_v8 = vld [vmem:[#allocation8 + $0x508] ss:$16 sps:$4 sm:$0xff]  }
 0x22e   :  { %3681 = vmatpush1.bf16.msra.mxu0 %v5388_v9  ;;  %v5471_v9 = vld [vmem:[#allocation8 + $0x524] ss:$16 sps:$4 sm:$0xff]  }
 0x22f   :  { %3682 = vmatprep.subr.bf16.mxu0 %v5396_v10  ;;  %v5474_v10 = vld [vmem:[#allocation8 + $0x52c] ss:$16 sps:$4 sm:$0xff]  }
 0x232   :  { %3683 = vmatpush1.bf16.msra.mxu0 %v5394_v12  ;;  %v5469_v12 = vld [vmem:[#allocation8 + $0x520] ss:$16 sps:$4 sm:$0xff]  }
 0x233   :  { %3684 = vmatprep.subr.bf16.mxu0 %v5402_v13  ;;  %v5472_v13 = vld [vmem:[#allocation8 + $0x528] ss:$16 sps:$4 sm:$0xff]  }
 0x236   :  { %3685 = vmatpush1.bf16.msra.mxu0 %v5400_v14  ;;  %v5477_v14 = vld [vmem:[#allocation8 + $0x544] ss:$16 sps:$4 sm:$0xff]  }
 0x237   :  { %3686 = vmatprep.subr.bf16.mxu0 %v5408_v15  ;;  %v5480_v15 = vld [vmem:[#allocation8 + $0x54c] ss:$16 sps:$4 sm:$0xff]  }
 0x23a   :  { %3687 = vmatpush1.bf16.msra.mxu0 %v5406_v16  ;;  %v5475_v16 = vld [vmem:[#allocation8 + $0x540] ss:$16 sps:$4 sm:$0xff]  }
 0x23b   :  { %3688 = vmatprep.subr.bf16.mxu0 %v5414_v17  ;;  %v5478_v17 = vld [vmem:[#allocation8 + $0x548] ss:$16 sps:$4 sm:$0xff]  }
 0x23e   :  { %3689 = vmatpush1.bf16.msra.mxu0 %v5412_v18  ;;  %v431_v18 = vsub.s32 4, %v5940_v11 }
 0x23f   :  { %3701 = vmatprep.subr.bf16.mxu0 %v5420_v19  ;;  %v5483_v19 = vld [vmem:[#allocation8 + $0x564] ss:$16 sps:$4 sm:$0xff]  }
 0x253   :  { %v2162_v23 = vpop.f32.mrb[4].mxu1 }
 0x254   :  { %v2164_v25 = vpop.f32.mrb[5].mxu1  ;;  %v4714_v7 = vadd.f32 %v2162_v23, %v424_v22  ;;  %v435_v23 = vsub.s32 5, %v5940_v11 }
 0x255   :  { %v2166_v26 = vpop.f32.mrb[6].mxu1  ;;  %v4715_v28 = vadd.f32 %v2164_v25, %v428_v24  ;;  %v5484_v25 = vld [vmem:[#allocation8 + $0x568] ss:$16 sps:$4 sm:$0xff]  }
 0x256   :  { %v4716_v4 = vadd.f32 %v2166_v26, %v424_v22  ;;  %v2168_v27 = vpop.f32.mrb[7].mxu1  ;;  %v5486_v22 = vld [vmem:[#allocation8 + $0x56c] ss:$16 sps:$4 sm:$0xff]   ;;  %v432_v26 = vrot.slane %v5943_v30, %v431_v18 }
 0x257   :  { %v4717_v50 = vadd.f32 %v2168_v27, %v428_v24  ;;  %v5481_v24 = vld [vmem:[#allocation8 + $0x560] ss:$16 sps:$4 sm:$0xff]  }
 0x258   :  { %v2302_v49 = vpack.c.bf16 %v4716_v4, %v4714_v7  ;;  %v5489_v7 = vld [vmem:[#allocation8 + $0x584] ss:$16 sps:$4 sm:$0xff]   ;;  %v5492_v4 = vld [vmem:[#allocation8 + $0x58c] ss:$16 sps:$4 sm:$0xff]  }
 0x259   :  { %v2303_v34 = vpack.c.bf16 %v4717_v50, %v4715_v28  ;;  %v436_v28 = vrot.slane %v5943_v30, %v435_v23  ;;  %v5493_v30 = vld [vmem:[#allocation8 + $0x5a0] ss:$16 sps:$4 sm:$0xff]  }
 0x25b   :  { %5547 = vtanh.bf16 %v2303_v34  ;;  %v5487_v34 = vld [vmem:[#allocation8 + $0x580] ss:$16 sps:$4 sm:$0xff]  }
 0x25c   :  { %5549 = vtanh.bf16 %v2302_v49 }
 0x266   :  { %v5548_v35 = vpop.eup %5547 }
 0x267   :  { %v5550_v38 = vpop.eup %5549  ;;  %3561 = vmatprep.mubr.bf16.mxu1 %v5548_v35  ;;  %3690 = vmatprep.mubr.bf16.mxu0 %v5548_v35 }
 0x268   :  { %3562 = vmatmul.mubr.bf16.vlgmr.msra.gmra.mrb[8].mxu1 %v5550_v38  ;;  %3691 = vmatmul.mubr.bf16.vlgmr.msra.gmra.mrb[8].mxu0 %v5550_v38  ;;  %v5498_v38 = vld [vmem:[#allocation8 + $0x5ac] ss:$16 sps:$4 sm:$0xff]  }
 0x269   :  { %3573 = vmatpush1.bf16.msra.mxu1 %v5415_v32  ;;  %3702 = vmatpush1.bf16.msra.mxu0 %v5418_v33  ;;  %v5490_v32 = vld [vmem:[#allocation8 + $0x588] ss:$16 sps:$4 sm:$0xff]  }
 0x26a   :  { %3574 = vmatprep.subr.bf16.mxu1 %v5423_v36  ;;  %3703 = vmatprep.subr.bf16.mxu0 %v5426_v37  ;;  %v5495_v37 = vld [vmem:[#allocation8 + $0x5a4] ss:$16 sps:$4 sm:$0xff]  }
 0x26d   :  { %3575 = vmatpush1.bf16.msra.mxu1 %v5421_v42  ;;  %3704 = vmatpush1.bf16.msra.mxu0 %v5424_v43 }
 0x26e   :  { %3576 = vmatprep.subr.bf16.mxu1 %v5429_v45  ;;  %3705 = vmatprep.subr.bf16.mxu0 %v5432_v46 }
 0x271   :  { %3577 = vmatpush1.bf16.msra.mxu1 %v5427_v47  ;;  %3706 = vmatpush1.bf16.msra.mxu0 %v5430_v48  ;;  %v5496_v47 = vld [vmem:[#allocation8 + $0x5a8] ss:$16 sps:$4 sm:$0xff]   ;;  %v5501_v48 = vld [vmem:[#allocation8 + $0x5c4] ss:$16 sps:$4 sm:$0xff]  }
 0x272   :  { %3578 = vmatprep.subr.bf16.mxu1 %v5435_v51  ;;  %3707 = vmatprep.subr.bf16.mxu0 %v5438_v52  ;;  %v5504_v51 = vld [vmem:[#allocation8 + $0x5cc] ss:$16 sps:$4 sm:$0xff]   ;;  %v5499_v52 = vld [vmem:[#allocation8 + $0x5c0] ss:$16 sps:$4 sm:$0xff]  }
 0x275   :  { %3579 = vmatpush1.bf16.msra.mxu1 %v5433_v53  ;;  %3708 = vmatpush1.bf16.msra.mxu0 %v5436_v54  ;;  %v5502_v53 = vld [vmem:[#allocation8 + $0x5c8] ss:$16 sps:$4 sm:$0xff]   ;;  %v5507_v54 = vld [vmem:[#allocation8 + $0x5e4] ss:$16 sps:$4 sm:$0xff]  }
 0x276   :  { %3580 = vmatprep.subr.bf16.mxu1 %v5441_v55  ;;  %3709 = vmatprep.subr.bf16.mxu0 %v5444_v56  ;;  %v5510_v55 = vld [vmem:[#allocation8 + $0x5ec] ss:$16 sps:$4 sm:$0xff]   ;;  %v5505_v56 = vld [vmem:[#allocation8 + $0x5e0] ss:$16 sps:$4 sm:$0xff]  }
 0x279   :  { %3581 = vmatpush1.bf16.msra.mxu1 %v5439_v57  ;;  %3710 = vmatpush1.bf16.msra.mxu0 %v5442_v39  ;;  %v5508_v57 = vld [vmem:[#allocation8 + $0x5e8] ss:$16 sps:$4 sm:$0xff]  }
 0x27a   :  { %3582 = vmatprep.subr.bf16.mxu1 %v5447_v58  ;;  %3711 = vmatprep.subr.bf16.mxu0 %v5450_v59  ;;  %v5511_v39 = vld [vmem:[#allocation11 + $0x40] sm:$0xff]  }
 0x27b   :  { %v5512_v58 = vld [vmem:[#allocation11] sm:$0xff]  }
 0x27d   :  { %3583 = vmatpush1.bf16.msra.mxu1 %v5445_v40  ;;  %3712 = vmatpush1.bf16.msra.mxu0 %v5448_v60  ;;  %v5513_v40 = vld [vmem:[#allocation11 + $0x48] sm:$0xff]  }
 0x27e   :  { %3584 = vmatprep.subr.bf16.mxu1 %v5453_v41  ;;  %3713 = vmatprep.subr.bf16.mxu0 %v5456_v44  ;;  %v5514_v41 = vld [vmem:[#allocation11 + $0x8] sm:$0xff]   ;;  %v5515_v44 = vld [vmem:[#allocation11 + $0x50] sm:$0xff]  }
 0x281   :  { %3585 = vmatpush1.bf16.msra.mxu1 %v5451_v61  ;;  %3714 = vmatpush1.bf16.msra.mxu0 %v5454_v62  ;;  %v5516_v61 = vld [vmem:[#allocation11 + $0x10] sm:$0xff]   ;;  %v5517_v62 = vld [vmem:[#allocation11 + $0x58] sm:$0xff]  }
 0x282   :  { %3586 = vmatprep.subr.bf16.mxu1 %v5459_v63  ;;  %3715 = vmatprep.subr.bf16.mxu0 %v5462_v0  ;;  %v5518_v63 = vld [vmem:[#allocation11 + $0x18] sm:$0xff]   ;;  %v5519_v0 = vld [vmem:[#allocation11 + $0x60] sm:$0xff]  }
 0x285   :  { %3587 = vmatpush1.bf16.msra.mxu1 %v5457_v1  ;;  %3716 = vmatpush1.bf16.msra.mxu0 %v5460_v2  ;;  %v5520_v1 = vld [vmem:[#allocation11 + $0x20] sm:$0xff]   ;;  %v5521_v2 = vld [vmem:[#allocation11 + $0x68] sm:$0xff]  }
 0x286   :  { %3588 = vmatprep.subr.bf16.mxu1 %v5465_v3  ;;  %3717 = vmatprep.subr.bf16.mxu0 %v5468_v5  ;;  %v5522_v3 = vld [vmem:[#allocation11 + $0x28] sm:$0xff]   ;;  %v5523_v5 = vld [vmem:[#allocation11 + $0x70] sm:$0xff]  }
 0x289   :  { %3589 = vmatpush1.bf16.msra.mxu1 %v5463_v6  ;;  %3718 = vmatpush1.bf16.msra.mxu0 %v5466_v8  ;;  %v5524_v6 = vld [vmem:[#allocation11 + $0x30] sm:$0xff]   ;;  %v5525_v8 = vld [vmem:[#allocation11 + $0x78] sm:$0xff]  }
 0x28a   :  { %3590 = vmatprep.subr.bf16.mxu1 %v5471_v9  ;;  %3719 = vmatprep.subr.bf16.mxu0 %v5474_v10  ;;  %v5526_v9 = vld [vmem:[#allocation11 + $0x38] sm:$0xff]   ;;  %v5527_v10 = vld [vmem:[#allocation11 + $0xc0] sm:$0xff]  }
 0x28d   :  { %3591 = vmatpush1.bf16.msra.mxu1 %v5469_v12  ;;  %3720 = vmatpush1.bf16.msra.mxu0 %v5472_v13  ;;  %v2504_v12 = vld [vmem:[#allocation10] sm:$0xf] }
 0x28e   :  { %3592 = vmatprep.subr.bf16.mxu1 %v5477_v14  ;;  %3721 = vmatprep.subr.bf16.mxu0 %v5480_v15  ;;  %v2509_v13 = vrot.slane %v2504_v12, %v415_v29  ;;  %v2517_v14 = vrot.slane %v2504_v12, %v423_v20  ;;  %v2513_v15 = vrot.slane %v2504_v12, %v419_v31 }
 0x291   :  { %3593 = vmatpush1.bf16.msra.mxu1 %v5475_v16  ;;  %3722 = vmatpush1.bf16.msra.mxu0 %v5478_v17  ;;  %v2521_v16 = vrot.slane %v2504_v12, %v427_v21 }
 0x292   :  { %3594 = vmatprep.subr.bf16.mxu1 %v5483_v19  ;;  %3723 = vmatprep.subr.bf16.mxu0 %v5486_v22 }
 0x294   :  { %v2291_v27 = vpop.f32.mrb[4].mxu0 }
 0x295   :  { %v2293_v50 = vpop.f32.mrb[5].mxu0  ;;  %3595 = vmatpush1.bf16.msra.mxu1 %v5481_v24  ;;  %3724 = vmatpush1.bf16.msra.mxu0 %v5484_v25  ;;  %v4718_v33 = vadd.f32 %v2291_v27, %v432_v26 }
 0x296   :  { %v2295_v49 = vpop.f32.mrb[6].mxu0  ;;  %3596 = vmatprep.subr.bf16.mxu1 %v5489_v7  ;;  %3725 = vmatprep.subr.bf16.mxu0 %v5492_v4  ;;  %v4719_v42 = vadd.f32 %v2293_v50, %v436_v28 }
 0x297   :  { %v4720_v35 = vadd.f32 %v2295_v49, %v432_v26  ;;  %v2297_v36 = vpop.f32.mrb[7].mxu0 }
 0x298   :  { %v4721_v43 = vadd.f32 %v2297_v36, %v436_v28 }
 0x299   :  { %v2304_v45 = vpack.c.bf16 %v4720_v35, %v4718_v33  ;;  %3597 = vmatpush1.bf16.msra.mxu1 %v5487_v34  ;;  %3726 = vmatpush1.bf16.msra.mxu0 %v5490_v32 }
 0x29a   :  { %v2305_v46 = vpack.c.bf16 %v4721_v43, %v4719_v42  ;;  %3598 = vmatprep.subr.bf16.mxu1 %v5495_v37  ;;  %3727 = vmatprep.subr.bf16.mxu0 %v5498_v38 }
 0x29c   :  { %5551 = vtanh.bf16 %v2305_v46  ;;  %v5529_v46 = vld [vmem:[#allocation11 + $0xc8] sm:$0xff]  }
 0x29d   :  { %5553 = vtanh.bf16 %v2304_v45  ;;  %3599 = vmatpush1.bf16.msra.mxu1 %v5493_v30  ;;  %3728 = vmatpush1.bf16.msra.mxu0 %v5496_v47  ;;  %v5528_v45 = vld [vmem:[#allocation11 + $0x80] sm:$0xff]   ;;  %v5530_v30 = vld [vmem:[#allocation11 + $0x88] sm:$0xff]   ;;  %v5531_v47 = vld [vmem:[#allocation11 + $0xd0] sm:$0xff]  }
 0x29e   :  { %3600 = vmatprep.subr.bf16.mxu1 %v5501_v48  ;;  %3729 = vmatprep.subr.bf16.mxu0 %v5504_v51  ;;  %v5532_v48 = vld [vmem:[#allocation11 + $0x90] sm:$0xff]   ;;  %v5533_v51 = vld [vmem:[#allocation11 + $0xd8] sm:$0xff]  }
 0x2a1   :  { %3601 = vmatpush1.bf16.msra.mxu1 %v5499_v52  ;;  %3730 = vmatpush1.bf16.msra.mxu0 %v5502_v53  ;;  %v5534_v52 = vld [vmem:[#allocation11 + $0x98] sm:$0xff]   ;;  %v5535_v53 = vld [vmem:[#allocation11 + $0xe0] sm:$0xff]  }
 0x2a2   :  { %3602 = vmatprep.subr.bf16.mxu1 %v5507_v54  ;;  %3731 = vmatprep.subr.bf16.mxu0 %v5510_v55  ;;  %v5536_v54 = vld [vmem:[#allocation11 + $0xa0] sm:$0xff]   ;;  %v5537_v55 = vld [vmem:[#allocation11 + $0xe8] sm:$0xff]  }
 0x2a5   :  { %3603 = vmatpush1.bf16.msra.mxu1 %v5505_v56  ;;  %3732 = vmatpush1.bf16.msra.mxu0 %v5508_v57  ;;  %v5538_v56 = vld [vmem:[#allocation11 + $0xa8] sm:$0xff]   ;;  %v5539_v57 = vld [vmem:[#allocation11 + $0xf0] sm:$0xff]  }
 0x2a6   :  { %4662 = vmatprep.subr.bf16.mxu1 %v5511_v39  ;;  %v5540_v39 = vld [vmem:[#allocation11 + $0xb0] sm:$0xff]  }
 0x2a7   :  { %v5552_v59 = vpop.eup %5551 }
 0x2a8   :  { %v5554_v60 = vpop.eup %5553  ;;  %3604 = vmatprep.mubr.bf16.mxu1 %v5552_v59  ;;  %3733 = vmatprep.mubr.bf16.mxu0 %v5552_v59  ;;  %v5542_v59 = vld [vmem:[#allocation11 + $0xb8] sm:$0xff]  }
 0x2a9   :  { %3605 = vmatmul.mubr.bf16.vlgmr.msra.gmra.mrb[8].mxu1 %v5554_v60  ;;  %3734 = vmatmul.mubr.bf16.vlgmr.msra.gmra.mrb[8].mxu0 %v5554_v60 }
 0x2aa   :  { %4663 = vmatpush3.bf16.msra.mxu1 %v5512_v58  ;;  %v5541_v58 = vld [vmem:[#allocation11 + $0xf8] sm:$0xff]  }
 0x2ab   :  { %4664 = vmatprep.subr.bf16.mxu1 %v5513_v40 }
 0x2ae   :  { %4665 = vmatpush3.bf16.msra.mxu1 %v5514_v41 }
 0x2af   :  { %4666 = vmatprep.subr.bf16.mxu1 %v5515_v44 }
 0x2b2   :  { %4667 = vmatpush3.bf16.msra.mxu1 %v5516_v61 }
 0x2b3   :  { %4668 = vmatprep.subr.bf16.mxu1 %v5517_v62 }
 0x2b6   :  { %4669 = vmatpush3.bf16.msra.mxu1 %v5518_v63  ;;  %v4629_v63 = vld [vmem:[#allocation13] ss:$0 sm:$0xff] }
 0x2b7   :  { %4670 = vmatprep.subr.bf16.mxu1 %v5519_v0 }
 0x2ba   :  { %4671 = vmatpush3.bf16.msra.mxu1 %v5520_v1 }
 0x2bb   :  { %4672 = vmatprep.subr.bf16.mxu1 %v5521_v2 }
 0x2be   :  { %4673 = vmatpush3.bf16.msra.mxu1 %v5522_v3 }
 0x2bf   :  { %4674 = vmatprep.subr.bf16.mxu1 %v5523_v5 }
 0x2c2   :  { %4675 = vmatpush3.bf16.msra.mxu1 %v5524_v6 }
 0x2c3   :  { %4676 = vmatprep.subr.bf16.mxu1 %v5525_v8 }
 0x2c6   :  { %4677 = vmatpush3.bf16.msra.mxu1 %v5526_v9 }
 0x2c7   :  { %4684 = vmatprep.subr.bf16.mxu1 %v5527_v10 }
 0x37c   :  { %v3606_v17 = vpop.f32.mrb[8].mxu1  ;;  %v3735_v18 = vpop.f32.mrb[8].mxu0 }
 0x37d   :  { %v4722_v19 = vadd.f32 %v3606_v17, %v2509_v13  ;;  %v4726_v22 = vadd.f32 %v3735_v18, %v2517_v14  ;;  %v3608_v23 = vpop.f32.mrb[9].mxu1  ;;  %v3737_v24 = vpop.f32.mrb[9].mxu0 }
 0x37e   :  { %v4723_v25 = vadd.f32 %v3608_v23, %v2513_v15  ;;  %v4727_v26 = vadd.f32 %v3737_v24, %v2521_v16  ;;  %v3610_v7 = vpop.f32.mrb[10].mxu1  ;;  %v3739_v4 = vpop.f32.mrb[10].mxu0 }
 0x37f   :  { %v4724_v29 = vadd.f32 %v3610_v7, %v2509_v13  ;;  %v4728_v27 = vadd.f32 %v3739_v4, %v2517_v14  ;;  %v3612_v28 = vpop.f32.mrb[11].mxu1  ;;  %v3741_v20 = vpop.f32.mrb[11].mxu0  ;;  %v3744_v31 = vmax.f32 %v4722_v19, 0.0  ;;  %v3746_v34 = vmax.f32 %v4726_v22, 0.0 }
 0x380   :  { %v4725_v50 = vadd.f32 %v3612_v28, %v2513_v15  ;;  %v4729_v49 = vadd.f32 %v3741_v20, %v2521_v16  ;;  %v3745_v32 = vmax.f32 %v4723_v25, 0.0  ;;  %v3747_v33 = vmax.f32 %v4727_v26, 0.0 }
 0x381   :  { %v3748_v11 = vmax.f32 %v4724_v29, 0.0  ;;  %v3750_v21 = vmax.f32 %v4728_v27, 0.0 }
 0x382   :  { %v3749_v35 = vmax.f32 %v4725_v50, 0.0  ;;  %v3751_v36 = vmax.f32 %v4729_v49, 0.0 }
 0x383   :  { %v3752_v37 = vpack.c.bf16 %v3748_v11, %v3744_v31  ;;  %v3754_v38 = vpack.c.bf16 %v3750_v21, %v3746_v34 }
 0x384   :  { %v3753_v42 = vpack.c.bf16 %v3749_v35, %v3745_v32  ;;  %v3755_v43 = vpack.c.bf16 %v3751_v36, %v3747_v33 }
 0x386   :  { %4051 = vmatprep.mubr.bf16.mxu1 %v3753_v42 }
 0x387   :  { %4052 = vmatmul.mubr.bf16.vlgmr.msra.gmra.mrb[12].mxu1 %v3752_v37 }
 0x388   :  { %4685 = vmatpush3.bf16.msra.mxu1 %v5528_v45  ;;  %4092 = vmatprep.mubr.bf16.mxu1 %v3755_v43 }
 0x389   :  { %4686 = vmatprep.subr.bf16.mxu1 %v5529_v46 }
 0x38c   :  { %4687 = vmatpush3.bf16.msra.mxu1 %v5530_v30 }
 0x38d   :  { %4688 = vmatprep.subr.bf16.mxu1 %v5531_v47 }
 0x390   :  { %4689 = vmatpush3.bf16.msra.mxu1 %v5532_v48 }
 0x391   :  { %4690 = vmatprep.subr.bf16.mxu1 %v5533_v51 }
 0x394   :  { %4691 = vmatpush3.bf16.msra.mxu1 %v5534_v52 }
 0x395   :  { %4692 = vmatprep.subr.bf16.mxu1 %v5535_v53 }
 0x398   :  { %4693 = vmatpush3.bf16.msra.mxu1 %v5536_v54 }
 0x399   :  { %4694 = vmatprep.subr.bf16.mxu1 %v5537_v55 }
 0x39c   :  { %4695 = vmatpush3.bf16.msra.mxu1 %v5538_v56 }
 0x39d   :  { %4696 = vmatprep.subr.bf16.mxu1 %v5539_v57 }
 0x3a0   :  { %4697 = vmatpush3.bf16.msra.mxu1 %v5540_v39 }
 0x3a1   :  { %4698 = vmatprep.subr.bf16.mxu1 %v5541_v58 }
 0x3a4   :  { %4699 = vmatpush3.bf16.msra.mxu1 %v5542_v59 }
 0x3a7   :  { %4093 = vmatmul.mubr.bf16.vlgmr.msra.gmra.mrb[16].mxu1 %v3754_v38 }
 0x45a   :  { %v4678_v40 = vpop.f32.mrb[12].mxu1 }
 0x45b   :  { %v4679_v60 = vpop.f32.mrb[13].mxu1 }
 0x45c   :  { %v4680_v41 = vadd.f32 %v4679_v60, %v4678_v40  ;;  %v4681_v44 = vpop.f32.mrb[14].mxu1 }
 0x45d   :  { %v4682_v61 = vpop.f32.mrb[15].mxu1 }
 0x45e   :  { %v4683_v62 = vadd.f32 %v4682_v61, %v4681_v44  ;;  %v4054_v2 = vadd.f32 %v4680_v41, %v4629_v63 }
 0x460   :  { %v4057_v8 = vadd.f32 %v4683_v62, %v4629_v63 }
 0x47a   :  { %v4700_v0 = vpop.f32.mrb[16].mxu1 }
 0x47b   :  { %v4701_v1 = vpop.f32.mrb[17].mxu1 }
 0x47c   :  { %v4702_v3 = vadd.f32 %v4701_v1, %v4700_v0  ;;  %v4703_v5 = vpop.f32.mrb[18].mxu1 }
 0x47d   :  { %v4704_v6 = vpop.f32.mrb[19].mxu1 }
 0x47e   :  { %v4705_v9 = vadd.f32 %v4704_v6, %v4703_v5  ;;  %v4095_v10 = vadd.f32 %v4702_v3, %v4054_v2 }
 0x480   :  { %4101 = vmax.xlane.f32.xlu0 %v4095_v10  ;;  %v4098_v12 = vadd.f32 %v4705_v9, %v4057_v8 }
 0x484   :  { %4103 = vmax.xlane.f32.xlu0 %v4098_v12 }
 0x50d   :  { %v4102_v13 = vpop.xlane.xlu0 %4101 }
 0x50e   :  { %v4105_v14 = vsub.f32 %v4095_v10, %v4102_v13 }
 0x510   :  { %v4107_v15 = vmul.f32 1.442695, %v4105_v14 }
 0x511   :  { %v4104_v16 = vpop.xlane.xlu0 %4103 }
 0x512   :  { %v4106_v17 = vsub.f32 %v4098_v12, %v4104_v16  ;;  %5555 = vpow2.f32 %v4107_v15 }
 0x514   :  { %v4109_v18 = vmul.f32 1.442695, %v4106_v17 }
 0x516   :  { %5557 = vpow2.f32 %v4109_v18 }
 0x51c   :  { %v5556_v19 = vpop.eup %5555 }
 0x51d   :  { %4111 = vadd.xlane.f32.xlu1 %v5556_v19 }
 0x520   :  { %v5558_v22 = vpop.eup %5557 }
 0x521   :  { %4113 = vadd.xlane.f32.xlu1 %v5558_v22 }
 0x5aa   :  { %v4112_v23 = vpop.xlane.xlu1 %4111 }
 0x5ab   :  { %5559 = vlog2.f32 %v4112_v23 }
 0x5ae   :  { %v4114_v24 = vpop.xlane.xlu1 %4113 }
 0x5af   :  { %5561 = vlog2.f32 %v4114_v24 }
 0x5b5   :  { %v5560_v25 = vpop.eup %5559 }
 0x5b6   :  { %v4116_v26 = vmul.f32 0.6931472, %v5560_v25 }
 0x5b8   :  { %v4119_v7 = vsub.f32 %v4105_v14, %v4116_v26 }
 0x5b9   :  { %v5562_v4 = vpop.eup %5561 }
 0x5ba   :  { %4121 = vst [vmem:[#allocation14] sm:$0xff] %v4119_v7  ;;  %v4118_v29 = vmul.f32 0.6931472, %v5562_v4 }
 0x5bc   :  { %v4120_v27 = vsub.f32 %v4106_v17, %v4118_v29 }
 0x5be   :  { %4122 = vst [vmem:[#allocation14 + $0x8] sm:$0xff] %v4120_v27 }
 0x5bf   :  { %5732 = shalt.err (!%p5729_p4)
}
 0x5c0   :  { %s5733_s14 = scalar_lea.hbm %s5995_s7, 256 }
 0x5c1   :  { %p5734_p5 = scmp.ne.s32.totalorder %s5995_s7, %s5733_s14  ;;  %p5737_p6 = scmp.lt.u32.totalorder %s5733_s14, %s5995_s7 }
 0x5c3   :  { %p5739_p7 = pnand %p5737_p6, %p5734_p5 }
 0x5c5   :  { %5742 = shalt.err (!%p5739_p7)
}
 0x5c6   :  { %s5767_s22 = smov 128   ;;  %s5768_s24 = smov 8  }
 0x5c7   :  { %4134 = dma.vmem_to_hbm [thread:$0]  %s4129_s3, 256, %s5995_s7, [#allocation4], %s5767_s22, %s5767_s22, %s5768_s24  }
 0x5c8   :  { %5751 = dma.done.wait [#allocation4], 256  }
 0x5c9   :  { %5752 = vsyncadd [#allocation4], 4294967040 }
 0x5ca   :  { %4138 = vsyncpa [#allocation3], 1 }
 0x5cb   :  { %4139 = vsyncpa [#allocation6], 1 }
 0x5cc   :  { %4140 = vsyncpa [#allocation9], 1 }
 0x5cd   :  { %4141 = vsyncpa [#allocation12], 1 }
 0x5ce   :  { %4142 = vsyncpa [#allocation4], 1 }

</bundles_post_ra>
